<compile_context>
chip_gen: v6e
topology: v6e:2x2x1
jax: 0.10.0
libtpu: 0.0.40
codegen_flags: <defaults>
</compile_context>

<pallas_src>
import jax
import jax.numpy as jnp
from jax.experimental import pallas as pl
from jax.experimental.pallas import tpu as pltpu

EPS = 1e-5
BN_MOMENTUM = 0.1


def se_conv_bn_kernel(se_ref, w87t_ref, b87_ref, x_ref, w88_ref,
                      gamma_ref, beta_ref, rmean_ref, rvar_ref,
                      o_ref, new_rmean_ref, new_rvar_ref):
    # ---- conv2d87 (1x1) on the SE vector, lane-dense form ----
    # w87t: [48, 1152], se: [48, 1]  ->  VPU multiply + sublane reduce -> [1, 1152]
    s = jnp.sum(w87t_ref[...] * se_ref[...], axis=0, keepdims=True) + b87_ref[...]
    s = jax.nn.sigmoid(s)                                       # [1, 1152], lane-dense EUP

    # ---- fold the per-input-channel SE gate into the conv88 weight columns ----
    # (w88 * s_row) @ x  ==  w88 @ (diag(s) @ x): identical math, stays lane-dense,
    # and avoids a [1,1152] -> [1152,1] transpose.
    w_s = (w88_ref[...].astype(jnp.float32) * s).astype(jnp.bfloat16)   # [192, 1152] bf16
    y = x_ref[...].astype(jnp.bfloat16)                                 # [1152, 49]  bf16

    # ---- conv2d88 (1x1, no bias) as MXU matmul, bf16 inputs / f32 accumulation ----
    z = jnp.dot(w_s, y, preferred_element_type=jnp.float32)             # [192, 49] f32

    # ---- BatchNorm2d (training mode: batch stats over N*H*W = 49) ----
    # Centered (two-pass) variance: no E[z^2] - mean^2 cancellation.
    n = z.shape[1]
    inv_n = jnp.float32(1.0 / n)
    mean = jnp.sum(z, axis=1, keepdims=True) * inv_n                    # [192, 1]
    d = z - mean
    var = jnp.sum(d * d, axis=1, keepdims=True) * inv_n                 # biased (normalization)
    scale = gamma_ref[...] * jax.lax.rsqrt(var + EPS)                   # [192, 1]
    o_ref[...] = d * scale + beta_ref[...]                              # [192, 49]

    # ---- train-mode running-stat side effect (momentum=0.1, unbiased variance) ----
    mom = jnp.float32(BN_MOMENTUM)
    var_unbiased = var * jnp.float32(n / (n - 1))
    new_rmean_ref[...] = (1.0 - mom) * rmean_ref[...] + mom * mean
    new_rvar_ref[...] = (1.0 - mom) * rvar_ref[...] + mom * var_unbiased


def prepare_params(params):
    """One-time parameter layout prep (hoisted off the per-call forward path)."""
    c_mid, c_se = params["w87"].shape[:2]
    c_out = params["w88"].shape[0]
    return {
        # pre-transposed so the SE path is lane-dense inside the kernel
        "w87t": jnp.asarray(params["w87"].reshape(c_mid, c_se).T),         # [48, 1152] f32
        "b87": params["b87"].reshape(1, c_mid),                            # [1, 1152]  f32
        "w88": params["w88"].reshape(c_out, c_mid).astype(jnp.bfloat16),   # [192, 1152] bf16
        "gamma": params["gamma"].reshape(c_out, 1),                        # [192, 1]
        "beta": params["beta"].reshape(c_out, 1),                          # [192, 1]
        "running_mean": params["running_mean"].reshape(c_out, 1),          # [192, 1]
        "running_var": params["running_var"].reshape(c_out, 1),            # [192, 1]
    }


def module_m_forward(x266, x263, prep):
    """x266: [1,48,1,1] NCHW, x263: [1,1152,7,7] NCHW -> ([1,192,7,7], rmean, rvar)."""
    n, c_se, _, _ = x266.shape
    _, c_mid, h, w = x263.shape
    c_out = prep["w88"].shape[0]
    hw = h * w

    # Free (view-only) reshapes: channel-major flattening of NCHW.
    se = x266.reshape(c_se, 1)        # [48, 1]
    x = x263.reshape(c_mid, hw)       # [1152, 49]

    flops = (2 * hw * c_mid * c_out          # conv88 matmul
             + 2 * c_se * c_mid               # SE 1x1 conv
             + 2 * c_mid * c_out              # folding s into w88
             + 8 * c_out * hw)                # BN
    bytes_accessed = (
        se.size * 4 + prep["w87t"].size * 4 + prep["b87"].size * 4
        + x.size * 4 + prep["w88"].size * 2
        + (prep["gamma"].size + prep["beta"].size
           + prep["running_mean"].size + prep["running_var"].size) * 4
        + c_out * hw * 4 + 2 * c_out * 4
    )

    vmem = pl.BlockSpec(memory_space=pltpu.MemorySpace.VMEM)
    out, new_rm, new_rv = pl.pallas_call(
        se_conv_bn_kernel,
        out_shape=(
            jax.ShapeDtypeStruct((c_out, hw), jnp.float32),
            jax.ShapeDtypeStruct((c_out, 1), jnp.float32),
            jax.ShapeDtypeStruct((c_out, 1), jnp.float32),
        ),
        in_specs=[vmem] * 9,
        out_specs=(vmem, vmem, vmem),
        cost_estimate=pl.CostEstimate(
            flops=flops,
            transcendentals=c_mid + c_out,
            bytes_accessed=bytes_accessed,
        ),
    )(se, prep["w87t"], prep["b87"], x, prep["w88"],
      prep["gamma"], prep["beta"], prep["running_mean"], prep["running_var"])

    # [192, 49] -> NCHW [1, 192, 7, 7]  (free reshape, no transpose)
    return out.reshape(n, c_out, h, w), new_rm.reshape(c_out), new_rv.reshape(c_out)


def reference_forward(x266, x263, params):
    """Pure-JAX f32 reference of the PyTorch module (for a loose accuracy check)."""
    c_mid, c_se = params["w87"].shape[:2]
    c_out = params["w88"].shape[0]
    n, _, h, w = x263.shape
    hw = h * w
    s = jax.nn.sigmoid(params["w87"].reshape(c_mid, c_se) @ x266.reshape(c_se)
                       + params["b87"])                                   # [1152]
    y = x263.reshape(c_mid, hw) * s[:, None]                              # [1152, 49]
    z = params["w88"].reshape(c_out, c_mid) @ y                           # [192, 49]
    mean = z.mean(axis=1, keepdims=True)
    var = ((z - mean) ** 2).mean(axis=1, keepdims=True)
    out = ((z - mean) / jnp.sqrt(var + EPS)
           * params["gamma"][:, None] + params["beta"][:, None])
    return out.reshape(n, c_out, h, w)


def init_params(key):
    k87w, k87b, k88w, kg, kb = jax.random.split(key, 5)
    return {
        # Conv2d(48, 1152, 1, 1) weight/bias (PyTorch-native layout)
        "w87": jax.random.normal(k87w, (1152, 48, 1, 1), jnp.float32) * 0.05,
        "b87": jax.random.normal(k87b, (1152,), jnp.float32) * 0.05,
        # Conv2d(1152, 192, 1, 1, bias=False) weight
        "w88": jax.random.normal(k88w, (192, 1152, 1, 1), jnp.float32) * 0.02,
        # BatchNorm2d(192) affine params + running stats
        "gamma": 1.0 + 0.1 * jax.random.normal(kg, (192,), jnp.float32),
        "beta": 0.1 * jax.random.normal(kb, (192,), jnp.float32),
        "running_mean": jnp.zeros((192,), jnp.float32),
        "running_var": jnp.ones((192,), jnp.float32),
    }


if __name__ == "__main__":
    key = jax.random.PRNGKey(0)
    kx263, kx266, kp = jax.random.split(key, 3)

    x263 = jax.random.normal(kx263, (1, 1152, 7, 7), jnp.float32)
    x266 = jax.random.normal(kx266, (1, 48, 1, 1), jnp.float32)

    params = init_params(kp)
    # One-time parameter layout prep (not on the per-call path).
    prep = prepare_params(params)

    fwd = jax.jit(module_m_forward)
    out, new_rm, new_rv = fwd(x266, x263, prep)
    jax.block_until_ready((out, new_rm, new_rv))

    assert out.shape == (1, 192, 7, 7)
    assert new_rm.shape == (192,) and new_rv.shape == (192,)
    assert bool(jnp.isfinite(out).all())

    # Loose check against the pure-JAX f32 reference (w88 / matmul run in bf16,
    # so results are close but not bit-comparable).
    ref = reference_forward(x266, x263, params)
    max_err = float(jnp.max(jnp.abs(out - ref)))
    assert max_err < 0.2, f"max_err={max_err}"

    print("KERNEL_OK")
</pallas_src>

<mosaic_0001>
module attributes {stable_mosaic.version = 11 : i64} {
  func.func @se_conv_bn_kernel(%arg0: memref<48x1xf32, #tpu.memory_space<vmem>>, %arg1: memref<48x1152xf32, #tpu.memory_space<vmem>>, %arg2: memref<1x1152xf32, #tpu.memory_space<vmem>>, %arg3: memref<1152x49xf32, #tpu.memory_space<vmem>>, %arg4: memref<192x1152xbf16, #tpu.memory_space<vmem>>, %arg5: memref<192x1xf32, #tpu.memory_space<vmem>>, %arg6: memref<192x1xf32, #tpu.memory_space<vmem>>, %arg7: memref<192x1xf32, #tpu.memory_space<vmem>>, %arg8: memref<192x1xf32, #tpu.memory_space<vmem>>, %arg9: memref<192x49xf32, #tpu.memory_space<vmem>>, %arg10: memref<192x1xf32, #tpu.memory_space<vmem>>, %arg11: memref<192x1xf32, #tpu.memory_space<vmem>>) attributes {dimension_semantics = [], scalar_prefetch = 0 : i64, scratch_operands = 0 : i64, tpu.core_type = #tpu.core_type<tc>} {
    %c0 = arith.constant 0 : index
    %c0_0 = arith.constant 0 : index
    %0 = vector.load %arg1[%c0, %c0_0] : memref<48x1152xf32, #tpu.memory_space<vmem>>, vector<48x1152xf32>
    %c0_1 = arith.constant 0 : index
    %c0_2 = arith.constant 0 : index
    %1 = vector.load %arg0[%c0_1, %c0_2] : memref<48x1xf32, #tpu.memory_space<vmem>>, vector<48x1xf32>
    %2 = vector.broadcast %1 : vector<48x1xf32> to vector<48x1152xf32>
    %3 = arith.mulf %0, %2 : vector<48x1152xf32>
    %cst = arith.constant dense<0.000000e+00> : vector<1152xf32>
    %4 = vector.multi_reduction <add>, %3, %cst [0] : vector<48x1152xf32> to vector<1152xf32>
    %5 = vector.shape_cast %4 : vector<1152xf32> to vector<1x1152xf32>
    %c0_3 = arith.constant 0 : index
    %c0_4 = arith.constant 0 : index
    %6 = vector.load %arg2[%c0_3, %c0_4] : memref<1x1152xf32, #tpu.memory_space<vmem>>, vector<1x1152xf32>
    %7 = arith.addf %5, %6 : vector<1x1152xf32>
    %8 = arith.negf %7 : vector<1x1152xf32>
    %9 = math.exp %8 : vector<1x1152xf32>
    %cst_5 = arith.constant 1.000000e+00 : f32
    %10 = vector.broadcast %cst_5 : f32 to vector<1x1152xf32>
    %11 = arith.addf %10, %9 : vector<1x1152xf32>
    %12 = arith.divf %10, %11 : vector<1x1152xf32>
    %c0_6 = arith.constant 0 : index
    %c0_7 = arith.constant 0 : index
    %13 = vector.load %arg4[%c0_6, %c0_7] : memref<192x1152xbf16, #tpu.memory_space<vmem>>, vector<192x1152xbf16>
    %14 = arith.extf %13 : vector<192x1152xbf16> to vector<192x1152xf32>
    %15 = vector.broadcast %12 : vector<1x1152xf32> to vector<192x1152xf32>
    %16 = arith.mulf %14, %15 : vector<192x1152xf32>
    %17 = arith.truncf %16 : vector<192x1152xf32> to vector<192x1152xbf16>
    %c0_8 = arith.constant 0 : index
    %c0_9 = arith.constant 0 : index
    %18 = vector.load %arg3[%c0_8, %c0_9] : memref<1152x49xf32, #tpu.memory_space<vmem>>, vector<1152x49xf32>
    %19 = arith.truncf %18 : vector<1152x49xf32> to vector<1152x49xbf16>
    %cst_10 = arith.constant dense<0.000000e+00> : vector<192x49xf32>
    %20 = tpu.matmul %17, %19, %cst_10 {dimension_numbers = #tpu.dot_dimension_numbers<[1], [0], [0], [1], [0, 0, 1, 1], [], []>} : vector<192x1152xbf16>, vector<1152x49xbf16>, vector<192x49xf32> -> vector<192x49xf32>
    %cst_11 = arith.constant dense<0.000000e+00> : vector<192xf32>
    %21 = vector.multi_reduction <add>, %20, %cst_11 [1] : vector<192x49xf32> to vector<192xf32>
    %22 = vector.shape_cast %21 : vector<192xf32> to vector<192x1xf32>
    %cst_12 = arith.constant 0.0204081628 : f32
    %23 = vector.broadcast %cst_12 : f32 to vector<192x1xf32>
    %24 = arith.mulf %22, %23 : vector<192x1xf32>
    %25 = vector.broadcast %24 : vector<192x1xf32> to vector<192x49xf32>
    %26 = arith.subf %20, %25 : vector<192x49xf32>
    %27 = arith.mulf %26, %26 : vector<192x49xf32>
    %cst_13 = arith.constant dense<0.000000e+00> : vector<192xf32>
    %28 = vector.multi_reduction <add>, %27, %cst_13 [1] : vector<192x49xf32> to vector<192xf32>
    %29 = vector.shape_cast %28 : vector<192xf32> to vector<192x1xf32>
    %cst_14 = arith.constant 0.0204081628 : f32
    %30 = vector.broadcast %cst_14 : f32 to vector<192x1xf32>
    %31 = arith.mulf %29, %30 : vector<192x1xf32>
    %c0_15 = arith.constant 0 : index
    %c0_16 = arith.constant 0 : index
    %32 = vector.load %arg5[%c0_15, %c0_16] : memref<192x1xf32, #tpu.memory_space<vmem>>, vector<192x1xf32>
    %cst_17 = arith.constant 9.99999974E-6 : f32
    %33 = vector.broadcast %cst_17 : f32 to vector<192x1xf32>
    %34 = arith.addf %31, %33 : vector<192x1xf32>
    %35 = math.rsqrt %34 : vector<192x1xf32>
    %36 = arith.mulf %32, %35 : vector<192x1xf32>
    %37 = vector.broadcast %36 : vector<192x1xf32> to vector<192x49xf32>
    %38 = arith.mulf %26, %37 : vector<192x49xf32>
    %c0_18 = arith.constant 0 : index
    %c0_19 = arith.constant 0 : index
    %39 = vector.load %arg6[%c0_18, %c0_19] : memref<192x1xf32, #tpu.memory_space<vmem>>, vector<192x1xf32>
    %40 = vector.broadcast %39 : vector<192x1xf32> to vector<192x49xf32>
    %41 = arith.addf %38, %40 : vector<192x49xf32>
    %c0_20 = arith.constant 0 : index
    %c0_21 = arith.constant 0 : index
    %42 = vector.load %arg9[%c0_20, %c0_21] : memref<192x49xf32, #tpu.memory_space<vmem>>, vector<192x49xf32>
    tpu.vector_store %arg9[%c0_20, %c0_21], %41 {strides = array<i32>} : memref<192x49xf32, #tpu.memory_space<vmem>>, vector<192x49xf32>,
    %cst_22 = arith.constant 1.02083337 : f32
    %43 = vector.broadcast %cst_22 : f32 to vector<192x1xf32>
    %44 = arith.mulf %31, %43 : vector<192x1xf32>
    %cst_23 = arith.constant 1.000000e+00 : f32
    %cst_24 = arith.constant 1.000000e-01 : f32
    %45 = arith.subf %cst_23, %cst_24 : f32
    %c0_25 = arith.constant 0 : index
    %c0_26 = arith.constant 0 : index
    %46 = vector.load %arg7[%c0_25, %c0_26] : memref<192x1xf32, #tpu.memory_space<vmem>>, vector<192x1xf32>
    %47 = vector.broadcast %45 : f32 to vector<192x1xf32>
    %48 = arith.mulf %47, %46 : vector<192x1xf32>
    %cst_27 = arith.constant 1.000000e-01 : f32
    %49 = vector.broadcast %cst_27 : f32 to vector<192x1xf32>
    %50 = arith.mulf %49, %24 : vector<192x1xf32>
    %51 = arith.addf %48, %50 : vector<192x1xf32>
    %c0_28 = arith.constant 0 : index
    %c0_29 = arith.constant 0 : index
    %52 = vector.load %arg10[%c0_28, %c0_29] : memref<192x1xf32, #tpu.memory_space<vmem>>, vector<192x1xf32>
    tpu.vector_store %arg10[%c0_28, %c0_29], %51 {strides = array<i32>} : memref<192x1xf32, #tpu.memory_space<vmem>>, vector<192x1xf32>,
    %cst_30 = arith.constant 1.000000e+00 : f32
    %cst_31 = arith.constant 1.000000e-01 : f32
    %53 = arith.subf %cst_30, %cst_31 : f32
    %c0_32 = arith.constant 0 : index
    %c0_33 = arith.constant 0 : index
    %54 = vector.load %arg8[%c0_32, %c0_33] : memref<192x1xf32, #tpu.memory_space<vmem>>, vector<192x1xf32>
    %55 = vector.broadcast %53 : f32 to vector<192x1xf32>
    %56 = arith.mulf %55, %54 : vector<192x1xf32>
    %cst_34 = arith.constant 1.000000e-01 : f32
    %57 = vector.broadcast %cst_34 : f32 to vector<192x1xf32>
    %58 = arith.mulf %57, %44 : vector<192x1xf32>
    %59 = arith.addf %56, %58 : vector<192x1xf32>
    %c0_35 = arith.constant 0 : index
    %c0_36 = arith.constant 0 : index
    %60 = vector.load %arg11[%c0_35, %c0_36] : memref<192x1xf32, #tpu.memory_space<vmem>>, vector<192x1xf32>
    tpu.vector_store %arg11[%c0_35, %c0_36], %59 {strides = array<i32>} : memref<192x1xf32, #tpu.memory_space<vmem>>, vector<192x1xf32>,
    return
  }
}

</mosaic_0001>

<bundles_post_ra>
// kernel: module_m_forward.1
= control target key start
LH: loop header
LB: loop body
LE: loop exit
PB: predicated region body
PF: predicated region fallthrough
CT: control target
= control target key end

     0   :  { %v3423_v0 = vmov 0   ;;  %v283_v11 = vlaneseq  ;;  %vm1948_vm0 = vcmask 400384   ;;  %vm2741_vm1 = vcmask 7168   ;;  %s6070_s0 = inlined_call_operand.vmem [shape: f32[48,1], index: 0, kind: input, shape index: {}]   ;;  %s6071_s6 = inlined_call_operand.vmem [shape: f32[192,1], index: 6, kind: input, shape index: {}]   ;;  %s6072_s2 = inlined_call_operand.vmem [shape: f32[1,1152], index: 2, kind: input, shape index: {}]   ;;  %s6073_s3 = inlined_call_operand.vmem [shape: f32[1152,49], index: 3, kind: input, shape index: {}]   ;;  %s6074_s1 = inlined_call_operand.vmem [shape: f32[48,1152], index: 1, kind: input, shape index: {}]   ;;  %s6075_s4 = inlined_call_operand.vmem [shape: bf16[192,1152], index: 4, kind: input, shape index: {}]   ;;  %s6076_s7 = inlined_call_operand.vmem [shape: f32[192,1], index: 7, kind: input, shape index: {}]   ;;  %s6077_s10 = inlined_call_operand.vmem [shape: f32[192,1], index: 10, kind: output, shape index: {1}]   ;;  %s6078_s8 = inlined_call_operand.vmem [shape: f32[192,1], index: 8, kind: input, shape index: {}]   ;;  %s6079_s11 = inlined_call_operand.vmem [shape: f32[192,1], index: 11, kind: output, shape index: {2}]   ;;  %s6080_s5 = inlined_call_operand.vmem [shape: f32[192,1], index: 5, kind: input, shape index: {}]   ;;  %s6081_s9 = inlined_call_operand.vmem [shape: f32[192,49], index: 9, kind: output, shape index: {0}]  }
   0x1   :  { %3338 = vset.pattern.permute.xlu1 %v3423_v0  ;;  %3337 = vset.pattern.permute.xlu0 %v3423_v0  ;;  %v92_v1 = vld [vmem:[%s6070_s0 + $0x10] sm:$0xff]  ;;  %v90_v2 = vld [vmem:[%s6070_s0] sm:$0xff]  ;;  %v93_v3 = vld [vmem:[%s6070_s0 + $0x18] sm:$0xff] }
   0x2   :  { %108 = vperm.xlu1 %3338, %v92_v1   ;;  %98 = vperm.xlu0 %3337, %v90_v2   ;;  %v91_v4 = vld [vmem:[%s6070_s0 + $0x8] sm:$0xff]  ;;  %v94_v6 = vld [vmem:[%s6070_s0 + $0x20] sm:$0xff]  ;;  %v2432_v9 = vld [vmem:[%s6071_s6 + $0x18] sm:$0xff]  ;;  %v3520_v14 = vshrl.u32 %v283_v11, 7 }
   0x3   :  { %v95_v5 = vld [vmem:[%s6070_s0 + $0x28] sm:$0xff]  ;;  %v2429_v8 = vld [vmem:[%s6071_s6] sm:$0xff]  ;;  %v2431_v10 = vld [vmem:[%s6071_s6 + $0x10] sm:$0xff] }
   0x4   :  { %v2430_v7 = vld [vmem:[%s6071_s6 + $0x8] sm:$0xff]  ;;  %v2433_v13 = vld [vmem:[%s6071_s6 + $0x20] sm:$0xff]  ;;  %v301_v15 = vsub.s32 4, %v3520_v14  ;;  %v305_v16 = vsub.s32 5, %v3520_v14  ;;  %v2436_v17 = vld [vmem:[%s6071_s6 + $0x38] sm:$0xff]  ;;  %v309_v19 = vsub.s32 6, %v3520_v14 }
   0x5   :  { %v2434_v12 = vld [vmem:[%s6071_s6 + $0x28] sm:$0xff]  ;;  %v2435_v18 = vld [vmem:[%s6071_s6 + $0x30] sm:$0xff]  ;;  %v313_v20 = vsub.s32 7, %v3520_v14  ;;  %v3535_v21 = vld [vmem:[%s6072_s2] sm:$0xff] }
   0x6   :  { %113 = vperm.xlu1 %3338, %v93_v3   ;;  %103 = vperm.xlu0 %3337, %v91_v4   ;;  %v3538_v22 = vrot.slane %v3535_v21, %v301_v15  ;;  %v3541_v23 = vrot.slane %v3535_v21, %v305_v16  ;;  %v3544_v24 = vrot.slane %v3535_v21, %v309_v19  ;;  %v2438_v25 = vld [vmem:[%s6071_s6 + $0x48] sm:$0xff]  ;;  %v2437_v26 = vld [vmem:[%s6071_s6 + $0x40] sm:$0xff]  ;;  %v1117_v28 = vld [vmem:[%s6073_s3 + $0xf0] sm:$0xff] }
   0x7   :  { %v3553_v27 = vrot.slane %v3535_v21, %v313_v20  ;;  %v1118_v29 = vld [vmem:[%s6073_s3 + $0xf8] sm:$0xff]  ;;  %v1149_v30 = vld [vmem:[%s6073_s3 + $0x1f0] sm:$0xff]  ;;  %v1115_v40 = vld [vmem:[%s6073_s3 + $0xe0] sm:$0xff] }
   0x8   :  { %v1246_v31 = vpack.c.bf16 %v1118_v29, %v1117_v28  ;;  %v1101_v32 = vld [vmem:[%s6073_s3 + $0x70] sm:$0xff]  ;;  %v1102_v33 = vld [vmem:[%s6073_s3 + $0x78] sm:$0xff]  ;;  %v1116_v41 = vld [vmem:[%s6073_s3 + $0xe8] sm:$0xff] }
   0x9   :  { %v1150_v34 = vld [vmem:[%s6073_s3 + $0x1f8] sm:$0xff]  ;;  %v1238_v35 = vpack.c.bf16 %v1102_v33, %v1101_v32  ;;  %v1133_v37 = vld [vmem:[%s6073_s3 + $0x170] sm:$0xff]  ;;  %v1147_v42 = vld [vmem:[%s6073_s3 + $0x1e0] sm:$0xff]  ;;  %v1245_v43 = vpack.c.bf16 %v1116_v41, %v1115_v40 }
   0xa   :  { %123 = vperm.xlu1 %3338, %v95_v5   ;;  %118 = vperm.xlu0 %3337, %v94_v6   ;;  %v1262_v36 = vpack.c.bf16 %v1150_v34, %v1149_v30  ;;  %v1134_v38 = vld [vmem:[%s6073_s3 + $0x178] sm:$0xff]  ;;  %v1099_v44 = vld [vmem:[%s6073_s3 + $0x60] sm:$0xff]  ;;  %v1100_v45 = vld [vmem:[%s6073_s3 + $0x68] sm:$0xff] }
   0xb   :  { %2908 = vmatprep.subr.bf16.mxu0 %v1246_v31  ;;  %v1254_v39 = vpack.c.bf16 %v1134_v38, %v1133_v37  ;;  %v1148_v46 = vld [vmem:[%s6073_s3 + $0x1e8] sm:$0xff]  ;;  %v1237_v47 = vpack.c.bf16 %v1100_v45, %v1099_v44  ;;  %v1131_v49 = vld [vmem:[%s6073_s3 + $0x160] sm:$0xff]  ;;  %v1113_v52 = vld [vmem:[%s6073_s3 + $0xd0] sm:$0xff] }
   0xc   :  { %2909 = vmatpush3.bf16.msra.mxu0 %v1238_v35  ;;  %2996 = vmatprep.subr.bf16.mxu1 %v1262_v36  ;;  %v1261_v48 = vpack.c.bf16 %v1148_v46, %v1147_v42  ;;  %v1132_v50 = vld [vmem:[%s6073_s3 + $0x168] sm:$0xff]  ;;  %v1114_v53 = vld [vmem:[%s6073_s3 + $0xd8] sm:$0xff]  ;;  %v1145_v54 = vld [vmem:[%s6073_s3 + $0x1d0] sm:$0xff] }
   0xd   :  { %2997 = vmatpush3.bf16.msra.mxu1 %v1254_v39  ;;  %2910 = vmatprep.subr.bf16.mxu0 %v1245_v43  ;;  %v1253_v51 = vpack.c.bf16 %v1132_v50, %v1131_v49  ;;  %v1244_v55 = vpack.c.bf16 %v1114_v53, %v1113_v52  ;;  %v1097_v56 = vld [vmem:[%s6073_s3 + $0x50] sm:$0xff]  ;;  %v1098_v57 = vld [vmem:[%s6073_s3 + $0x58] sm:$0xff]  ;;  %v1111_v0 = vld [vmem:[%s6073_s3 + $0xc0] sm:$0xff] }
   0xe   :  { %2460 = vperm.xlu1 %3338, %v2430_v7   ;;  %2455 = vperm.xlu0 %3337, %v2429_v8   ;;  %v1146_v58 = vld [vmem:[%s6073_s3 + $0x1d8] sm:$0xff]  ;;  %v1236_v59 = vpack.c.bf16 %v1098_v57, %v1097_v56  ;;  %v1129_v61 = vld [vmem:[%s6073_s3 + $0x150] sm:$0xff]  ;;  %v1112_v1 = vld [vmem:[%s6073_s3 + $0xc8] sm:$0xff] }
   0xf   :  { %2998 = vmatprep.subr.bf16.mxu1 %v1261_v48  ;;  %v1260_v60 = vpack.c.bf16 %v1146_v58, %v1145_v54  ;;  %v1130_v62 = vld [vmem:[%s6073_s3 + $0x158] sm:$0xff]  ;;  %v1143_v2 = vld [vmem:[%s6073_s3 + $0x1c0] sm:$0xff]  ;;  %v1243_v3 = vpack.c.bf16 %v1112_v1, %v1111_v0  ;;  %v1096_v5 = vld [vmem:[%s6073_s3 + $0x48] sm:$0xff] }
  0x10   :  { %2911 = vmatpush3.bf16.msra.mxu0 %v1237_v47  ;;  %v1252_v63 = vpack.c.bf16 %v1130_v62, %v1129_v61  ;;  %v1095_v4 = vld [vmem:[%s6073_s3 + $0x40] sm:$0xff]  ;;  %v1144_v6 = vld [vmem:[%s6073_s3 + $0x1c8] sm:$0xff]  ;;  %v1141_v15 = vld [vmem:[%s6073_s3 + $0x1b0] sm:$0xff] }
  0x11   :  { %2999 = vmatpush3.bf16.msra.mxu1 %v1253_v51  ;;  %2912 = vmatprep.subr.bf16.mxu0 %v1244_v55  ;;  %v1235_v7 = vpack.c.bf16 %v1096_v5, %v1095_v4  ;;  %v1259_v8 = vpack.c.bf16 %v1144_v6, %v1143_v2  ;;  %v1142_v19 = vld [vmem:[%s6073_s3 + $0x1b8] sm:$0xff]  ;;  %v1107_v30 = vld [vmem:[%s6073_s3 + $0xa0] sm:$0xff]  ;;  %v1108_v31 = vld [vmem:[%s6073_s3 + $0xa8] sm:$0xff] }
  0x12   :  { %2470 = vperm.xlu1 %3338, %v2432_v9   ;;  %2465 = vperm.xlu0 %3337, %v2431_v10   ;;  %v1127_v9 = vld [vmem:[%s6073_s3 + $0x140] sm:$0xff]  ;;  %v1128_v10 = vld [vmem:[%s6073_s3 + $0x148] sm:$0xff]  ;;  %v1126_v28 = vld [vmem:[%s6073_s3 + $0x138] sm:$0xff]  ;;  %v1241_v33 = vpack.c.bf16 %v1108_v31, %v1107_v30 }
  0x13   :  { %3000 = vmatprep.subr.bf16.mxu1 %v1260_v60  ;;  %v1251_v11 = vpack.c.bf16 %v1128_v10, %v1127_v9  ;;  %v1139_v32 = vld [vmem:[%s6073_s3 + $0x1a0] sm:$0xff]  ;;  %v1092_v35 = vld [vmem:[%s6073_s3 + $0x28] sm:$0xff]  ;;  %v1105_v42 = vld [vmem:[%s6073_s3 + $0x90] sm:$0xff] }
  0x14   :  { %2913 = vmatpush3.bf16.msra.mxu0 %v1236_v59  ;;  %v1091_v34 = vld [vmem:[%s6073_s3 + $0x20] sm:$0xff]  ;;  %v1140_v36 = vld [vmem:[%s6073_s3 + $0x1a8] sm:$0xff]  ;;  %v1106_v43 = vld [vmem:[%s6073_s3 + $0x98] sm:$0xff] }
  0x15   :  { %3001 = vmatpush3.bf16.msra.mxu1 %v1252_v63  ;;  %2914 = vmatprep.subr.bf16.mxu0 %v1243_v3  ;;  %v1233_v37 = vpack.c.bf16 %v1092_v35, %v1091_v34  ;;  %v1257_v38 = vpack.c.bf16 %v1140_v36, %v1139_v32  ;;  %v1123_v39 = vld [vmem:[%s6073_s3 + $0x120] sm:$0xff]  ;;  %v1124_v40 = vld [vmem:[%s6073_s3 + $0x128] sm:$0xff]  ;;  %v1137_v44 = vld [vmem:[%s6073_s3 + $0x190] sm:$0xff]  ;;  %v1240_v45 = vpack.c.bf16 %v1106_v43, %v1105_v42 }
  0x16   :  { %2480 = vperm.xlu1 %3338, %v2434_v12   ;;  %2475 = vperm.xlu0 %3337, %v2433_v13   ;;  %v1109_v12 = vld [vmem:[%s6073_s3 + $0xb0] sm:$0xff]  ;;  %v1110_v13 = vld [vmem:[%s6073_s3 + $0xb8] sm:$0xff]  ;;  %v1249_v41 = vpack.c.bf16 %v1124_v40, %v1123_v39  ;;  %v1103_v54 = vld [vmem:[%s6073_s3 + $0x80] sm:$0xff] }
  0x17   :  { %3002 = vmatprep.subr.bf16.mxu1 %v1259_v8  ;;  %v1242_v16 = vpack.c.bf16 %v1110_v13, %v1109_v12  ;;  %v1089_v46 = vld [vmem:[%s6073_s3 + $0x10] sm:$0xff]  ;;  %v1090_v47 = vld [vmem:[%s6073_s3 + $0x18] sm:$0xff]  ;;  %v1104_v55 = vld [vmem:[%s6073_s3 + $0x88] sm:$0xff]  ;;  %v3772_v12 = vsub.s32 0, %v3520_v14  ;;  %v289_v13 = vsub.s32 1, %v3520_v14 }
  0x18   :  { %2915 = vmatpush3.bf16.msra.mxu0 %v1235_v7  ;;  %v1138_v48 = vld [vmem:[%s6073_s3 + $0x198] sm:$0xff]  ;;  %v1232_v49 = vpack.c.bf16 %v1090_v47, %v1089_v46  ;;  %v1121_v51 = vld [vmem:[%s6073_s3 + $0x110] sm:$0xff]  ;;  %v1087_v56 = vld [vmem:[%s6073_s3] sm:$0xff]  ;;  %v1239_v57 = vpack.c.bf16 %v1104_v55, %v1103_v54 }
  0x19   :  { %3003 = vmatpush3.bf16.msra.mxu1 %v1251_v11  ;;  %2916 = vmatprep.subr.bf16.mxu0 %v1242_v16  ;;  %v1256_v50 = vpack.c.bf16 %v1138_v48, %v1137_v44  ;;  %v1122_v52 = vld [vmem:[%s6073_s3 + $0x118] sm:$0xff]  ;;  %v1088_v58 = vld [vmem:[%s6073_s3 + $0x8] sm:$0xff]  ;;  %v1135_v59 = vld [vmem:[%s6073_s3 + $0x180] sm:$0xff]  ;;  %v297_v16 = vsub.s32 3, %v3520_v14 }
  0x1a   :  { %2490 = vperm.xlu1 %3338, %v2436_v17   ;;  %2485 = vperm.xlu0 %3337, %v2435_v18   ;;  %v1093_v17 = vld [vmem:[%s6073_s3 + $0x30] sm:$0xff]  ;;  %v1094_v18 = vld [vmem:[%s6073_s3 + $0x38] sm:$0xff]  ;;  %v1248_v53 = vpack.c.bf16 %v1122_v52, %v1121_v51  ;;  %v1136_v60 = vld [vmem:[%s6073_s3 + $0x188] sm:$0xff]  ;;  %v1231_v61 = vpack.c.bf16 %v1088_v58, %v1087_v56 }
  0x1b   :  { %v1234_v20 = vpack.c.bf16 %v1094_v18, %v1093_v17  ;;  %v1255_v62 = vpack.c.bf16 %v1136_v60, %v1135_v59  ;;  %v1119_v63 = vld [vmem:[%s6073_s3 + $0x100] sm:$0xff]  ;;  %v1120_v0 = vld [vmem:[%s6073_s3 + $0x108] sm:$0xff]  ;;  %v1181_v2 = vld [vmem:[%s6073_s3 + $0x2f0] sm:$0xff]  ;;  %v3828_v40 = vrot.slane %v3535_v21, %v297_v16 }
  0x1c   :  { %v1247_v1 = vpack.c.bf16 %v1120_v0, %v1119_v63  ;;  %v1182_v3 = vld [vmem:[%s6073_s3 + $0x2f8] sm:$0xff]  ;;  %v1213_v5 = vld [vmem:[%s6073_s3 + $0x3f0] sm:$0xff]  ;;  %v56_v10 = vld [vmem:[%s6074_s1 + $0xa0] sm:$0xff] }
  0x1d   :  { %2917 = vmatpush3.bf16.msra.mxu0 %v1234_v20  ;;  %v1278_v4 = vpack.c.bf16 %v1182_v3, %v1181_v2  ;;  %v1214_v6 = vld [vmem:[%s6073_s3 + $0x3f8] sm:$0xff]  ;;  %v54_v8 = vld [vmem:[%s6074_s1 + $0x90] sm:$0xff]  ;;  %v57_v11 = vld [vmem:[%s6074_s1 + $0xa8] sm:$0xff] }
  0x1e   :  { %2500 = vperm.xlu1 %3338, %v2438_v25   ;;  %2495 = vperm.xlu0 %3337, %v2437_v26   ;;  %v1258_v25 = vpack.c.bf16 %v1142_v19, %v1141_v15  ;;  %v1125_v26 = vld [vmem:[%s6073_s3 + $0x130] sm:$0xff]  ;;  %v1294_v7 = vpack.c.bf16 %v1214_v6, %v1213_v5  ;;  %v55_v9 = vld [vmem:[%s6074_s1 + $0x98] sm:$0xff]  ;;  %v293_v15 = vsub.s32 2, %v3520_v14  ;;  %v60_v19 = vld [vmem:[%s6074_s1 + $0xc0] sm:$0xff] }
  0x1f   :  { %v1250_v29 = vpack.c.bf16 %v1126_v28, %v1125_v26  ;;  %2918 = vmatprep.subr.bf16.mxu0 %v1241_v33  ;;  %v58_v17 = vld [vmem:[%s6074_s1 + $0xb0] sm:$0xff]  ;;  %v59_v18 = vld [vmem:[%s6074_s1 + $0xb8] sm:$0xff]  ;;  %v61_v20 = vld [vmem:[%s6074_s1 + $0xc8] sm:$0xff] }
  0x20   :  { %3004 = vmatprep.subr.bf16.mxu1 %v1258_v25  ;;  %v62_v14 = vld [vmem:[%s6074_s1 + $0xd0] sm:$0xff]  ;;  %v36_v25 = vld [vmem:[%s6074_s1] sm:$0xff]  ;;  %v37_v26 = vld [vmem:[%s6074_s1 + $0x8] sm:$0xff]  ;;  %v3825_v39 = vrot.slane %v3535_v21, %v293_v15 }
  0x21   :  { %3005 = vmatpush3.bf16.msra.mxu1 %v1250_v29  ;;  %2919 = vmatpush3.bf16.msra.mxu0 %v1233_v37  ;;  %v38_v28 = vld [vmem:[%s6074_s1 + $0x10] sm:$0xff]  ;;  %v39_v29 = vld [vmem:[%s6074_s1 + $0x18] sm:$0xff]  ;;  %v40_v30 = vld [vmem:[%s6074_s1 + $0x20] sm:$0xff]  ;;  %v286_v37 = vrot.slane %v3535_v21, %v3772_v12 }
  0x22   :  { %3006 = vmatprep.subr.bf16.mxu1 %v1257_v38  ;;  %2920 = vmatprep.subr.bf16.mxu0 %v1240_v45  ;;  %v41_v31 = vld [vmem:[%s6074_s1 + $0x28] sm:$0xff]  ;;  %v42_v33 = vld [vmem:[%s6074_s1 + $0x30] sm:$0xff]  ;;  %v43_v34 = vld [vmem:[%s6074_s1 + $0x38] sm:$0xff]  ;;  %v3822_v38 = vrot.slane %v3535_v21, %v289_v13 }
  0x23   :  { %v44_v35 = vld [vmem:[%s6074_s1 + $0x40] sm:$0xff]  ;;  %v63_v45 = vld [vmem:[%s6074_s1 + $0xd8] sm:$0xff]  ;;  %v65_v47 = vld [vmem:[%s6074_s1 + $0xe8] sm:$0xff] }
  0x24   :  { %v64_v46 = vld [vmem:[%s6074_s1 + $0xe0] sm:$0xff]  ;;  %v66_v52 = vld [vmem:[%s6074_s1 + $0xf0] sm:$0xff]  ;;  %v69_v59 = vld [vmem:[%s6074_s1 + $0x108] sm:$0xff] }
  0x25   :  { %3007 = vmatpush3.bf16.msra.mxu1 %v1249_v41  ;;  %2921 = vmatpush3.bf16.msra.mxu0 %v1232_v49  ;;  %v68_v54 = vld [vmem:[%s6074_s1 + $0x100] sm:$0xff]  ;;  %v70_v60 = vld [vmem:[%s6074_s1 + $0x110] sm:$0xff]  ;;  %v45_v3 = vld [vmem:[%s6074_s1 + $0x48] sm:$0xff] }
  0x26   :  { %3008 = vmatprep.subr.bf16.mxu1 %v1256_v50  ;;  %2922 = vmatprep.subr.bf16.mxu0 %v1239_v57  ;;  %v47_v5 = vld [vmem:[%s6074_s1 + $0x58] sm:$0xff]  ;;  %v49_v13 = vld [vmem:[%s6074_s1 + $0x68] sm:$0xff]  ;;  %v50_v15 = vld [vmem:[%s6074_s1 + $0x70] sm:$0xff] }
  0x29   :  { %3009 = vmatpush3.bf16.msra.mxu1 %v1248_v53  ;;  %2923 = vmatpush3.bf16.msra.mxu0 %v1231_v61  ;;  %v67_v53 = vld [vmem:[%s6074_s1 + $0xf8] sm:$0xff] }
  0x2a   :  { %3010 = vmatprep.subr.bf16.mxu1 %v1255_v62  ;;  %3084 = vmatprep.subr.bf16.mxu0 %v1278_v4  ;;  %v71_v61 = vld [vmem:[%s6074_s1 + $0x118] sm:$0xff]  ;;  %v46_v4 = vld [vmem:[%s6074_s1 + $0x50] sm:$0xff] }
  0x2d   :  { %3011 = vmatpush3.bf16.msra.mxu1 %v1247_v1 }
  0x2e   :  { %3172 = vmatprep.subr.bf16.mxu1 %v1294_v7 }
  0x7d   :  { %v109_v32 = vpop.permute.xlu1 %108  ;;  %v99_v36 = vpop.permute.xlu0 %98 }
  0x7e   :  { %v3830_v41 = vmul.f32 %v109_v32, %v54_v8  ;;  %v3832_v42 = vmul.f32 %v109_v32, %v55_v9  ;;  %v3834_v43 = vmul.f32 %v109_v32, %v56_v10  ;;  %v3836_v44 = vmul.f32 %v109_v32, %v57_v11  ;;  %v48_v11 = vld [vmem:[%s6074_s1 + $0x60] sm:$0xff] }
  0x7f   :  { %v3847_v48 = vmul.f32 %v109_v32, %v58_v17  ;;  %v3849_v49 = vmul.f32 %v109_v32, %v59_v18  ;;  %v3851_v50 = vmul.f32 %v109_v32, %v60_v19  ;;  %v3853_v51 = vmul.f32 %v109_v32, %v61_v20  ;;  %v51_v20 = vld [vmem:[%s6074_s1 + $0x78] sm:$0xff] }
  0x80   :  { %v3864_v55 = vmul.f32 %v109_v32, %v62_v14  ;;  %v126_v56 = vmul.f32 %v99_v36, %v36_v25  ;;  %v127_v57 = vmul.f32 %v99_v36, %v37_v26  ;;  %v128_v58 = vmul.f32 %v99_v36, %v38_v28  ;;  %v52_v14 = vld [vmem:[%s6074_s1 + $0x80] sm:$0xff]  ;;  %v53_v25 = vld [vmem:[%s6074_s1 + $0x88] sm:$0xff] }
  0x81   :  { %v129_v62 = vmul.f32 %v99_v36, %v39_v29  ;;  %v130_v63 = vmul.f32 %v99_v36, %v40_v30  ;;  %v131_v0 = vmul.f32 %v99_v36, %v41_v31  ;;  %v132_v1 = vmul.f32 %v99_v36, %v42_v33  ;;  %v114_v2 = vpop.permute.xlu1 %113  ;;  %v104_v6 = vpop.permute.xlu0 %103 }
  0x82   :  { %v133_v7 = vmul.f32 %v99_v36, %v43_v34  ;;  %v134_v8 = vmul.f32 %v99_v36, %v44_v35  ;;  %v3884_v9 = vmul.f32 %v114_v2, %v63_v45  ;;  %v3886_v10 = vmul.f32 %v114_v2, %v64_v46  ;;  %v81_v35 = vld [vmem:[%s6074_s1 + $0x168] sm:$0xff] }
  0x83   :  { %v3897_v16 = vmul.f32 %v114_v2, %v65_v47  ;;  %v3899_v17 = vmul.f32 %v114_v2, %v66_v52  ;;  %v3901_v18 = vmul.f32 %v114_v2, %v67_v53  ;;  %v3903_v19 = vmul.f32 %v114_v2, %v68_v54  ;;  %v82_v52 = vld [vmem:[%s6074_s1 + $0x170] sm:$0xff]  ;;  %v83_v53 = vld [vmem:[%s6074_s1 + $0x178] sm:$0xff]  ;;  %v84_v54 = vld [vmem:[%s6074_s1 + $0x180] sm:$0xff] }
  0x84   :  { %v3914_v26 = vmul.f32 %v114_v2, %v69_v59  ;;  %v3916_v28 = vmul.f32 %v114_v2, %v70_v60  ;;  %v3918_v29 = vmul.f32 %v114_v2, %v71_v61  ;;  %v135_v30 = vmul.f32 %v104_v6, %v45_v3 }
  0x85   :  { %v136_v31 = vmul.f32 %v104_v6, %v46_v4  ;;  %v137_v32 = vmul.f32 %v104_v6, %v47_v5  ;;  %v138_v33 = vmul.f32 %v104_v6, %v48_v11  ;;  %v139_v34 = vmul.f32 %v104_v6, %v49_v13  ;;  %v124_v59 = vpop.permute.xlu1 %123  ;;  %v85_v4 = vld [vmem:[%s6074_s1 + $0x188] sm:$0xff]  ;;  %v86_v5 = vld [vmem:[%s6074_s1 + $0x190] sm:$0xff] }
  0x86   :  { %v140_v36 = vmul.f32 %v104_v6, %v50_v15  ;;  %v141_v45 = vmul.f32 %v104_v6, %v51_v20  ;;  %v142_v46 = vmul.f32 %v104_v6, %v52_v14  ;;  %v143_v47 = vmul.f32 %v104_v6, %v53_v25  ;;  %v87_v6 = vld [vmem:[%s6074_s1 + $0x198] sm:$0xff] }
  0x87   :  { %v180_v60 = vadd.f32 %v135_v30, %v126_v56  ;;  %v191_v61 = vadd.f32 %v136_v31, %v127_v57  ;;  %v202_v2 = vadd.f32 %v137_v32, %v128_v58  ;;  %v213_v3 = vadd.f32 %v138_v33, %v129_v62  ;;  %v88_v56 = vld [vmem:[%s6074_s1 + $0x1a0] sm:$0xff]  ;;  %v89_v57 = vld [vmem:[%s6074_s1 + $0x1a8] sm:$0xff] }
  0x88   :  { %v224_v11 = vadd.f32 %v139_v34, %v130_v63  ;;  %v235_v13 = vadd.f32 %v140_v36, %v131_v0  ;;  %v246_v15 = vadd.f32 %v141_v45, %v132_v1  ;;  %v257_v20 = vadd.f32 %v142_v46, %v133_v7  ;;  %v72_v34 = vld [vmem:[%s6074_s1 + $0x120] sm:$0xff] }
  0x89   :  { %v268_v58 = vadd.f32 %v143_v47, %v134_v8  ;;  %v171_v62 = vmul.f32 %v124_v59, %v81_v35  ;;  %v172_v14 = vmul.f32 %v124_v59, %v82_v52  ;;  %v173_v25 = vmul.f32 %v124_v59, %v83_v53  ;;  %v73_v8 = vld [vmem:[%s6074_s1 + $0x128] sm:$0xff]  ;;  %v119_v47 = vpop.permute.xlu0 %118  ;;  %v76_v52 = vld [vmem:[%s6074_s1 + $0x140] sm:$0xff] }
  0x8a   :  { %v174_v30 = vmul.f32 %v124_v59, %v84_v54  ;;  %v175_v31 = vmul.f32 %v124_v59, %v85_v4  ;;  %v176_v32 = vmul.f32 %v124_v59, %v86_v5  ;;  %v177_v33 = vmul.f32 %v124_v59, %v87_v6  ;;  %v77_v53 = vld [vmem:[%s6074_s1 + $0x148] sm:$0xff]  ;;  %v78_v54 = vld [vmem:[%s6074_s1 + $0x150] sm:$0xff] }
  0x8b   :  { %v178_v63 = vmul.f32 %v124_v59, %v88_v56  ;;  %v3947_v0 = vmul.f32 %v124_v59, %v89_v57  ;;  %v181_v1 = vadd.f32 %v180_v60, %v3830_v41  ;;  %v192_v7 = vadd.f32 %v191_v61, %v3832_v42  ;;  %v74_v41 = vld [vmem:[%s6074_s1 + $0x130] sm:$0xff]  ;;  %v75_v42 = vld [vmem:[%s6074_s1 + $0x138] sm:$0xff]  ;;  %v80_v60 = vld [vmem:[%s6074_s1 + $0x160] sm:$0xff] }
  0x8c   :  { %v203_v35 = vadd.f32 %v202_v2, %v3834_v43  ;;  %v214_v36 = vadd.f32 %v213_v3, %v3836_v44  ;;  %v225_v45 = vadd.f32 %v224_v11, %v3847_v48  ;;  %v236_v46 = vadd.f32 %v235_v13, %v3849_v49  ;;  %v79_v59 = vld [vmem:[%s6074_s1 + $0x158] sm:$0xff] }
  0x8d   :  { %v182_v43 = vadd.f32 %v181_v1, %v3884_v9  ;;  %v193_v44 = vadd.f32 %v192_v7, %v3886_v10  ;;  %v247_v48 = vadd.f32 %v246_v15, %v3851_v50  ;;  %v258_v49 = vadd.f32 %v257_v20, %v3853_v51 }
  0x8e   :  { %v204_v9 = vadd.f32 %v203_v35, %v3897_v16  ;;  %v215_v10 = vadd.f32 %v214_v36, %v3899_v17  ;;  %v226_v50 = vadd.f32 %v225_v45, %v3901_v18  ;;  %v237_v51 = vadd.f32 %v236_v46, %v3903_v19 }
  0x8f   :  { %v248_v61 = vadd.f32 %v247_v48, %v3914_v26  ;;  %v259_v2 = vadd.f32 %v258_v49, %v3916_v28  ;;  %v269_v3 = vadd.f32 %v268_v58, %v3864_v55  ;;  %v162_v4 = vmul.f32 %v119_v47, %v72_v34 }
  0x90   :  { %v163_v5 = vmul.f32 %v119_v47, %v73_v8  ;;  %v164_v6 = vmul.f32 %v119_v47, %v74_v41  ;;  %v165_v16 = vmul.f32 %v119_v47, %v75_v42  ;;  %v166_v11 = vmul.f32 %v119_v47, %v76_v52 }
  0x91   :  { %v3994_v17 = vadd.f32 %v269_v3, %v3918_v29  ;;  %v167_v18 = vmul.f32 %v119_v47, %v77_v53  ;;  %v168_v19 = vmul.f32 %v119_v47, %v78_v54  ;;  %v169_v13 = vmul.f32 %v119_v47, %v79_v59 }
  0x92   :  { %v3996_v15 = vmul.f32 %v119_v47, %v80_v60  ;;  %v183_v20 = vadd.f32 %v182_v43, %v162_v4  ;;  %v194_v56 = vadd.f32 %v193_v44, %v163_v5  ;;  %v205_v26 = vadd.f32 %v204_v9, %v164_v6 }
  0x93   :  { %v216_v57 = vadd.f32 %v215_v10, %v165_v16  ;;  %v227_v28 = vadd.f32 %v226_v50, %v166_v11  ;;  %v238_v1 = vadd.f32 %v237_v51, %v167_v18  ;;  %v249_v55 = vadd.f32 %v248_v61, %v168_v19 }
  0x94   :  { %v184_v58 = vadd.f32 %v183_v20, %v171_v62  ;;  %v195_v7 = vadd.f32 %v194_v56, %v172_v14  ;;  %v206_v34 = vadd.f32 %v205_v26, %v173_v25  ;;  %v260_v8 = vadd.f32 %v259_v2, %v169_v13 }
  0x95   :  { %v217_v35 = vadd.f32 %v216_v57, %v174_v30  ;;  %v228_v36 = vadd.f32 %v227_v28, %v175_v31  ;;  %v239_v29 = vadd.f32 %v238_v1, %v176_v32  ;;  %v250_v45 = vadd.f32 %v249_v55, %v177_v33 }
  0x96   :  { %v185_v46 = vrot.slane %v184_v58, 4  ;;  %v196_v41 = vrot.slane %v195_v7, 4  ;;  %v207_v42 = vrot.slane %v206_v34, 4  ;;  %v261_v47 = vadd.f32 %v260_v8, %v178_v63 }
  0x97   :  { %v218_v52 = vrot.slane %v217_v35, 4  ;;  %v229_v43 = vrot.slane %v228_v36, 4  ;;  %v240_v44 = vrot.slane %v239_v29, 4  ;;  %v251_v48 = vrot.slane %v250_v45, 4 }
  0x98   :  { %v186_v49 = vadd.f32 %v185_v46, %v184_v58  ;;  %v197_v53 = vadd.f32 %v196_v41, %v195_v7  ;;  %v208_v54 = vadd.f32 %v207_v42, %v206_v34  ;;  %v262_v59 = vrot.slane %v261_v47, 4 }
  0x99   :  { %v219_v62 = vadd.f32 %v218_v52, %v217_v35  ;;  %v230_v14 = vadd.f32 %v229_v43, %v228_v36  ;;  %v241_v25 = vadd.f32 %v240_v44, %v239_v29  ;;  %v252_v9 = vadd.f32 %v251_v48, %v250_v45 }
  0x9a   :  { %v187_v30 = vrot.slane %v186_v49, 2  ;;  %v198_v31 = vrot.slane %v197_v53, 2  ;;  %v209_v32 = vrot.slane %v208_v54, 2  ;;  %v263_v33 = vadd.f32 %v262_v59, %v261_v47 }
  0x9b   :  { %v220_v10 = vrot.slane %v219_v62, 2  ;;  %v231_v50 = vrot.slane %v230_v14, 2  ;;  %v242_v51 = vrot.slane %v241_v25, 2  ;;  %v253_v63 = vrot.slane %v252_v9, 2 }
  0x9c   :  { %v188_v60 = vadd.f32 %v187_v30, %v186_v49  ;;  %v199_v61 = vadd.f32 %v198_v31, %v197_v53  ;;  %v210_v2 = vadd.f32 %v209_v32, %v208_v54  ;;  %v264_v3 = vrot.slane %v263_v33, 2  ;;  %v391_v30 = vld [vmem:[%s6075_s4] sm:$0xff]  ;;  %v392_v32 = vld [vmem:[%s6075_s4 + $0x8] sm:$0xff] }
  0x9d   :  { %v221_v4 = vadd.f32 %v220_v10, %v219_v62  ;;  %v232_v5 = vadd.f32 %v231_v50, %v230_v14  ;;  %v243_v6 = vadd.f32 %v242_v51, %v241_v25  ;;  %v254_v16 = vadd.f32 %v253_v63, %v252_v9  ;;  %v396_v31 = vld [vmem:[%s6075_s4 + $0x24] sm:$0xff]  ;;  %v4039_v10 = vld [vmem:[%s6073_s3 + $0x270] sm:$0xff]  ;;  %v4044_v50 = vld [vmem:[%s6073_s3 + $0x278] sm:$0xff] }
  0x9e   :  { %v189_v11 = vrot.slane %v188_v60, 1  ;;  %v200_v18 = vrot.slane %v199_v61, 1  ;;  %v211_v19 = vrot.slane %v210_v2, 1  ;;  %v265_v13 = vadd.f32 %v264_v3, %v263_v33  ;;  %v397_v33 = vld [vmem:[%s6075_s4 + $0x2c] sm:$0xff] }
  0x9f   :  { %v222_v20 = vrot.slane %v221_v4, 1  ;;  %v233_v56 = vrot.slane %v232_v5, 1  ;;  %v244_v26 = vrot.slane %v243_v6, 1  ;;  %v255_v57 = vrot.slane %v254_v16, 1  ;;  %v4049_v51 = vld [vmem:[%s6075_s4 + $0x48] sm:$0xff]  ;;  %v4059_v3 = vld [vmem:[%s6075_s4 + $0x50] sm:$0xff] }
  0xa0   :  { %v190_v28 = vadd.f32 %v189_v11, %v188_v60  ;;  %v201_v1 = vadd.f32 %v200_v18, %v199_v61  ;;  %v212_v55 = vadd.f32 %v211_v19, %v210_v2  ;;  %v266_v58 = vrot.slane %v265_v13, 1  ;;  %v4054_v2 = vld [vmem:[%s6075_s4 + $0x6c] sm:$0xff]  ;;  %v4064_v18 = vld [vmem:[%s6075_s4 + $0x74] sm:$0xff] }
  0xa1   :  { %v223_v7 = vadd.f32 %v222_v20, %v221_v4  ;;  %v234_v34 = vadd.f32 %v233_v56, %v232_v5  ;;  %v245_v8 = vadd.f32 %v244_v26, %v243_v6  ;;  %v256_v35 = vadd.f32 %v255_v57, %v254_v16 }
  0xa2   :  { %v267_v36 = vadd.f32 %v266_v58, %v265_v13  ;;  %v271_v29 = vadd.f32 %v3994_v17, %v3996_v15  ;;  %v328_v45 = vadd.f32 %v286_v37, %v190_v28  ;;  %v329_v46 = vadd.f32 %v3822_v38, %v201_v1 }
  0xa3   :  { %v330_v41 = vadd.f32 %v3825_v39, %v212_v55  ;;  %v331_v42 = vadd.f32 %v3828_v40, %v223_v7  ;;  %v4007_v47 = vadd.f32 %v3538_v22, %v234_v34  ;;  %v4010_v52 = vadd.f32 %v3541_v23, %v245_v8 }
  0xa4   :  { %v272_v43 = vadd.f32 %v271_v29, %v3947_v0  ;;  %v4014_v17 = vadd.f32 %v3544_v24, %v256_v35  ;;  %v4017_v21 = vadd.f32 %v3553_v27, %v267_v36  ;;  %v2899_v37 = vmul.f32 -1.442695, %v328_v45  ;;  %v2898_v24 = vld [vmem:[%s6072_s2 + $0x8] ss:$0 sm:$0xff] }
  0xa5   :  { %v2900_v38 = vmul.f32 -1.442695, %v329_v46  ;;  %v2901_v15 = vmul.f32 -1.442695, %v330_v41  ;;  %v2902_v39 = vmul.f32 -1.442695, %v331_v42  ;;  %v511_v63 = vunpack.c.l.bf16 %v391_v30 }
  0xa6   :  { %v273_v44 = vrot.slane %v272_v43, 4  ;;  %3339 = vpow2.f32 %v2899_v37  ;;  %v512_v60 = vunpack.c.h.bf16 %v391_v30  ;;  %v520_v61 = vunpack.c.l.bf16 %v396_v31  ;;  %v1197_v41 = vld [vmem:[%s6073_s3 + $0x370] sm:$0xff]  ;;  %v1198_v42 = vld [vmem:[%s6073_s3 + $0x378] sm:$0xff] }
  0xa7   :  { %3341 = vpow2.f32 %v2900_v38  ;;  %v521_v5 = vunpack.c.h.bf16 %v396_v31  ;;  %v513_v6 = vunpack.c.l.bf16 %v392_v32  ;;  %v514_v16 = vunpack.c.h.bf16 %v392_v32  ;;  %v4099_v37 = vld [vmem:[%s6075_s4 + $0x90] sm:$0xff]  ;;  %v4134_v30 = vld [vmem:[%s6075_s4 + $0xbc] sm:$0xff]  ;;  %v1164_v32 = vld [vmem:[%s6073_s3 + $0x268] sm:$0xff] }
  0xa8   :  { %v274_v22 = vadd.f32 %v273_v44, %v272_v43  ;;  %3343 = vpow2.f32 %v2901_v15  ;;  %v522_v11 = vunpack.c.l.bf16 %v397_v33  ;;  %v523_v20 = vunpack.c.h.bf16 %v397_v33  ;;  %v1163_v31 = vld [vmem:[%s6073_s3 + $0x260] sm:$0xff] }
  0xa9   :  { %3345 = vpow2.f32 %v2902_v39  ;;  %v1270_v56 = vpack.c.bf16 %v4044_v50, %v4039_v10  ;;  %v530_v26 = vunpack.c.h.bf16 %v4049_v51  ;;  %v539_v1 = vunpack.c.h.bf16 %v4054_v2 }
  0xaa   :  { %v275_v23 = vrot.slane %v274_v22, 2  ;;  %v532_v55 = vunpack.c.h.bf16 %v4059_v3  ;;  %v529_v58 = vunpack.c.l.bf16 %v4049_v51  ;;  %v541_v36 = vunpack.c.h.bf16 %v4064_v18 }
  0xab   :  { %v538_v43 = vunpack.c.l.bf16 %v4054_v2  ;;  %v548_v50 = vunpack.c.h.bf16 %v4099_v37  ;;  %v540_v2 = vunpack.c.l.bf16 %v4064_v18 }
  0xac   :  { %v276_v40 = vadd.f32 %v275_v23, %v274_v22  ;;  %v4107_v22 = vld [vmem:[%s6075_s4 + $0xb4] sm:$0xff] }
  0xad   :  { %v4112_v23 = vld [vmem:[%s6075_s4 + $0x98] sm:$0xff]  ;;  %v557_v51 = vunpack.c.h.bf16 %v4107_v22 }
  0xae   :  { %v277_v48 = vrot.slane %v276_v40, 1 }
  0xb0   :  { %v278_v0 = vadd.f32 %v277_v48, %v276_v40  ;;  %v1179_v40 = vld [vmem:[%s6073_s3 + $0x2e0] sm:$0xff] }
  0xb2   :  { %v4022_v27 = vadd.f32 %v2898_v24, %v278_v0 }
  0xb3   :  { %v3340_v49 = vpop.eup %3339 }
  0xb4   :  { %v3342_v53 = vpop.eup %3341  ;;  %v364_v54 = vadd.f32 1.0, %v3340_v49  ;;  %v531_v49 = vunpack.c.l.bf16 %v4059_v3 }
  0xb5   :  { %v3344_v59 = vpop.eup %3343  ;;  %v365_v62 = vadd.f32 1.0, %v3342_v53  ;;  %v1180_v53 = vld [vmem:[%s6073_s3 + $0x2e8] sm:$0xff] }
  0xb6   :  { %v3346_v14 = vpop.eup %3345  ;;  %v366_v25 = vadd.f32 1.0, %v3344_v59  ;;  %3347 = vrcp.f32 %v364_v54  ;;  %v1211_v54 = vld [vmem:[%s6073_s3 + $0x3e0] sm:$0xff]  ;;  %v1212_v59 = vld [vmem:[%s6073_s3 + $0x3e8] sm:$0xff]  ;;  %v1277_v3 = vpack.c.bf16 %v1180_v53, %v1179_v40  ;;  %v547_v40 = vunpack.c.l.bf16 %v4099_v37 }
  0xb7   :  { %v367_v9 = vadd.f32 1.0, %v3346_v14  ;;  %3349 = vrcp.f32 %v365_v62 }
  0xb8   :  { %3351 = vrcp.f32 %v366_v25 }
  0xb9   :  { %3353 = vrcp.f32 %v367_v9  ;;  %v1286_v9 = vpack.c.bf16 %v1198_v42, %v1197_v41 }
  0xc3   :  { %v3348_v4 = vpop.eup %3347 }
  0xc4   :  { %v3350_v19 = vpop.eup %3349  ;;  %v4067_v13 = vrot.slane %v3348_v4, %v3772_v12  ;;  %v1293_v4 = vpack.c.bf16 %v1212_v59, %v1211_v54  ;;  %v556_v54 = vunpack.c.l.bf16 %v4107_v22  ;;  %v549_v59 = vunpack.c.l.bf16 %v4112_v23 }
  0xc5   :  { %v3352_v57 = vpop.eup %3351  ;;  %v4073_v28 = vrot.slane %v3350_v19, %v3772_v12  ;;  %v559_v19 = vunpack.c.h.bf16 %v4134_v30 }
  0xc6   :  { %v3354_v7 = vpop.eup %3353  ;;  %v4079_v34 = vrot.slane %v3352_v57, %v3772_v12  ;;  %v763_v8 = vmul.f32 %v4067_v13, %v511_v63  ;;  %v772_v35 = vmul.f32 %v4067_v13, %v520_v61  ;;  %v1177_v63 = vld [vmem:[%s6073_s3 + $0x2d0] sm:$0xff]  ;;  %v781_v18 = vmul.f32 %v4067_v13, %v529_v58  ;;  %v4165_v57 = vld [vmem:[%s6075_s4 + $0xd8] sm:$0xff] }
  0xc7   :  { %v4085_v29 = vrot.slane %v3354_v7, %v3772_v12  ;;  %v764_v45 = vmul.f32 %v4073_v28, %v512_v60  ;;  %v773_v46 = vmul.f32 %v4073_v28, %v521_v5  ;;  %v782_v44 = vmul.f32 %v4073_v28, %v530_v26  ;;  %v1178_v60 = vld [vmem:[%s6073_s3 + $0x2d8] sm:$0xff]  ;;  %v1195_v5 = vld [vmem:[%s6073_s3 + $0x360] sm:$0xff] }
  0xc8   :  { %v979_v38 = vpack.c.bf16 %v772_v35, %v763_v8  ;;  %v765_v15 = vmul.f32 %v4079_v34, %v513_v6  ;;  %v774_v39 = vmul.f32 %v4079_v34, %v522_v11  ;;  %v791_v14 = vmul.f32 %v4073_v28, %v539_v1  ;;  %v1196_v6 = vld [vmem:[%s6073_s3 + $0x368] sm:$0xff]  ;;  %v1162_v58 = vld [vmem:[%s6073_s3 + $0x258] sm:$0xff] }
  0xc9   :  { %v980_v48 = vpack.c.bf16 %v773_v46, %v764_v45  ;;  %v766_v24 = vmul.f32 %v4085_v29, %v514_v16  ;;  %v775_v0 = vmul.f32 %v4085_v29, %v523_v20  ;;  %v784_v25 = vmul.f32 %v4085_v29, %v532_v55  ;;  %v1161_v55 = vld [vmem:[%s6073_s3 + $0x250] sm:$0xff]  ;;  %v1210_v46 = vld [vmem:[%s6073_s3 + $0x3d8] sm:$0xff] }
  0xca   :  { %v981_v62 = vpack.c.bf16 %v774_v39, %v765_v15  ;;  %v793_v10 = vmul.f32 %v4085_v29, %v541_v36  ;;  %v989_v61 = vpack.c.bf16 %v791_v14, %v782_v44  ;;  %v550_v11 = vunpack.c.h.bf16 %v4112_v23  ;;  %v4183_v36 = vld [vmem:[%s6075_s4 + $0xe0] sm:$0xff]  ;;  %v1209_v45 = vld [vmem:[%s6073_s3 + $0x3d0] sm:$0xff]  ;;  %v1194_v15 = vld [vmem:[%s6073_s3 + $0x358] sm:$0xff] }
  0xcb   :  { %1335 = vmatprep.mubr.bf16.mxu0 %v980_v48  ;;  %v982_v33 = vpack.c.bf16 %v775_v0, %v766_v24  ;;  %v1269_v20 = vpack.c.bf16 %v1164_v32, %v1163_v31  ;;  %v790_v26 = vmul.f32 %v4067_v13, %v538_v43  ;;  %v1276_v1 = vpack.c.bf16 %v1178_v60, %v1177_v63  ;;  %v4196_v43 = vld [vmem:[%s6075_s4 + $0x104] sm:$0xff]  ;;  %v1173_v32 = vld [vmem:[%s6073_s3 + $0x2b0] sm:$0xff] }
  0xcc   :  { %1336 = vmatmul.mubr.bf16.vlgmr.msra.gmra.mxu0 %v979_v38  ;;  %v991_v16 = vpack.c.bf16 %v793_v10, %v784_v25  ;;  %v800_v7 = vmul.f32 %v4073_v28, %v548_v50  ;;  %v809_v8 = vmul.f32 %v4073_v28, %v557_v51  ;;  %v1285_v35 = vpack.c.bf16 %v1196_v6, %v1195_v5  ;;  %v1193_v38 = vld [vmem:[%s6073_s3 + $0x350] sm:$0xff]  ;;  %v1175_v24 = vld [vmem:[%s6073_s3 + $0x2c0] sm:$0xff]  ;;  %v1176_v0 = vld [vmem:[%s6073_s3 + $0x2c8] sm:$0xff] }
  0xcd   :  { %1464 = vmatprep.mubr.bf16.mxu1 %v982_v33  ;;  %3085 = vmatpush3.bf16.msra.mxu0 %v1270_v56  ;;  %v4170_v56 = vld [vmem:[%s6075_s4 + $0xfc] sm:$0xff]  ;;  %v783_v41 = vmul.f32 %v4079_v34, %v531_v49  ;;  %v792_v42 = vmul.f32 %v4079_v34, %v540_v2  ;;  %v802_v39 = vmul.f32 %v4085_v29, %v550_v11  ;;  %v1208_v25 = vld [vmem:[%s6073_s3 + $0x3c8] sm:$0xff]  ;;  %v566_v22 = vunpack.c.h.bf16 %v4165_v57 }
  0xce   :  { %1465 = vmatmul.mubr.bf16.vlgmr.msra.gmra.mxu1 %v981_v62  ;;  %1343 = vmatprep.mubr.bf16.mxu0 %v989_v61  ;;  %v811_v44 = vmul.f32 %v4085_v29, %v559_v19  ;;  %v1268_v48 = vpack.c.bf16 %v1162_v58, %v1161_v55  ;;  %v1159_v49 = vld [vmem:[%s6073_s3 + $0x240] sm:$0xff]  ;;  %v988_v53 = vpack.c.bf16 %v790_v26, %v781_v18  ;;  %v1160_v62 = vld [vmem:[%s6073_s3 + $0x248] sm:$0xff]  ;;  %v575_v23 = vunpack.c.h.bf16 %v4170_v56  ;;  %v1174_v33 = vld [vmem:[%s6073_s3 + $0x2b8] sm:$0xff] }
  0xcf   :  { %1472 = vmatprep.mubr.bf16.mxu1 %v991_v16  ;;  %3173 = vmatpush3.bf16.msra.mxu1 %v1286_v9  ;;  %v1292_v37 = vpack.c.bf16 %v1210_v46, %v1209_v45  ;;  %v1207_v14 = vld [vmem:[%s6073_s3 + $0x3c0] sm:$0xff]  ;;  %v998_v9 = vpack.c.bf16 %v809_v8, %v800_v7  ;;  %v1284_v31 = vpack.c.bf16 %v1194_v15, %v1193_v38  ;;  %v558_v50 = vunpack.c.l.bf16 %v4134_v30  ;;  %v1192_v61 = vld [vmem:[%s6073_s3 + $0x348] sm:$0xff]  ;;  %v1157_v26 = vld [vmem:[%s6073_s3 + $0x230] sm:$0xff] }
  0xd0   :  { %3086 = vmatprep.subr.bf16.mxu0 %v1277_v3  ;;  %3174 = vmatprep.subr.bf16.mxu1 %v1293_v4  ;;  %v990_v10 = vpack.c.bf16 %v792_v42, %v783_v41  ;;  %v568_v51 = vunpack.c.h.bf16 %v4183_v36  ;;  %v1275_v63 = vpack.c.bf16 %v1176_v0, %v1175_v24  ;;  %v1191_v60 = vld [vmem:[%s6073_s3 + $0x340] sm:$0xff]  ;;  %v1000_v2 = vpack.c.bf16 %v811_v44, %v802_v39  ;;  %v4269_v8 = vld [vmem:[%s6075_s4 + $0x128] sm:$0xff]  ;;  %v1205_v41 = vld [vmem:[%s6073_s3 + $0x3b0] sm:$0xff] }
  0xd1   :  { %3087 = vmatpush3.bf16.msra.mxu0 %v1269_v20  ;;  %v577_v3 = vunpack.c.h.bf16 %v4196_v43  ;;  %v1267_v4 = vpack.c.bf16 %v1160_v62, %v1159_v49  ;;  %v1291_v5 = vpack.c.bf16 %v1208_v25, %v1207_v14  ;;  %v799_v30 = vmul.f32 %v4067_v13, %v547_v40  ;;  %v4251_v20 = vld [vmem:[%s6075_s4 + $0x120] sm:$0xff]  ;;  %v1206_v42 = vld [vmem:[%s6073_s3 + $0x3b8] sm:$0xff]  ;;  %v1189_v38 = vld [vmem:[%s6073_s3 + $0x330] sm:$0xff] }
  0xd2   :  { %3088 = vmatprep.subr.bf16.mxu0 %v1276_v1  ;;  %v808_v6 = vmul.f32 %v4067_v13, %v556_v54  ;;  %v1274_v16 = vpack.c.bf16 %v1174_v33, %v1173_v32  ;;  %v818_v11 = vmul.f32 %v4073_v28, %v566_v22  ;;  %v827_v19 = vmul.f32 %v4073_v28, %v575_v23  ;;  %v1158_v1 = vld [vmem:[%s6073_s3 + $0x238] sm:$0xff]  ;;  %v4264_v7 = vld [vmem:[%s6075_s4 + $0x144] sm:$0xff] }
  0xd3   :  { %3175 = vmatpush3.bf16.msra.mxu1 %v1285_v35  ;;  %v1283_v18 = vpack.c.bf16 %v1192_v61, %v1191_v60  ;;  %v801_v55 = vmul.f32 %v4079_v34, %v549_v59  ;;  %v810_v58 = vmul.f32 %v4079_v34, %v558_v50  ;;  %v4274_v35 = vld [vmem:[%s6075_s4 + $0x14c] sm:$0xff]  ;;  %v820_v45 = vmul.f32 %v4085_v29, %v568_v51  ;;  %v1171_v24 = vld [vmem:[%s6073_s3 + $0x2a0] sm:$0xff] }
  0xd4   :  { %1344 = vmatmul.mubr.bf16.gmra.mxu0 %v988_v53  ;;  %3176 = vmatprep.subr.bf16.mxu1 %v1292_v37  ;;  %v829_v46 = vmul.f32 %v4085_v29, %v577_v3  ;;  %v997_v15 = vpack.c.bf16 %v808_v6, %v799_v30  ;;  %v565_v39 = vunpack.c.l.bf16 %v4165_v57  ;;  %v574_v44 = vunpack.c.l.bf16 %v4170_v56  ;;  %v1172_v0 = vld [vmem:[%s6073_s3 + $0x2a8] sm:$0xff]  ;;  %v1203_v54 = vld [vmem:[%s6073_s3 + $0x3a0] sm:$0xff]  ;;  %v1170_v3 = vld [vmem:[%s6073_s3 + $0x298] sm:$0xff] }
  0xd5   :  { %1351 = vmatprep.mubr.bf16.mxu0 %v998_v9  ;;  %3089 = vmatpush3.bf16.msra.mxu0 %v1268_v48  ;;  %v1266_v40 = vpack.c.bf16 %v1158_v1, %v1157_v26  ;;  %v1190_v48 = vld [vmem:[%s6073_s3 + $0x338] sm:$0xff]  ;;  %v1007_v49 = vpack.c.bf16 %v827_v19, %v818_v11  ;;  %v567_v53 = vunpack.c.l.bf16 %v4183_v36  ;;  %v584_v57 = vunpack.c.h.bf16 %v4251_v20  ;;  %v1204_v59 = vld [vmem:[%s6073_s3 + $0x3a8] sm:$0xff]  ;;  %v1155_v25 = vld [vmem:[%s6073_s3 + $0x220] sm:$0xff] }
  0xd6   :  { %1473 = vmatmul.mubr.bf16.gmra.mxu1 %v990_v10  ;;  %3090 = vmatprep.subr.bf16.mxu0 %v1275_v63  ;;  %v593_v56 = vunpack.c.h.bf16 %v4264_v7  ;;  %v999_v37 = vpack.c.bf16 %v810_v58, %v801_v55  ;;  %v576_v62 = vunpack.c.l.bf16 %v4196_v43  ;;  %v586_v14 = vunpack.c.h.bf16 %v4269_v8  ;;  %v1156_v9 = vld [vmem:[%s6073_s3 + $0x228] sm:$0xff]  ;;  %v1187_v50 = vld [vmem:[%s6073_s3 + $0x320] sm:$0xff]  ;;  %v4349_v19 = vld [vmem:[%s6075_s4 + $0x170] sm:$0xff] }
  0xd7   :  { %1480 = vmatprep.mubr.bf16.mxu1 %v1000_v2  ;;  %3177 = vmatpush3.bf16.msra.mxu1 %v1284_v31  ;;  %v1290_v36 = vpack.c.bf16 %v1206_v42, %v1205_v41  ;;  %v1009_v22 = vpack.c.bf16 %v829_v46, %v820_v45  ;;  %v595_v23 = vunpack.c.h.bf16 %v4274_v35  ;;  %v1282_v31 = vpack.c.bf16 %v1190_v48, %v1189_v38  ;;  %v1188_v51 = vld [vmem:[%s6073_s3 + $0x328] sm:$0xff]  ;;  %v1169_v2 = vld [vmem:[%s6073_s3 + $0x290] sm:$0xff]  ;;  %v1154_v1 = vld [vmem:[%s6073_s3 + $0x218] sm:$0xff] }
  0xd8   :  { %3178 = vmatprep.subr.bf16.mxu1 %v1291_v5  ;;  %v1273_v32 = vpack.c.bf16 %v1172_v0, %v1171_v24  ;;  %v817_v43 = vmul.f32 %v4067_v13, %v565_v39  ;;  %v826_v33 = vmul.f32 %v4067_v13, %v574_v44  ;;  %v1289_v10 = vpack.c.bf16 %v1204_v59, %v1203_v54  ;;  %v4337_v30 = vld [vmem:[%s6075_s4 + $0x168] sm:$0xff]  ;;  %v1153_v26 = vld [vmem:[%s6073_s3 + $0x210] sm:$0xff]  ;;  %v1202_v38 = vld [vmem:[%s6073_s3 + $0x398] sm:$0xff] }
  0xd9   :  { %3091 = vmatpush3.bf16.msra.mxu0 %v1267_v4  ;;  %v836_v63 = vmul.f32 %v4073_v28, %v584_v57  ;;  %v845_v60 = vmul.f32 %v4073_v28, %v593_v56  ;;  %v1265_v61 = vpack.c.bf16 %v1156_v9, %v1155_v25  ;;  %v819_v4 = vmul.f32 %v4079_v34, %v567_v53  ;;  %v4342_v6 = vld [vmem:[%s6075_s4 + $0x18c] sm:$0xff]  ;;  %v4362_v46 = vld [vmem:[%s6075_s4 + $0x194] sm:$0xff] }
  0xda   :  { %3092 = vmatprep.subr.bf16.mxu0 %v1274_v16  ;;  %v828_v5 = vmul.f32 %v4079_v34, %v576_v62  ;;  %v838_v16 = vmul.f32 %v4085_v29, %v586_v14  ;;  %v847_v11 = vmul.f32 %v4085_v29, %v595_v23  ;;  %v1006_v55 = vpack.c.bf16 %v826_v33, %v817_v43  ;;  %v1201_v42 = vld [vmem:[%s6073_s3 + $0x390] sm:$0xff]  ;;  %v1186_v44 = vld [vmem:[%s6073_s3 + $0x318] sm:$0xff]  ;;  %v1168_v53 = vld [vmem:[%s6073_s3 + $0x288] sm:$0xff] }
  0xdb   :  { %3179 = vmatpush3.bf16.msra.mxu1 %v1283_v18  ;;  %v1281_v18 = vpack.c.bf16 %v1188_v51, %v1187_v50  ;;  %v583_v58 = vunpack.c.l.bf16 %v4251_v20  ;;  %v592_v45 = vunpack.c.l.bf16 %v4264_v7  ;;  %v1272_v41 = vpack.c.bf16 %v1170_v3, %v1169_v2  ;;  %v1185_v39 = vld [vmem:[%s6073_s3 + $0x310] sm:$0xff]  ;;  %v1152_v25 = vld [vmem:[%s6073_s3 + $0x208] sm:$0xff]  ;;  %v1183_v50 = vld [vmem:[%s6073_s3 + $0x300] sm:$0xff] }
  0xdc   :  { %1352 = vmatmul.mubr.bf16.gmra.mxu0 %v997_v15  ;;  %3180 = vmatprep.subr.bf16.mxu1 %v1290_v36  ;;  %v1016_v15 = vpack.c.bf16 %v845_v60, %v836_v63  ;;  %v602_v20 = vunpack.c.h.bf16 %v4337_v30  ;;  %v611_v7 = vunpack.c.h.bf16 %v4342_v6  ;;  %v585_v48 = vunpack.c.l.bf16 %v4269_v8  ;;  %v1199_v8 = vld [vmem:[%s6073_s3 + $0x380] sm:$0xff]  ;;  %v4407_v23 = vld [vmem:[%s6075_s4 + $0x1b0] sm:$0xff]  ;;  %v1184_v51 = vld [vmem:[%s6073_s3 + $0x308] sm:$0xff] }
  0xdd   :  { %1359 = vmatprep.mubr.bf16.mxu0 %v1007_v49  ;;  %3093 = vmatpush3.bf16.msra.mxu0 %v1266_v40  ;;  %v1008_v40 = vpack.c.bf16 %v828_v5, %v819_v4  ;;  %v594_v24 = vunpack.c.l.bf16 %v4274_v35  ;;  %v1264_v0 = vpack.c.bf16 %v1154_v1, %v1153_v26  ;;  %v1167_v49 = vld [vmem:[%s6073_s3 + $0x280] sm:$0xff]  ;;  %v1018_v57 = vpack.c.bf16 %v847_v11, %v838_v16  ;;  %v1200_v35 = vld [vmem:[%s6073_s3 + $0x388] sm:$0xff]  ;;  %v4414_v33 = vld [vmem:[%s6075_s4 + $0x1d4] sm:$0xff] }
  0xde   :  { %1481 = vmatmul.mubr.bf16.gmra.mxu1 %v999_v37  ;;  %3094 = vmatprep.subr.bf16.mxu0 %v1273_v32  ;;  %v604_v56 = vunpack.c.h.bf16 %v4349_v19  ;;  %v613_v54 = vunpack.c.h.bf16 %v4362_v46  ;;  %v1288_v59 = vpack.c.bf16 %v1202_v38, %v1201_v42  ;;  %v835_v37 = vmul.f32 %v4067_v13, %v583_v58  ;;  %v1151_v36 = vld [vmem:[%s6073_s3 + $0x200] sm:$0xff]  ;;  %v1229_v2 = vld [vmem:[%s6073_s3 + $0x470] sm:$0xff]  ;;  %v1230_v3 = vld [vmem:[%s6073_s3 + $0x478] sm:$0xff] }
  0xdf   :  { %1488 = vmatprep.mubr.bf16.mxu1 %v1009_v22  ;;  %3181 = vmatpush3.bf16.msra.mxu1 %v1282_v31  ;;  %v844_v62 = vmul.f32 %v4067_v13, %v592_v45  ;;  %v1280_v14 = vpack.c.bf16 %v1186_v44, %v1185_v39  ;;  %v854_v9 = vmul.f32 %v4073_v28, %v602_v20  ;;  %v601_v5 = vunpack.c.l.bf16 %v4337_v30  ;;  %v452_v11 = vld [vmem:[%s6075_s4 + $0x1b8] sm:$0xff] }
  0xe0   :  { %3182 = vmatprep.subr.bf16.mxu1 %v1289_v10  ;;  %v863_v22 = vmul.f32 %v4073_v28, %v611_v7  ;;  %v1271_v31 = vpack.c.bf16 %v1168_v53, %v1167_v49  ;;  %v837_v32 = vmul.f32 %v4079_v34, %v585_v48  ;;  %v846_v43 = vmul.f32 %v4079_v34, %v594_v24  ;;  %v466_v48 = vld [vmem:[%s6075_s4 + $0x21c] sm:$0xff] }
  0xe1   :  { %3095 = vmatpush3.bf16.msra.mxu0 %v1265_v61  ;;  %v1287_v10 = vpack.c.bf16 %v1200_v35, %v1199_v8  ;;  %v856_v63 = vmul.f32 %v4085_v29, %v604_v56  ;;  %v865_v60 = vmul.f32 %v4085_v29, %v613_v54  ;;  %v1263_v61 = vpack.c.bf16 %v1152_v25, %v1151_v36  ;;  %v462_v56 = vld [vmem:[%s6075_s4 + $0x200] sm:$0xff] }
  0xe2   :  { %3096 = vmatprep.subr.bf16.mxu0 %v1272_v41  ;;  %v1015_v4 = vpack.c.bf16 %v844_v62, %v835_v37  ;;  %v610_v16 = vunpack.c.l.bf16 %v4342_v6  ;;  %v1025_v26 = vpack.c.bf16 %v863_v22, %v854_v9  ;;  %v620_v1 = vunpack.c.h.bf16 %v4407_v23  ;;  %v467_v54 = vld [vmem:[%s6075_s4 + $0x224] sm:$0xff] }
  0xe3   :  { %3183 = vmatpush3.bf16.msra.mxu1 %v1281_v18  ;;  %v457_v18 = vld [vmem:[%s6075_s4 + $0x1dc] sm:$0xff]  ;;  %v1279_v58 = vpack.c.bf16 %v1184_v51, %v1183_v50  ;;  %v1017_v30 = vpack.c.bf16 %v846_v43, %v837_v32  ;;  %v603_v6 = vunpack.c.l.bf16 %v4349_v19  ;;  %v612_v45 = vunpack.c.l.bf16 %v4362_v46  ;;  %v476_v50 = vld [vmem:[%s6075_s4 + $0x264] sm:$0xff] }
  0xe4   :  { %1360 = vmatmul.mubr.bf16.gmra.mxu0 %v1006_v55  ;;  %3184 = vmatprep.subr.bf16.mxu1 %v1288_v59  ;;  %v629_v55 = vunpack.c.h.bf16 %v4414_v33  ;;  %v4442_v41 = vpack.c.bf16 %v1230_v3, %v1229_v2  ;;  %v1027_v42 = vpack.c.bf16 %v865_v60, %v856_v63  ;;  %v622_v38 = vunpack.c.h.bf16 %v452_v11 }
  0xe5   :  { %1367 = vmatprep.mubr.bf16.mxu0 %v1016_v15  ;;  %3097 = vmatpush3.bf16.msra.mxu0 %v1264_v0  ;;  %v631_v15 = vunpack.c.h.bf16 %v457_v18  ;;  %v853_v20 = vmul.f32 %v4067_v13, %v601_v5  ;;  %v862_v7 = vmul.f32 %v4067_v13, %v610_v16  ;;  %v872_v39 = vmul.f32 %v4073_v28, %v620_v1  ;;  %v477_v5 = vld [vmem:[%s6075_s4 + $0x26c] sm:$0xff] }
  0xe6   :  { %1489 = vmatmul.mubr.bf16.gmra.mxu1 %v1008_v40  ;;  %3098 = vmatprep.subr.bf16.mxu0 %v1271_v31  ;;  %v881_v19 = vmul.f32 %v4073_v28, %v629_v55  ;;  %v855_v46 = vmul.f32 %v4079_v34, %v603_v6  ;;  %v864_v44 = vmul.f32 %v4079_v34, %v612_v45  ;;  %v461_v40 = vld [vmem:[%s6075_s4 + $0x1f8] sm:$0xff]  ;;  %v619_v53 = vunpack.c.l.bf16 %v4407_v23 }
  0xe7   :  { %1496 = vmatprep.mubr.bf16.mxu1 %v1018_v57  ;;  %3185 = vmatpush3.bf16.msra.mxu1 %v1280_v14  ;;  %v874_v24 = vmul.f32 %v4085_v29, %v622_v38  ;;  %v883_v0 = vmul.f32 %v4085_v29, %v631_v15  ;;  %v1024_v49 = vpack.c.bf16 %v862_v7, %v853_v20  ;;  %v628_v57 = vunpack.c.l.bf16 %v4414_v33  ;;  %v481_v7 = vld [vmem:[%s6075_s4 + $0x288] sm:$0xff] }
  0xe8   :  { %3186 = vmatprep.subr.bf16.mxu1 %v1287_v10  ;;  %v2904_v59 = vmul.f32 -1.442695, %v4010_v52  ;;  %v1034_v8 = vpack.c.bf16 %v881_v19, %v872_v39  ;;  %v638_v35 = vunpack.c.h.bf16 %v461_v40  ;;  %v647_v37 = vunpack.c.h.bf16 %v466_v48  ;;  %v486_v39 = vld [vmem:[%s6075_s4 + $0x2ac] sm:$0xff] }
  0xe9   :  { %3099 = vmatpush3.bf16.msra.mxu0 %v1263_v61  ;;  %v1026_v62 = vpack.c.bf16 %v864_v44, %v855_v46  ;;  %v621_v14 = vunpack.c.l.bf16 %v452_v11  ;;  %v630_v36 = vunpack.c.l.bf16 %v457_v18  ;;  %v2906_v25 = vmul.f32 -1.442695, %v4017_v21  ;;  %v471_v21 = vld [vmem:[%s6075_s4 + $0x240] sm:$0xff] }
  0xea   :  { %3280 = vmatprep.subr.bf16.mxu0 %v4442_v41  ;;  %v1036_v9 = vpack.c.bf16 %v883_v0, %v874_v24  ;;  %v640_v22 = vunpack.c.h.bf16 %v462_v56  ;;  %v649_v23 = vunpack.c.h.bf16 %v467_v54  ;;  %v871_v31 = vmul.f32 %v4067_v13, %v619_v53  ;;  %v482_v24 = vld [vmem:[%s6075_s4 + $0x290] sm:$0xff] }
  0xeb   :  { %3187 = vmatpush3.bf16.msra.mxu1 %v1279_v58  ;;  %v880_v32 = vmul.f32 %v4067_v13, %v628_v57  ;;  %3355 = vpow2.f32 %v2904_v59  ;;  %v890_v52 = vmul.f32 %v4073_v28, %v638_v35  ;;  %v899_v43 = vmul.f32 %v4073_v28, %v647_v37  ;;  %v487_v0 = vld [vmem:[%s6075_s4 + $0x2b4] sm:$0xff] }
  0xec   :  { %1368 = vmatmul.mubr.bf16.gmra.mxu0 %v1015_v4  ;;  %3320 = vmatprep.subr.bf16.mxu1 %v4442_v41  ;;  %v873_v33 = vmul.f32 %v4079_v34, %v621_v14  ;;  %v882_v10 = vmul.f32 %v4079_v34, %v630_v36  ;;  %3357 = vpow2.f32 %v2906_v25  ;;  %v892_v51 = vmul.f32 %v4085_v29, %v640_v22  ;;  %v472_v4 = vld [vmem:[%s6075_s4 + $0x248] sm:$0xff] }
  0xed   :  { %1375 = vmatprep.mubr.bf16.mxu0 %v1025_v26  ;;  %v901_v63 = vmul.f32 %v4085_v29, %v649_v23  ;;  %v2903_v60 = vmul.f32 -1.442695, %v4007_v47  ;;  %v1033_v61 = vpack.c.bf16 %v880_v32, %v871_v31  ;;  %v637_v2 = vunpack.c.l.bf16 %v461_v40 }
  0xee   :  { %1497 = vmatmul.mubr.bf16.gmra.mxu1 %v1017_v30  ;;  %v646_v3 = vunpack.c.l.bf16 %v466_v48  ;;  %v1043_v16 = vpack.c.bf16 %v899_v43, %v890_v52  ;;  %v656_v11 = vunpack.c.h.bf16 %v471_v21  ;;  %v665_v18 = vunpack.c.h.bf16 %v476_v50  ;;  %v491_v52 = vld [vmem:[%s6075_s4 + $0x2d0] sm:$0xff] }
  0xef   :  { %1504 = vmatprep.mubr.bf16.mxu1 %v1027_v42  ;;  %v2905_v26 = vmul.f32 -1.442695, %v4014_v17  ;;  %v1035_v1 = vpack.c.bf16 %v882_v10, %v873_v33  ;;  %v639_v55 = vunpack.c.l.bf16 %v462_v56  ;;  %v648_v47 = vunpack.c.l.bf16 %v467_v54  ;;  %v496_v43 = vld [vmem:[%s6075_s4 + $0x2f4] sm:$0xff] }
  0xf0   :  { %v1045_v58 = vpack.c.bf16 %v901_v63, %v892_v51  ;;  %v658_v30 = vunpack.c.h.bf16 %v472_v4  ;;  %v667_v6 = vunpack.c.h.bf16 %v477_v5  ;;  %3359 = vpow2.f32 %v2903_v60  ;;  %v492_v60 = vld [vmem:[%s6075_s4 + $0x2d8] sm:$0xff] }
  0xf1   :  { %v889_v45 = vmul.f32 %v4067_v13, %v637_v2  ;;  %v898_v42 = vmul.f32 %v4067_v13, %v646_v3  ;;  %v908_v38 = vmul.f32 %v4073_v28, %v656_v11  ;;  %v917_v15 = vmul.f32 %v4073_v28, %v665_v18 }
  0xf2   :  { %3361 = vpow2.f32 %v2905_v26  ;;  %v891_v17 = vmul.f32 %v4079_v34, %v639_v55  ;;  %v900_v20 = vmul.f32 %v4079_v34, %v648_v47  ;;  %v910_v19 = vmul.f32 %v4085_v29, %v658_v30 }
  0xf3   :  { %v919_v46 = vmul.f32 %v4085_v29, %v667_v6  ;;  %v1042_v44 = vpack.c.bf16 %v898_v42, %v889_v45  ;;  %v655_v40 = vunpack.c.l.bf16 %v471_v21  ;;  %v664_v48 = vunpack.c.l.bf16 %v476_v50 }
  0xf4   :  { %1376 = vmatmul.mubr.bf16.gmra.mxu0 %v1024_v49  ;;  %v1052_v49 = vpack.c.bf16 %v917_v15, %v908_v38  ;;  %v674_v53 = vunpack.c.h.bf16 %v481_v7  ;;  %v683_v57 = vunpack.c.h.bf16 %v486_v39  ;;  %v1044_v54 = vpack.c.bf16 %v900_v20, %v891_v17  ;;  %v501_v20 = vld [vmem:[%s6075_s4 + $0x318] sm:$0xff] }
  0xf5   :  { %1383 = vmatprep.mubr.bf16.mxu0 %v1034_v8  ;;  %v657_v59 = vunpack.c.l.bf16 %v472_v4  ;;  %v666_v8 = vunpack.c.l.bf16 %v477_v5  ;;  %v1054_v35 = vpack.c.bf16 %v919_v46, %v910_v19  ;;  %v676_v37 = vunpack.c.h.bf16 %v482_v24 }
  0xf6   :  { %1505 = vmatmul.mubr.bf16.gmra.mxu1 %v1026_v62  ;;  %v685_v62 = vunpack.c.h.bf16 %v487_v0  ;;  %v907_v36 = vmul.f32 %v4067_v13, %v655_v40  ;;  %v916_v25 = vmul.f32 %v4067_v13, %v664_v48  ;;  %v926_v22 = vmul.f32 %v4073_v28, %v674_v53  ;;  %v502_v48 = vld [vmem:[%s6075_s4 + $0x320] sm:$0xff] }
  0xf7   :  { %1512 = vmatprep.mubr.bf16.mxu1 %v1036_v9  ;;  %v935_v23 = vmul.f32 %v4073_v28, %v683_v57  ;;  %v909_v31 = vmul.f32 %v4079_v34, %v657_v59  ;;  %v918_v32 = vmul.f32 %v4079_v34, %v666_v8  ;;  %v928_v10 = vmul.f32 %v4085_v29, %v676_v37 }
  0xf8   :  { %v3356_v56 = vpop.eup %3355  ;;  %v937_v21 = vmul.f32 %v4085_v29, %v685_v62  ;;  %v1051_v50 = vpack.c.bf16 %v916_v25, %v907_v36  ;;  %v673_v51 = vunpack.c.l.bf16 %v481_v7  ;;  %v682_v63 = vunpack.c.l.bf16 %v486_v39  ;;  %v506_v7 = vld [vmem:[%s6075_s4 + $0x33c] sm:$0xff] }
  0xf9   :  { %v3358_v14 = vpop.eup %3357  ;;  %v369_v9 = vadd.f32 1.0, %v3356_v56  ;;  %v1061_v3 = vpack.c.bf16 %v935_v23, %v926_v22  ;;  %v692_v4 = vunpack.c.h.bf16 %v491_v52  ;;  %v701_v5 = vunpack.c.h.bf16 %v496_v43  ;;  %v393_v23 = vld [vmem:[%s6075_s4 + $0x10] sm:$0xff] }
  0xfa   :  { %v371_v33 = vadd.f32 1.0, %v3358_v14  ;;  %v675_v11 = vunpack.c.l.bf16 %v482_v24  ;;  %v684_v18 = vunpack.c.l.bf16 %v487_v0  ;;  %v694_v55 = vunpack.c.h.bf16 %v492_v60  ;;  %v507_v24 = vld [vmem:[%s6075_s4 + $0x344] sm:$0xff] }
  0xfb   :  { %3363 = vrcp.f32 %v369_v9  ;;  %v925_v30 = vmul.f32 %v4067_v13, %v673_v51  ;;  %v934_v6 = vmul.f32 %v4067_v13, %v682_v63  ;;  %v944_v45 = vmul.f32 %v4073_v28, %v692_v4 }
  0xfc   :  { %1384 = vmatmul.mubr.bf16.gmra.mxu0 %v1033_v61  ;;  %v497_v61 = vld [vmem:[%s6075_s4 + $0x2fc] sm:$0xff]  ;;  %3365 = vrcp.f32 %v371_v33  ;;  %v953_v42 = vmul.f32 %v4073_v28, %v701_v5  ;;  %v927_v15 = vmul.f32 %v4079_v34, %v675_v11  ;;  %v936_v17 = vmul.f32 %v4079_v34, %v684_v18 }
  0xfd   :  { %1391 = vmatprep.mubr.bf16.mxu0 %v1043_v16  ;;  %v3360_v2 = vpop.eup %3359  ;;  %v1053_v16 = vpack.c.bf16 %v918_v32, %v909_v31  ;;  %v703_v47 = vunpack.c.h.bf16 %v497_v61  ;;  %v946_v39 = vmul.f32 %v4085_v29, %v694_v55  ;;  %v1060_v46 = vpack.c.bf16 %v934_v6, %v925_v30  ;;  %v398_v31 = vld [vmem:[%s6075_s4 + $0x34] sm:$0xff] }
  0xfe   :  { %1513 = vmatmul.mubr.bf16.gmra.mxu1 %v1035_v1  ;;  %v1063_v1 = vpack.c.bf16 %v937_v21, %v928_v10  ;;  %v700_v40 = vunpack.c.l.bf16 %v496_v43  ;;  %v1070_v0 = vpack.c.bf16 %v953_v42, %v944_v45  ;;  %v719_v53 = vunpack.c.h.bf16 %v506_v7  ;;  %v394_v21 = vld [vmem:[%s6075_s4 + $0x18] sm:$0xff] }
  0xff   :  { %1520 = vmatprep.mubr.bf16.mxu1 %v1045_v58  ;;  %v3362_v26 = vpop.eup %3361  ;;  %v368_v58 = vadd.f32 1.0, %v3360_v2  ;;  %v955_v19 = vmul.f32 %v4085_v29, %v703_v47  ;;  %v1062_v57 = vpack.c.bf16 %v936_v17, %v927_v15  ;;  %v693_v56 = vunpack.c.l.bf16 %v492_v60  ;;  %v403_v6 = vld [vmem:[%s6075_s4 + $0x58] sm:$0xff] }
 0x100   :  { %v370_v38 = vadd.f32 1.0, %v3362_v26  ;;  %v712_v8 = vunpack.c.h.bf16 %v502_v48  ;;  %v952_v62 = vmul.f32 %v4067_v13, %v700_v40  ;;  %v971_v36 = vmul.f32 %v4073_v28, %v719_v53  ;;  %v408_v45 = vld [vmem:[%s6075_s4 + $0x7c] sm:$0xff] }
 0x101   :  { %3367 = vrcp.f32 %v368_v58  ;;  %v1072_v59 = vpack.c.bf16 %v955_v19, %v946_v39  ;;  %v945_v9 = vmul.f32 %v4079_v34, %v693_v56  ;;  %v718_v10 = vunpack.c.l.bf16 %v506_v7  ;;  %v409_v39 = vld [vmem:[%s6075_s4 + $0x84] sm:$0xff] }
 0x102   :  { %3369 = vrcp.f32 %v370_v38  ;;  %v964_v32 = vmul.f32 %v4085_v29, %v712_v8  ;;  %v516_v60 = vunpack.c.h.bf16 %v393_v23  ;;  %v711_v2 = vunpack.c.l.bf16 %v502_v48 }
 0x103   :  { %v970_v26 = vmul.f32 %v4067_v13, %v718_v10  ;;  %v524_v7 = vunpack.c.l.bf16 %v398_v31 }
 0x104   :  { %1392 = vmatmul.mubr.bf16.gmra.mxu0 %v1042_v44  ;;  %v691_v44 = vunpack.c.l.bf16 %v491_v52  ;;  %v963_v58 = vmul.f32 %v4079_v34, %v711_v2 }
 0x105   :  { %1399 = vmatprep.mubr.bf16.mxu0 %v1052_v49  ;;  %v710_v49 = vunpack.c.h.bf16 %v501_v20 }
 0x106   :  { %1521 = vmatmul.mubr.bf16.gmra.mxu1 %v1044_v54  ;;  %v702_v54 = vunpack.c.l.bf16 %v497_v61  ;;  %v943_v37 = vmul.f32 %v4067_v13, %v691_v44  ;;  %v525_v61 = vunpack.c.h.bf16 %v398_v31  ;;  %v543_v44 = vunpack.c.h.bf16 %v408_v45 }
 0x107   :  { %1528 = vmatprep.mubr.bf16.mxu1 %v1054_v35  ;;  %v721_v35 = vunpack.c.h.bf16 %v507_v24  ;;  %v962_v14 = vmul.f32 %v4073_v28, %v710_v49  ;;  %v709_v28 = vunpack.c.l.bf16 %v501_v20  ;;  %v515_v20 = vunpack.c.l.bf16 %v393_v23 }
 0x108   :  { %v3364_v25 = vpop.eup %3363  ;;  %v954_v22 = vmul.f32 %v4079_v34, %v702_v54  ;;  %v1069_v33 = vpack.c.bf16 %v952_v62, %v943_v37  ;;  %v1228_v37 = vld [vmem:[%s6073_s3 + $0x468] sm:$0xff]  ;;  %v533_v31 = vunpack.c.l.bf16 %v403_v6 }
 0x109   :  { %v973_v52 = vmul.f32 %v4085_v29, %v721_v35  ;;  %v3366_v43 = vpop.eup %3365  ;;  %v4573_v51 = vrot.slane %v3364_v25, %v3772_v12  ;;  %v1079_v63 = vpack.c.bf16 %v971_v36, %v962_v14  ;;  %v961_v18 = vmul.f32 %v4067_v13, %v709_v28  ;;  %v1227_v35 = vld [vmem:[%s6073_s3 + $0x460] sm:$0xff] }
 0x10a   :  { %v1071_v29 = vpack.c.bf16 %v954_v22, %v945_v9  ;;  %v4576_v4 = vrot.slane %v3366_v43, %v3772_v12  ;;  %v4619_v36 = vld [vmem:[%s6075_s4 + $0xa0] sm:$0xff]  ;;  %v4636_v43 = vld [vmem:[%s6075_s4 + $0xcc] sm:$0xff] }
 0x10b   :  { %v1081_v5 = vpack.c.bf16 %v973_v52, %v964_v32  ;;  %v768_v55 = vmul.f32 %v4573_v51, %v516_v60  ;;  %v777_v47 = vmul.f32 %v4573_v51, %v525_v61  ;;  %v1078_v17 = vpack.c.bf16 %v970_v26, %v961_v18  ;;  %v4624_v25 = vld [vmem:[%s6075_s4 + $0xc4] sm:$0xff] }
 0x10c   :  { %1400 = vmatmul.mubr.bf16.gmra.mxu0 %v1051_v50  ;;  %v399_v50 = vld [vmem:[%s6075_s4 + $0x3c] sm:$0xff]  ;;  %v795_v8 = vmul.f32 %v4573_v51, %v543_v44  ;;  %v542_v32 = vunpack.c.l.bf16 %v408_v45  ;;  %v4631_v52 = vld [vmem:[%s6075_s4 + $0xa8] sm:$0xff]  ;;  %v552_v10 = vunpack.c.h.bf16 %v4619_v36  ;;  %v1221_v44 = vld [vmem:[%s6073_s3 + $0x430] sm:$0xff] }
 0x10d   :  { %1407 = vmatprep.mubr.bf16.mxu0 %v1061_v3  ;;  %v720_v3 = vunpack.c.l.bf16 %v507_v24  ;;  %v527_v11 = vunpack.c.h.bf16 %v399_v50  ;;  %v984_v19 = vpack.c.bf16 %v777_v47, %v768_v55  ;;  %v517_v24 = vunpack.c.l.bf16 %v394_v21  ;;  %v1223_v55 = vld [vmem:[%s6073_s3 + $0x440] sm:$0xff]  ;;  %v1224_v47 = vld [vmem:[%s6073_s3 + $0x448] sm:$0xff] }
 0x10e   :  { %1529 = vmatmul.mubr.bf16.gmra.mxu1 %v1053_v16  ;;  %v518_v16 = vunpack.c.h.bf16 %v394_v21  ;;  %v561_v21 = vunpack.c.h.bf16 %v4624_v25  ;;  %v804_v26 = vmul.f32 %v4573_v51, %v552_v10 }
 0x10f   :  { %1536 = vmatprep.mubr.bf16.mxu1 %v1063_v1  ;;  %v3368_v1 = vpop.eup %3367  ;;  %v972_v30 = vmul.f32 %v4079_v34, %v720_v3  ;;  %v779_v38 = vmul.f32 %v4576_v4, %v527_v11  ;;  %v404_v34 = vld [vmem:[%s6075_s4 + $0x60] sm:$0xff]  ;;  %v554_v3 = vunpack.c.h.bf16 %v4631_v52 }
 0x110   :  { %v3370_v42 = vpop.eup %3369  ;;  %v770_v13 = vmul.f32 %v4576_v4, %v518_v16  ;;  %v4593_v15 = vrot.slane %v3368_v1, %v3772_v12  ;;  %v536_v53 = vunpack.c.h.bf16 %v404_v34  ;;  %v535_v61 = vunpack.c.l.bf16 %v404_v34 }
 0x111   :  { %v4602_v40 = vrot.slane %v3370_v42, %v3772_v12  ;;  %v1080_v48 = vpack.c.bf16 %v972_v30, %v963_v58  ;;  %v813_v1 = vmul.f32 %v4573_v51, %v561_v21  ;;  %v806_v45 = vmul.f32 %v4576_v4, %v554_v3 }
 0x112   :  { %v986_v49 = vpack.c.bf16 %v779_v38, %v770_v13  ;;  %v767_v56 = vmul.f32 %v4593_v15, %v515_v20  ;;  %v776_v54 = vmul.f32 %v4593_v15, %v524_v7  ;;  %v788_v9 = vmul.f32 %v4576_v4, %v536_v53  ;;  %v4679_v20 = vld [vmem:[%s6075_s4 + $0xf0] sm:$0xff] }
 0x113   :  { %v769_v62 = vmul.f32 %v4602_v40, %v517_v24  ;;  %v785_v16 = vmul.f32 %v4593_v15, %v533_v31  ;;  %v794_v11 = vmul.f32 %v4593_v15, %v542_v32  ;;  %v787_v58 = vmul.f32 %v4602_v40, %v535_v61  ;;  %v4684_v7 = vld [vmem:[%s6075_s4 + $0x114] sm:$0xff] }
 0x114   :  { %1408 = vmatmul.mubr.bf16.gmra.mxu0 %v1060_v46  ;;  %v534_v46 = vunpack.c.h.bf16 %v403_v6  ;;  %v983_v23 = vpack.c.bf16 %v776_v54, %v767_v56  ;;  %v4670_v6 = vld [vmem:[%s6075_s4 + $0x10c] sm:$0xff]  ;;  %v551_v38 = vunpack.c.l.bf16 %v4619_v36  ;;  %v1299_v34 = vpack.c.bf16 %v1224_v47, %v1223_v55  ;;  %v1218_v61 = vld [vmem:[%s6073_s3 + $0x418] sm:$0xff] }
 0x115   :  { %1415 = vmatprep.mubr.bf16.mxu0 %v1070_v0  ;;  %v526_v0 = vunpack.c.l.bf16 %v399_v50  ;;  %v1225_v50 = vld [vmem:[%s6073_s3 + $0x450] sm:$0xff]  ;;  %v992_v13 = vpack.c.bf16 %v794_v11, %v785_v16  ;;  %v581_v56 = vunpack.c.h.bf16 %v4684_v7  ;;  %v580_v3 = vunpack.c.l.bf16 %v4684_v7 }
 0x116   :  { %1537 = vmatmul.mubr.bf16.gmra.mxu1 %v1062_v57  ;;  %v545_v57 = vunpack.c.h.bf16 %v409_v39  ;;  %v803_v54 = vmul.f32 %v4593_v15, %v551_v38 }
 0x117   :  { %1544 = vmatprep.mubr.bf16.mxu1 %v1072_v59  ;;  %v786_v59 = vmul.f32 %v4573_v51, %v534_v46  ;;  %v778_v14 = vmul.f32 %v4602_v40, %v526_v0  ;;  %v579_v46 = vunpack.c.h.bf16 %v4670_v6  ;;  %v553_v0 = vunpack.c.l.bf16 %v4631_v52 }
 0x118   :  { %v797_v22 = vmul.f32 %v4576_v4, %v545_v57  ;;  %v572_v57 = vunpack.c.h.bf16 %v4679_v20  ;;  %v833_v31 = vmul.f32 %v4576_v4, %v581_v56 }
 0x119   :  { %v993_v28 = vpack.c.bf16 %v795_v8, %v786_v59  ;;  %v985_v60 = vpack.c.bf16 %v778_v14, %v769_v62  ;;  %v1219_v62 = vld [vmem:[%s6073_s3 + $0x420] sm:$0xff]  ;;  %v1220_v14 = vld [vmem:[%s6073_s3 + $0x428] sm:$0xff]  ;;  %v805_v36 = vmul.f32 %v4602_v40, %v553_v0 }
 0x11a   :  { %v995_v2 = vpack.c.bf16 %v797_v22, %v788_v9  ;;  %v4713_v9 = vld [vmem:[%s6075_s4 + $0x130] sm:$0xff]  ;;  %v1297_v10 = vpack.c.bf16 %v1220_v14, %v1219_v62  ;;  %v453_v14 = vld [vmem:[%s6075_s4 + $0x1c0] sm:$0xff] }
 0x11b   :  { %v4718_v22 = vld [vmem:[%s6075_s4 + $0x154] sm:$0xff] }
 0x11c   :  { %1416 = vmatmul.mubr.bf16.gmra.mxu0 %v1069_v33  ;;  %v1301_v33 = vpack.c.bf16 %v1228_v37, %v1227_v35  ;;  %v831_v37 = vmul.f32 %v4573_v51, %v579_v46  ;;  %v596_v7 = vunpack.c.l.bf16 %v4718_v22 }
 0x11d   :  { %1423 = vmatprep.mubr.bf16.mxu0 %v1079_v63  ;;  %v1226_v63 = vld [vmem:[%s6073_s3 + $0x458] sm:$0xff] }
 0x11e   :  { %1545 = vmatmul.mubr.bf16.gmra.mxu1 %v1071_v29  ;;  %v544_v29 = vunpack.c.l.bf16 %v409_v39  ;;  %v1300_v18 = vpack.c.bf16 %v1226_v63, %v1225_v50  ;;  %v1002_v39 = vpack.c.bf16 %v813_v1, %v804_v26  ;;  %v588_v50 = vunpack.c.h.bf16 %v4713_v9 }
 0x11f   :  { %1552 = vmatprep.mubr.bf16.mxu1 %v1081_v5  ;;  %v563_v5 = vunpack.c.h.bf16 %v4636_v43  ;;  %v597_v63 = vunpack.c.h.bf16 %v4718_v22 }
 0x120   :  { %v796_v30 = vmul.f32 %v4602_v40, %v544_v29  ;;  %v840_v55 = vmul.f32 %v4573_v51, %v588_v50 }
 0x121   :  { %v815_v42 = vmul.f32 %v4576_v4, %v563_v5  ;;  %v849_v47 = vmul.f32 %v4573_v51, %v597_v63 }
 0x122   :  { %v994_v24 = vpack.c.bf16 %v796_v30, %v787_v58  ;;  %v1215_v58 = vld [vmem:[%s6073_s3 + $0x400] sm:$0xff]  ;;  %v1216_v30 = vld [vmem:[%s6073_s3 + $0x408] sm:$0xff] }
 0x123   :  { %v1004_v53 = vpack.c.bf16 %v815_v42, %v806_v45  ;;  %v443_v45 = vld [vmem:[%s6075_s4 + $0x178] sm:$0xff]  ;;  %v1020_v46 = vpack.c.bf16 %v849_v47, %v840_v55 }
 0x124   :  { %1424 = vmatmul.mubr.bf16.gmra.mxu0 %v1078_v17  ;;  %v560_v17 = vunpack.c.l.bf16 %v4624_v25  ;;  %v448_v42 = vld [vmem:[%s6075_s4 + $0x19c] sm:$0xff] }
 0x125   :  { %1593 = vmatprep.mubr.bf16.mxu0 %v984_v19 }
 0x126   :  { %1553 = vmatmul.mubr.bf16.gmra.mxu1 %v1080_v48  ;;  %v1222_v48 = vld [vmem:[%s6073_s3 + $0x438] sm:$0xff]  ;;  %v812_v59 = vmul.f32 %v4593_v15, %v560_v17 }
 0x127   :  { %1722 = vmatprep.mubr.bf16.mxu1 %v986_v49  ;;  %v562_v49 = vunpack.c.l.bf16 %v4636_v43  ;;  %v1298_v8 = vpack.c.bf16 %v1222_v48, %v1221_v44  ;;  %v578_v43 = vunpack.c.l.bf16 %v4670_v6  ;;  %v832_v6 = vmul.f32 %v4602_v40, %v580_v3 }
 0x128   :  { %v1001_v32 = vpack.c.bf16 %v812_v59, %v803_v54  ;;  %v606_v44 = vunpack.c.h.bf16 %v443_v45  ;;  %v615_v48 = vunpack.c.h.bf16 %v448_v42  ;;  %v848_v59 = vmul.f32 %v4593_v15, %v596_v7 }
 0x129   :  { %v814_v25 = vmul.f32 %v4602_v40, %v562_v49  ;;  %v830_v26 = vmul.f32 %v4593_v15, %v578_v43 }
 0x12b   :  { %v1003_v29 = vpack.c.bf16 %v814_v25, %v805_v36  ;;  %v458_v36 = vld [vmem:[%s6075_s4 + $0x1e4] sm:$0xff] }
 0x12c   :  { %1594 = vmatmul.mubr.bf16.vlgmr.msra.gmra.mxu0 %v983_v23  ;;  %v824_v23 = vmul.f32 %v4576_v4, %v572_v57 }
 0x12d   :  { %3281 = vmatpush3.bf16.msra.mxu0 %v4442_v41  ;;  %1601 = vmatprep.mubr.bf16.mxu0 %v993_v28  ;;  %v4732_v28 = vld [vmem:[%s6075_s4 + $0x15c] sm:$0xff] }
 0x12e   :  { %1723 = vmatmul.mubr.bf16.vlgmr.msra.gmra.mxu1 %v985_v60  ;;  %3282 = vmatprep.subr.bf16.mxu0 %v1301_v33  ;;  %v1217_v60 = vld [vmem:[%s6073_s3 + $0x410] sm:$0xff]  ;;  %v1013_v5 = vpack.c.bf16 %v833_v31, %v824_v23  ;;  %v599_v11 = vunpack.c.h.bf16 %v4732_v28  ;;  %v598_v49 = vunpack.c.l.bf16 %v4732_v28  ;;  %v605_v23 = vunpack.c.l.bf16 %v443_v45 }
 0x12f   :  { %1730 = vmatprep.mubr.bf16.mxu1 %v995_v2  ;;  %3328 = vmatpush3.bf16.msra.mxu1 %v4442_v41  ;;  %v4665_v41 = vld [vmem:[%s6075_s4 + $0xe8] sm:$0xff]  ;;  %v571_v2 = vunpack.c.l.bf16 %v4679_v20  ;;  %v1296_v1 = vpack.c.bf16 %v1218_v61, %v1217_v60  ;;  %v587_v20 = vunpack.c.l.bf16 %v4713_v9  ;;  %v614_v31 = vunpack.c.l.bf16 %v448_v42 }
 0x130   :  { %3321 = vmatprep.subr.bf16.mxu1 %v1301_v33  ;;  %v570_v19 = vunpack.c.h.bf16 %v4665_v41  ;;  %v569_v52 = vunpack.c.l.bf16 %v4665_v41  ;;  %v851_v38 = vmul.f32 %v4576_v4, %v599_v11  ;;  %v850_v62 = vmul.f32 %v4602_v40, %v598_v49  ;;  %v473_v49 = vld [vmem:[%s6075_s4 + $0x250] sm:$0xff] }
 0x131   :  { %3283 = vmatpush3.bf16.msra.mxu0 %v1301_v33  ;;  %v823_v41 = vmul.f32 %v4602_v40, %v571_v2  ;;  %v839_v54 = vmul.f32 %v4593_v15, %v587_v20  ;;  %v633_v28 = vunpack.c.h.bf16 %v458_v36  ;;  %v866_v2 = vmul.f32 %v4593_v15, %v614_v31 }
 0x132   :  { %3284 = vmatprep.subr.bf16.mxu0 %v1300_v18  ;;  %v822_v35 = vmul.f32 %v4573_v51, %v570_v19  ;;  %v1295_v19 = vpack.c.bf16 %v1216_v30, %v1215_v58  ;;  %v623_v58 = vunpack.c.l.bf16 %v453_v14  ;;  %v632_v30 = vunpack.c.l.bf16 %v458_v36 }
 0x133   :  { %3329 = vmatpush3.bf16.msra.mxu1 %v1301_v33  ;;  %v4727_v33 = vld [vmem:[%s6075_s4 + $0x138] sm:$0xff]  ;;  %v1019_v22 = vpack.c.bf16 %v848_v59, %v839_v54  ;;  %v2907_v45 = vmul.f32 -1.442695, %v4022_v27 }
 0x134   :  { %1602 = vmatmul.mubr.bf16.gmra.mxu0 %v992_v13  ;;  %3322 = vmatprep.subr.bf16.mxu1 %v1300_v18  ;;  %v1011_v21 = vpack.c.bf16 %v831_v37, %v822_v35  ;;  %v590_v16 = vunpack.c.h.bf16 %v4727_v33  ;;  %v589_v0 = vunpack.c.l.bf16 %v4727_v33  ;;  %v867_v35 = vmul.f32 %v4573_v51, %v615_v48 }
 0x135   :  { %1609 = vmatprep.mubr.bf16.mxu0 %v1002_v39  ;;  %3285 = vmatpush3.bf16.msra.mxu0 %v1300_v18  ;;  %v449_v39 = vld [vmem:[%s6075_s4 + $0x1a4] sm:$0xff]  ;;  %v624_v33 = vunpack.c.h.bf16 %v453_v14  ;;  %3371 = vpow2.f32 %v2907_v45  ;;  %v660_v14 = vunpack.c.h.bf16 %v473_v49 }
 0x136   :  { %1731 = vmatmul.mubr.bf16.gmra.mxu1 %v994_v24  ;;  %3286 = vmatprep.subr.bf16.mxu0 %v1299_v34  ;;  %v842_v13 = vmul.f32 %v4576_v4, %v590_v16  ;;  %v1012_v24 = vpack.c.bf16 %v832_v6, %v823_v41  ;;  %v617_v56 = vunpack.c.h.bf16 %v449_v39  ;;  %v841_v37 = vmul.f32 %v4602_v40, %v589_v0  ;;  %v464_v41 = vld [vmem:[%s6075_s4 + $0x210] sm:$0xff] }
 0x137   :  { %1738 = vmatprep.mubr.bf16.mxu1 %v1004_v53  ;;  %3330 = vmatpush3.bf16.msra.mxu1 %v1300_v18  ;;  %v821_v18 = vmul.f32 %v4593_v15, %v569_v52  ;;  %v459_v52 = vld [vmem:[%s6075_s4 + $0x1ec] sm:$0xff]  ;;  %v616_v50 = vunpack.c.l.bf16 %v449_v39  ;;  %v876_v3 = vmul.f32 %v4573_v51, %v624_v33  ;;  %v469_v6 = vld [vmem:[%s6075_s4 + $0x234] sm:$0xff]  ;;  %v644_v39 = vunpack.c.h.bf16 %v464_v41 }
 0x138   :  { %3323 = vmatprep.subr.bf16.mxu1 %v1299_v34  ;;  %v1022_v53 = vpack.c.bf16 %v851_v38, %v842_v13  ;;  %v869_v9 = vmul.f32 %v4576_v4, %v617_v56  ;;  %v635_v61 = vunpack.c.h.bf16 %v459_v52  ;;  %v634_v7 = vunpack.c.l.bf16 %v459_v52 }
 0x139   :  { %3287 = vmatpush3.bf16.msra.mxu0 %v1299_v34  ;;  %v1010_v17 = vpack.c.bf16 %v830_v26, %v821_v18  ;;  %v868_v11 = vmul.f32 %v4602_v40, %v616_v50  ;;  %v463_v18 = vld [vmem:[%s6075_s4 + $0x208] sm:$0xff]  ;;  %v912_v33 = vmul.f32 %v4573_v51, %v660_v14  ;;  %v483_v50 = vld [vmem:[%s6075_s4 + $0x298] sm:$0xff] }
 0x13a   :  { %3288 = vmatprep.subr.bf16.mxu0 %v1298_v8  ;;  %v468_v26 = vld [vmem:[%s6075_s4 + $0x22c] sm:$0xff]  ;;  %v887_v55 = vmul.f32 %v4576_v4, %v635_v61  ;;  %v642_v13 = vunpack.c.h.bf16 %v463_v18  ;;  %v886_v0 = vmul.f32 %v4602_v40, %v634_v7  ;;  %v641_v59 = vunpack.c.l.bf16 %v463_v18 }
 0x13b   :  { %3331 = vmatpush3.bf16.msra.mxu1 %v1299_v34  ;;  %v444_v34 = vld [vmem:[%s6075_s4 + $0x180] sm:$0xff]  ;;  %v651_v38 = vunpack.c.h.bf16 %v468_v26  ;;  %v678_v18 = vunpack.c.h.bf16 %v483_v50 }
 0x13c   :  { %1610 = vmatmul.mubr.bf16.gmra.mxu0 %v1001_v32  ;;  %3324 = vmatprep.subr.bf16.mxu1 %v1298_v8  ;;  %v608_v57 = vunpack.c.h.bf16 %v444_v34  ;;  %v454_v32 = vld [vmem:[%s6075_s4 + $0x1c8] sm:$0xff]  ;;  %v894_v27 = vmul.f32 %v4573_v51, %v642_v13  ;;  %v893_v52 = vmul.f32 %v4593_v15, %v641_v59 }
 0x13d   :  { %1617 = vmatprep.mubr.bf16.mxu0 %v1011_v21  ;;  %3289 = vmatpush3.bf16.msra.mxu0 %v1298_v8  ;;  %v607_v21 = vunpack.c.l.bf16 %v444_v34  ;;  %v626_v60 = vunpack.c.h.bf16 %v454_v32  ;;  %v625_v20 = vunpack.c.l.bf16 %v454_v32  ;;  %v903_v48 = vmul.f32 %v4573_v51, %v651_v38 }
 0x13e   :  { %1739 = vmatmul.mubr.bf16.gmra.mxu1 %v1003_v29  ;;  %3290 = vmatprep.subr.bf16.mxu0 %v1297_v10  ;;  %v860_v25 = vmul.f32 %v4576_v4, %v608_v57  ;;  %v857_v29 = vmul.f32 %v4593_v15, %v605_v23  ;;  %v896_v57 = vmul.f32 %v4576_v4, %v644_v39  ;;  %v498_v39 = vld [vmem:[%s6075_s4 + $0x304] sm:$0xff] }
 0x13f   :  { %1746 = vmatprep.mubr.bf16.mxu1 %v1013_v5  ;;  %3332 = vmatpush3.bf16.msra.mxu1 %v1298_v8  ;;  %v858_v8 = vmul.f32 %v4573_v51, %v606_v44  ;;  %v885_v5 = vmul.f32 %v4573_v51, %v633_v28  ;;  %v859_v16 = vmul.f32 %v4602_v40, %v607_v21 }
 0x140   :  { %3325 = vmatprep.subr.bf16.mxu1 %v1297_v10  ;;  %v1031_v63 = vpack.c.bf16 %v869_v9, %v860_v25  ;;  %v1028_v47 = vpack.c.bf16 %v866_v2, %v857_v29  ;;  %v884_v44 = vmul.f32 %v4593_v15, %v632_v30  ;;  %v643_v9 = vunpack.c.l.bf16 %v464_v41 }
 0x141   :  { %3291 = vmatpush3.bf16.msra.mxu0 %v1297_v10  ;;  %v1029_v43 = vpack.c.bf16 %v867_v35, %v858_v8  ;;  %v1038_v42 = vpack.c.bf16 %v885_v5, %v876_v3  ;;  %v650_v8 = vunpack.c.l.bf16 %v468_v26  ;;  %v474_v35 = vld [vmem:[%s6075_s4 + $0x258] sm:$0xff]  ;;  %v659_v2 = vunpack.c.l.bf16 %v473_v49  ;;  %v484_v5 = vld [vmem:[%s6075_s4 + $0x2a0] sm:$0xff] }
 0x142   :  { %3292 = vmatprep.subr.bf16.mxu0 %v1296_v1  ;;  %v662_v31 = vunpack.c.h.bf16 %v474_v35  ;;  %v680_v41 = vunpack.c.h.bf16 %v484_v5  ;;  %v930_v38 = vmul.f32 %v4573_v51, %v678_v18 }
 0x143   :  { %3333 = vmatpush3.bf16.msra.mxu1 %v1297_v10  ;;  %v1021_v10 = vpack.c.bf16 %v850_v62, %v841_v37  ;;  %v479_v37 = vld [vmem:[%s6075_s4 + $0x27c] sm:$0xff]  ;;  %v1047_v62 = vpack.c.bf16 %v903_v48, %v894_v27  ;;  %v911_v45 = vmul.f32 %v4593_v15, %v659_v2  ;;  %v677_v27 = vunpack.c.l.bf16 %v483_v50 }
 0x144   :  { %1618 = vmatmul.mubr.bf16.gmra.mxu0 %v1010_v17  ;;  %3326 = vmatprep.subr.bf16.mxu1 %v1296_v1  ;;  %v1030_v17 = vpack.c.bf16 %v868_v11, %v859_v16  ;;  %v671_v32 = vunpack.c.h.bf16 %v479_v37  ;;  %v489_v16 = vld [vmem:[%s6075_s4 + $0x2c4] sm:$0xff] }
 0x145   :  { %1625 = vmatprep.mubr.bf16.mxu0 %v1020_v46  ;;  %3293 = vmatpush3.bf16.msra.mxu0 %v1296_v1  ;;  %v875_v46 = vmul.f32 %v4593_v15, %v623_v58  ;;  %v670_v58 = vunpack.c.l.bf16 %v479_v37  ;;  %v688_v59 = vunpack.c.l.bf16 %v489_v16 }
 0x146   :  { %1747 = vmatmul.mubr.bf16.gmra.mxu1 %v1012_v24  ;;  %3294 = vmatprep.subr.bf16.mxu0 %v1295_v19  ;;  %v877_v24 = vmul.f32 %v4602_v40, %v625_v20  ;;  %v923_v61 = vmul.f32 %v4576_v4, %v671_v32 }
 0x147   :  { %1754 = vmatprep.mubr.bf16.mxu1 %v1022_v53  ;;  %3334 = vmatpush3.bf16.msra.mxu1 %v1296_v1  ;;  %v878_v1 = vmul.f32 %v4576_v4, %v626_v60  ;;  %v478_v53 = vld [vmem:[%s6075_s4 + $0x274] sm:$0xff]  ;;  %v1037_v54 = vpack.c.bf16 %v884_v44, %v875_v46  ;;  %v914_v60 = vmul.f32 %v4576_v4, %v662_v31  ;;  %v508_v31 = vld [vmem:[%s6075_s4 + $0x34c] sm:$0xff] }
 0x148   :  { %3327 = vmatprep.subr.bf16.mxu1 %v1295_v19  ;;  %v669_v36 = vunpack.c.h.bf16 %v478_v53  ;;  %v1039_v25 = vpack.c.bf16 %v886_v0, %v877_v24  ;;  %v668_v3 = vunpack.c.l.bf16 %v478_v53  ;;  %v922_v7 = vmul.f32 %v4602_v40, %v670_v58  ;;  %v494_v24 = vld [vmem:[%s6075_s4 + $0x2e8] sm:$0xff] }
 0x149   :  { %3295 = vmatpush3.bf16.msra.mxu0 %v1295_v19  ;;  %v1040_v34 = vpack.c.bf16 %v887_v55, %v878_v1  ;;  %v3372_v1 = vpop.eup %3371  ;;  %v1058_v30 = vpack.c.bf16 %v923_v61, %v914_v60  ;;  %v499_v0 = vld [vmem:[%s6075_s4 + $0x30c] sm:$0xff]  ;;  %v723_v60 = vunpack.c.h.bf16 %v508_v31 }
 0x14a   :  { %v921_v28 = vmul.f32 %v4573_v51, %v669_v36  ;;  %v372_v13 = vadd.f32 1.0, %v3372_v1  ;;  %v707_v37 = vunpack.c.h.bf16 %v499_v0  ;;  %v706_v2 = vunpack.c.l.bf16 %v499_v0  ;;  %v405_v0 = vld [vmem:[%s6075_s4 + $0x68] ss:$36 sps:$4 sm:$0xff]  }
 0x14b   :  { %3335 = vmatpush3.bf16.msra.mxu1 %v1295_v19  ;;  %v653_v19 = vunpack.c.h.bf16 %v469_v6  ;;  %v975_v1 = vmul.f32 %v4573_v51, %v723_v60 }
 0x14c   :  { %1626 = vmatmul.mubr.bf16.gmra.mxu0 %v1019_v22  ;;  %v652_v22 = vunpack.c.l.bf16 %v469_v6  ;;  %v1056_v11 = vpack.c.bf16 %v921_v28, %v912_v33  ;;  %v689_v6 = vunpack.c.h.bf16 %v489_v16  ;;  %3373 = vrcp.f32 %v372_v13 }
 0x14d   :  { %1633 = vmatprep.mubr.bf16.mxu0 %v1029_v43  ;;  %v905_v56 = vmul.f32 %v4576_v4, %v653_v19  ;;  %v902_v43 = vmul.f32 %v4593_v15, %v650_v8  ;;  %v932_v19 = vmul.f32 %v4576_v4, %v680_v41  ;;  %v704_v28 = vunpack.c.l.bf16 %v498_v39 }
 0x14e   :  { %1755 = vmatmul.mubr.bf16.gmra.mxu1 %v1021_v10  ;;  %v895_v10 = vmul.f32 %v4602_v40, %v643_v9  ;;  %v904_v21 = vmul.f32 %v4602_v40, %v652_v22  ;;  %v941_v46 = vmul.f32 %v4576_v4, %v689_v6  ;;  %v940_v22 = vmul.f32 %v4602_v40, %v688_v59 }
 0x14f   :  { %1762 = vmatprep.mubr.bf16.mxu1 %v1031_v63  ;;  %v1049_v23 = vpack.c.bf16 %v905_v56, %v896_v57  ;;  %v488_v63 = vld [vmem:[%s6075_s4 + $0x2bc] sm:$0xff]  ;;  %v1046_v29 = vpack.c.bf16 %v902_v43, %v893_v52  ;;  %v705_v57 = vunpack.c.h.bf16 %v498_v39  ;;  %v959_v52 = vmul.f32 %v4576_v4, %v707_v37 }
 0x150   :  { %v687_v26 = vunpack.c.h.bf16 %v488_v63  ;;  %v1048_v55 = vpack.c.bf16 %v904_v21, %v895_v10  ;;  %v686_v48 = vunpack.c.l.bf16 %v488_v63  ;;  %v1067_v8 = vpack.c.bf16 %v941_v46, %v932_v19  ;;  %v504_v10 = vld [vmem:[%s6075_s4 + $0x330] sm:$0xff]  ;;  %v475_v37 = vld [vmem:[%s6075_s4 + $0x260] ss:$36 sps:$4 sm:$0xff]  }
 0x151   :  { %v509_v21 = vld [vmem:[%s6075_s4 + $0x354] sm:$0xff]  ;;  %v956_v18 = vmul.f32 %v4593_v15, %v704_v28  ;;  %v958_v58 = vmul.f32 %v4602_v40, %v706_v2  ;;  %v722_v13 = vunpack.c.l.bf16 %v508_v31  ;;  %v715_v39 = vunpack.c.l.bf16 %v504_v10 }
 0x152   :  { %v938_v14 = vmul.f32 %v4593_v15, %v686_v48  ;;  %v725_v16 = vunpack.c.h.bf16 %v509_v21  ;;  %v724_v19 = vunpack.c.l.bf16 %v509_v21  ;;  %v672_v31 = vunpack.c.h.bf16 %v475_v37  ;;  %v425_v28 = vld [vmem:[%s6075_s4 + $0xf8] ss:$36 sps:$4 sm:$0xff]  }
 0x153   :  { %v974_v48 = vmul.f32 %v4593_v15, %v722_v13  ;;  %v573_v2 = vunpack.c.l.bf16 %v425_v28 }
 0x154   :  { %1634 = vmatmul.mubr.bf16.gmra.mxu0 %v1028_v47  ;;  %v661_v47 = vunpack.c.l.bf16 %v474_v35  ;;  %v698_v35 = vunpack.c.h.bf16 %v494_v24  ;;  %v977_v6 = vmul.f32 %v4576_v4, %v725_v16 }
 0x155   :  { %1641 = vmatprep.mubr.bf16.mxu0 %v1038_v42  ;;  %v920_v42 = vmul.f32 %v4593_v15, %v668_v3 }
 0x156   :  { %1763 = vmatmul.mubr.bf16.gmra.mxu1 %v1030_v17  ;;  %v939_v17 = vmul.f32 %v4573_v51, %v687_v26  ;;  %v913_v20 = vmul.f32 %v4602_v40, %v661_v47  ;;  %v950_v32 = vmul.f32 %v4576_v4, %v698_v35  ;;  %v546_v35 = vunpack.c.h.bf16 %v405_v0 }
 0x157   :  { %1770 = vmatprep.mubr.bf16.mxu1 %v1040_v34  ;;  %v493_v34 = vld [vmem:[%s6075_s4 + $0x2e0] sm:$0xff]  ;;  %v1055_v44 = vpack.c.bf16 %v920_v42, %v911_v45 }
 0x158   :  { %v1065_v49 = vpack.c.bf16 %v939_v17, %v930_v38  ;;  %v696_v53 = vunpack.c.h.bf16 %v493_v34  ;;  %v1057_v56 = vpack.c.bf16 %v922_v7, %v913_v20  ;;  %v695_v33 = vunpack.c.l.bf16 %v493_v34 }
 0x159   :  { %v1076_v3 = vpack.c.bf16 %v959_v52, %v950_v32 }
 0x15a   :  { %v948_v36 = vmul.f32 %v4573_v51, %v696_v53  ;;  %v976_v53 = vmul.f32 %v4602_v40, %v724_v19 }
 0x15c   :  { %1642 = vmatmul.mubr.bf16.gmra.mxu0 %v1037_v54  ;;  %v679_v54 = vunpack.c.l.bf16 %v484_v5  ;;  %v716_v5 = vunpack.c.h.bf16 %v504_v10 }
 0x15d   :  { %1649 = vmatprep.mubr.bf16.mxu0 %v1047_v62  ;;  %v929_v62 = vmul.f32 %v4593_v15, %v677_v27 }
 0x15e   :  { %1771 = vmatmul.mubr.bf16.gmra.mxu1 %v1039_v25  ;;  %v957_v25 = vmul.f32 %v4573_v51, %v705_v57  ;;  %v931_v9 = vmul.f32 %v4602_v40, %v679_v54  ;;  %v968_v41 = vmul.f32 %v4576_v4, %v716_v5  ;;  %v415_v57 = vld [vmem:[%s6075_s4 + $0xb0] ss:$36 sps:$4 sm:$0xff]   ;;  %v465_v54 = vld [vmem:[%s6075_s4 + $0x218] ss:$36 sps:$4 sm:$0xff]  }
 0x15f   :  { %1778 = vmatprep.mubr.bf16.mxu1 %v1049_v23  ;;  %v503_v23 = vld [vmem:[%s6075_s4 + $0x328] sm:$0xff]  ;;  %v1064_v43 = vpack.c.bf16 %v938_v14, %v929_v62  ;;  %v555_v62 = vunpack.c.l.bf16 %v415_v57  ;;  %v564_v14 = vunpack.c.h.bf16 %v415_v57  ;;  %v495_v5 = vld [vmem:[%s6075_s4 + $0x2f0] ss:$36 sps:$4 sm:$0xff]  }
 0x160   :  { %v1074_v50 = vpack.c.bf16 %v957_v25, %v948_v36  ;;  %v714_v63 = vunpack.c.h.bf16 %v503_v23  ;;  %v1066_v61 = vpack.c.bf16 %v940_v22, %v931_v9  ;;  %v713_v42 = vunpack.c.l.bf16 %v503_v23 }
 0x161   :  { %v1085_v46 = vpack.c.bf16 %v977_v6, %v968_v41  ;;  %v645_v25 = vunpack.c.l.bf16 %v465_v54  ;;  %v654_v9 = vunpack.c.h.bf16 %v465_v54  ;;  %v663_v23 = vunpack.c.l.bf16 %v475_v37 }
 0x162   :  { %v966_v26 = vmul.f32 %v4573_v51, %v714_v63  ;;  %v455_v51 = vld [vmem:[%s6075_s4 + $0x1d0] ss:$36 sps:$4 sm:$0xff]   ;;  %v965_v27 = vmul.f32 %v4593_v15, %v713_v42  ;;  %v708_v41 = vunpack.c.h.bf16 %v495_v5 }
 0x163   :  { %v627_v4 = vunpack.c.l.bf16 %v455_v51 }
 0x164   :  { %1650 = vmatmul.mubr.bf16.gmra.mxu0 %v1046_v29  ;;  %v697_v29 = vunpack.c.l.bf16 %v494_v24  ;;  %v1083_v17 = vpack.c.bf16 %v975_v1, %v966_v26  ;;  %v1082_v59 = vpack.c.bf16 %v974_v48, %v965_v27  ;;  %v505_v48 = vld [vmem:[%s6075_s4 + $0x338] ss:$36 sps:$4 sm:$0xff]  }
 0x165   :  { %1657 = vmatprep.mubr.bf16.mxu0 %v1056_v11  ;;  %v947_v11 = vmul.f32 %v4593_v15, %v695_v33  ;;  %v726_v37 = vunpack.c.h.bf16 %v505_v48 }
 0x166   :  { %1779 = vmatmul.mubr.bf16.gmra.mxu1 %v1048_v55  ;;  %v3374_v55 = vpop.eup %3373  ;;  %v949_v47 = vmul.f32 %v4602_v40, %v697_v29 }
 0x167   :  { %1786 = vmatprep.mubr.bf16.mxu1 %v1058_v30  ;;  %v395_v30 = vld [vmem:[%s6075_s4 + $0x20] ss:$36 sps:$4 sm:$0xff]   ;;  %v1073_v45 = vpack.c.bf16 %v956_v18, %v947_v11  ;;  %v4912_v38 = vrot.slane %v3374_v55, %v3772_v12 }
 0x168   :  { %v519_v20 = vunpack.c.l.bf16 %v395_v30  ;;  %v528_v7 = vunpack.c.h.bf16 %v395_v30  ;;  %v1075_v34 = vpack.c.bf16 %v958_v58, %v949_v47  ;;  %v699_v30 = vunpack.c.l.bf16 %v495_v5 }
 0x169   :  { %v798_v52 = vmul.f32 %v4912_v38, %v546_v35  ;;  %v816_v33 = vmul.f32 %v4912_v38, %v564_v14  ;;  %v897_v10 = vmul.f32 %v4912_v38, %v645_v25  ;;  %v906_v21 = vmul.f32 %v4912_v38, %v654_v9 }
 0x16a   :  { %v771_v12 = vmul.f32 %v4912_v38, %v519_v20  ;;  %v780_v24 = vmul.f32 %v4912_v38, %v528_v7  ;;  %v915_v63 = vmul.f32 %v4912_v38, %v663_v23  ;;  %v924_v60 = vmul.f32 %v4912_v38, %v672_v31  ;;  %v445_v7 = vld [vmem:[%s6075_s4 + $0x188] ss:$36 sps:$4 sm:$0xff]  }
 0x16b   :  { %v1050_v1 = vpack.c.bf16 %v906_v21, %v897_v10  ;;  %v825_v42 = vmul.f32 %v4912_v38, %v573_v2  ;;  %v960_v27 = vmul.f32 %v4912_v38, %v708_v41  ;;  %v717_v35 = vunpack.c.l.bf16 %v505_v48 }
 0x16c   :  { %1658 = vmatmul.mubr.bf16.gmra.mxu0 %v1055_v44  ;;  %v636_v44 = vunpack.c.h.bf16 %v455_v51  ;;  %v1059_v58 = vpack.c.bf16 %v924_v60, %v915_v63 }
 0x16d   :  { %1665 = vmatprep.mubr.bf16.mxu0 %v1065_v49  ;;  %v967_v49 = vmul.f32 %v4602_v40, %v715_v39  ;;  %v987_v40 = vpack.c.bf16 %v780_v24, %v771_v12 }
 0x16e   :  { %1787 = vmatmul.mubr.bf16.gmra.mxu1 %v1057_v56  ;;  %v879_v56 = vmul.f32 %v4912_v38, %v627_v4  ;;  %v888_v15 = vmul.f32 %v4912_v38, %v636_v44  ;;  %v951_v44 = vmul.f32 %v4912_v38, %v699_v30 }
 0x16f   :  { %1794 = vmatprep.mubr.bf16.mxu1 %v1067_v8  ;;  %v537_v8 = vunpack.c.l.bf16 %v405_v0  ;;  %v1084_v36 = vpack.c.bf16 %v976_v53, %v967_v49  ;;  %v609_v49 = vunpack.c.l.bf16 %v445_v7  ;;  %v618_v53 = vunpack.c.h.bf16 %v445_v7 }
 0x170   :  { %v1041_v22 = vpack.c.bf16 %v888_v15, %v879_v56 }
 0x171   :  { %v789_v32 = vmul.f32 %v4912_v38, %v537_v8  ;;  %v861_v25 = vmul.f32 %v4912_v38, %v609_v49  ;;  %v870_v9 = vmul.f32 %v4912_v38, %v618_v53 }
 0x173   :  { %v996_v29 = vpack.c.bf16 %v798_v52, %v789_v32  ;;  %v969_v52 = vmul.f32 %v4912_v38, %v717_v35  ;;  %v1032_v21 = vpack.c.bf16 %v870_v9, %v861_v25 }
 0x174   :  { %1666 = vmatmul.mubr.bf16.gmra.mxu0 %v1064_v43  ;;  %v807_v43 = vmul.f32 %v4912_v38, %v555_v62  ;;  %v1077_v62 = vpack.c.bf16 %v960_v27, %v951_v44 }
 0x175   :  { %1673 = vmatprep.mubr.bf16.mxu0 %v1074_v50  ;;  %v435_v50 = vld [vmem:[%s6075_s4 + $0x140] ss:$36 sps:$4 sm:$0xff]  }
 0x176   :  { %1795 = vmatmul.mubr.bf16.gmra.mxu1 %v1066_v61  ;;  %v485_v61 = vld [vmem:[%s6075_s4 + $0x2a8] ss:$36 sps:$4 sm:$0xff]   ;;  %v1005_v16 = vpack.c.bf16 %v816_v33, %v807_v43  ;;  %v591_v11 = vunpack.c.l.bf16 %v435_v50  ;;  %v600_v18 = vunpack.c.h.bf16 %v435_v50  ;;  %v978_v43 = vmul.f32 %v4912_v38, %v726_v37 }
 0x177   :  { %1802 = vmatprep.mubr.bf16.mxu1 %v1076_v3  ;;  %v582_v3 = vunpack.c.h.bf16 %v425_v28  ;;  %v681_v55 = vunpack.c.l.bf16 %v485_v61  ;;  %v690_v47 = vunpack.c.h.bf16 %v485_v61 }
 0x178   :  { %v852_v20 = vmul.f32 %v4912_v38, %v600_v18 }
 0x179   :  { %v834_v13 = vmul.f32 %v4912_v38, %v582_v3  ;;  %v933_v19 = vmul.f32 %v4912_v38, %v681_v55 }
 0x17b   :  { %v1014_v0 = vpack.c.bf16 %v834_v13, %v825_v42 }
 0x17c   :  { %1674 = vmatmul.mubr.bf16.gmra.mxu0 %v1073_v45 }
 0x17d   :  { %1681 = vmatprep.mubr.bf16.mxu0 %v1083_v17  ;;  %v843_v17 = vmul.f32 %v4912_v38, %v591_v11 }
 0x17e   :  { %1803 = vmatmul.mubr.bf16.gmra.mxu1 %v1075_v34 }
 0x17f   :  { %1810 = vmatprep.mubr.bf16.mxu1 %v1085_v46  ;;  %v942_v46 = vmul.f32 %v4912_v38, %v690_v47  ;;  %v1023_v15 = vpack.c.bf16 %v852_v20, %v843_v17 }
 0x181   :  { %v1068_v8 = vpack.c.bf16 %v942_v46, %v933_v19 }
 0x184   :  { %1682 = vmatmul.mubr.bf16.gmra.mxu0 %v1082_v59 }
 0x185   :  { %3296 = vmatprep.mubr.bf16.mxu0 %v987_v40 }
 0x186   :  { %1811 = vmatmul.mubr.bf16.gmra.mxu1 %v1084_v36 }
 0x187   :  { %3308 = vmatprep.mubr.bf16.mxu1 %v1041_v22 }
 0x18c   :  { %v2924_v26 = vpop.f32.mrf.mxu0  ;;  %3297 = vmatmul.mubr.bf16.vlgmr.msra.gmra.mxu0 %v996_v29  ;;  %v1086_v29 = vpack.c.bf16 %v978_v43, %v969_v52 }
 0x18d   :  { %3300 = vmatprep.mubr.bf16.mxu0 %v1005_v16 }
 0x18e   :  { %v3012_v6 = vpop.f32.mrf.mxu1  ;;  %3309 = vmatmul.mubr.bf16.vlgmr.msra.gmra.mxu1 %v1050_v1  ;;  %v2925_v45 = vpop.f32.mrf.mxu0 }
 0x18f   :  { %3312 = vmatprep.mubr.bf16.mxu1 %v1059_v58  ;;  %v2926_v51 = vadd.f32 %v2925_v45, %v2924_v26 }
 0x190   :  { %v3013_v34 = vpop.f32.mrf.mxu1  ;;  %v2927_v39 = vpop.f32.mrf.mxu0 }
 0x191   :  { %v3014_v4 = vadd.f32 %v3013_v34, %v3012_v6 }
 0x192   :  { %v3015_v12 = vpop.f32.mrf.mxu1  ;;  %v2928_v24 = vpop.f32.mrf.mxu0 }
 0x193   :  { %v4968_v57 = vadd.f32 %v3014_v4, %v2926_v51  ;;  %v2929_v56 = vadd.f32 %v2928_v24, %v2927_v39 }
 0x194   :  { %v3016_v54 = vpop.f32.mrf.mxu1  ;;  %v2930_v59 = vpop.f32.mrf.mxu0  ;;  %3301 = vmatmul.mubr.bf16.gmra.mxu0 %v1014_v0 }
 0x195   :  { %v3017_v40 = vadd.f32 %v3016_v54, %v3015_v12  ;;  %3304 = vmatprep.mubr.bf16.mxu0 %v1023_v15 }
 0x196   :  { %v3018_v14 = vpop.f32.mrf.mxu1  ;;  %3313 = vmatmul.mubr.bf16.gmra.mxu1 %v1068_v8  ;;  %v2931_v36 = vpop.f32.mrf.mxu0 }
 0x197   :  { %v4972_v22 = vadd.f32 %v3017_v40, %v2929_v56  ;;  %3316 = vmatprep.mubr.bf16.mxu1 %v1077_v62  ;;  %v2932_v23 = vadd.f32 %v2931_v36, %v2930_v59 }
 0x198   :  { %v3019_v31 = vpop.f32.mrf.mxu1  ;;  %v2933_v32 = vpop.f32.mrf.mxu0 }
 0x199   :  { %v3020_v33 = vadd.f32 %v3019_v31, %v3018_v14 }
 0x19a   :  { %v3021_v28 = vpop.f32.mrf.mxu1  ;;  %v2934_v10 = vpop.f32.mrf.mxu0 }
 0x19b   :  { %v4976_v50 = vadd.f32 %v3020_v33, %v2932_v23  ;;  %v2935_v63 = vadd.f32 %v2934_v10, %v2933_v32 }
 0x19c   :  { %v3022_v60 = vpop.f32.mrf.mxu1  ;;  %v2936_v61 = vpop.f32.mrf.mxu0  ;;  %3305 = vmatmul.mubr.bf16.gmra.mxu0 %v1032_v21 }
 0x19d   :  { %v3023_v2 = vadd.f32 %v3022_v60, %v3021_v28 }
 0x19e   :  { %v3024_v3 = vpop.f32.mrf.mxu1  ;;  %3317 = vmatmul.mubr.bf16.gmra.mxu1 %v1086_v29  ;;  %v2937_v5 = vpop.f32.mrf.mxu0 }
 0x19f   :  { %v4978_v16 = vadd.f32 %v3023_v2, %v2935_v63  ;;  %v2938_v11 = vadd.f32 %v2937_v5, %v2936_v61 }
 0x1a0   :  { %v3025_v18 = vpop.f32.mrf.mxu1  ;;  %v2939_v38 = vpop.f32.mrf.mxu0 }
 0x1a1   :  { %v3026_v26 = vadd.f32 %v3025_v18, %v3024_v3 }
 0x1a2   :  { %v3027_v1 = vpop.f32.mrf.mxu1  ;;  %v2940_v55 = vpop.f32.mrf.mxu0 }
 0x1a3   :  { %v4980_v47 = vadd.f32 %v3026_v26, %v2938_v11  ;;  %v2941_v58 = vadd.f32 %v2940_v55, %v2939_v38 }
 0x1a4   :  { %v3028_v30 = vpop.f32.mrf.mxu1  ;;  %v2942_v41 = vpop.f32.mrf.mxu0 }
 0x1a5   :  { %v3029_v6 = vadd.f32 %v3028_v30, %v3027_v1 }
 0x1a6   :  { %v3030_v45 = vpop.f32.mrf.mxu1  ;;  %v2943_v42 = vpop.f32.mrf.mxu0 }
 0x1a7   :  { %v4982_v13 = vadd.f32 %v3029_v6, %v2941_v58  ;;  %v2944_v51 = vadd.f32 %v2943_v42, %v2942_v41 }
 0x1a8   :  { %v3031_v17 = vpop.f32.mrf.mxu1  ;;  %v2945_v20 = vpop.f32.mrf.mxu0 }
 0x1a9   :  { %v3032_v7 = vadd.f32 %v3031_v17, %v3030_v45 }
 0x1aa   :  { %v3033_v34 = vpop.f32.mrf.mxu1  ;;  %v2946_v39 = vpop.f32.mrf.mxu0 }
 0x1ab   :  { %v4984_v19 = vadd.f32 %v3032_v7, %v2944_v51  ;;  %v2947_v46 = vadd.f32 %v2946_v39, %v2945_v20 }
 0x1ac   :  { %v3034_v4 = vpop.f32.mrf.mxu1  ;;  %v2948_v44 = vpop.f32.mrf.mxu0 }
 0x1ad   :  { %v3035_v27 = vadd.f32 %v3034_v4, %v3033_v34 }
 0x1ae   :  { %v3036_v48 = vpop.f32.mrf.mxu1  ;;  %v2949_v12 = vpop.f32.mrf.mxu0 }
 0x1af   :  { %v4986_v24 = vadd.f32 %v3035_v27, %v2947_v46  ;;  %v2950_v0 = vadd.f32 %v2949_v12, %v2948_v44 }
 0x1b0   :  { %v3037_v49 = vpop.f32.mrf.mxu1  ;;  %v2951_v53 = vpop.f32.mrf.mxu0 }
 0x1b1   :  { %v3038_v56 = vadd.f32 %v3037_v49, %v3036_v48 }
 0x1b2   :  { %v3039_v15 = vpop.f32.mrf.mxu1  ;;  %v2952_v54 = vpop.f32.mrf.mxu0 }
 0x1b3   :  { %v4988_v59 = vadd.f32 %v3038_v56, %v2950_v0  ;;  %v2953_v8 = vadd.f32 %v2952_v54, %v2951_v53 }
 0x1b4   :  { %v3040_v35 = vpop.f32.mrf.mxu1  ;;  %v2954_v37 = vpop.f32.mrf.mxu0 }
 0x1b5   :  { %v3041_v40 = vadd.f32 %v3040_v35, %v3039_v15 }
 0x1b6   :  { %v3042_v62 = vpop.f32.mrf.mxu1  ;;  %v2955_v14 = vpop.f32.mrf.mxu0 }
 0x1b7   :  { %v4990_v36 = vadd.f32 %v3041_v40, %v2953_v8  ;;  %v2956_v25 = vadd.f32 %v2955_v14, %v2954_v37 }
 0x1b8   :  { %v3043_v9 = vpop.f32.mrf.mxu1  ;;  %v2957_v23 = vpop.f32.mrf.mxu0 }
 0x1b9   :  { %v3044_v31 = vadd.f32 %v3043_v9, %v3042_v62 }
 0x1ba   :  { %v3045_v32 = vpop.f32.mrf.mxu1  ;;  %v2958_v52 = vpop.f32.mrf.mxu0 }
 0x1bb   :  { %v4992_v43 = vadd.f32 %v3044_v31, %v2956_v25  ;;  %v2959_v33 = vadd.f32 %v2958_v52, %v2957_v23 }
 0x1bc   :  { %v3046_v28 = vpop.f32.mrf.mxu1  ;;  %v2960_v10 = vpop.f32.mrf.mxu0 }
 0x1bd   :  { %v3047_v21 = vadd.f32 %v3046_v28, %v3045_v32 }
 0x1be   :  { %v3048_v63 = vpop.f32.mrf.mxu1  ;;  %v2961_v60 = vpop.f32.mrf.mxu0 }
 0x1bf   :  { %v4994_v61 = vadd.f32 %v3047_v21, %v2959_v33  ;;  %v2962_v29 = vadd.f32 %v2961_v60, %v2960_v10 }
 0x1c0   :  { %v3049_v2 = vpop.f32.mrf.mxu1  ;;  %v2963_v3 = vpop.f32.mrf.mxu0 }
 0x1c1   :  { %v3050_v5 = vadd.f32 %v3049_v2, %v3048_v63 }
 0x1c2   :  { %v3051_v11 = vpop.f32.mrf.mxu1  ;;  %v2964_v18 = vpop.f32.mrf.mxu0 }
 0x1c3   :  { %v4996_v38 = vadd.f32 %v3050_v5, %v2962_v29  ;;  %v2965_v26 = vadd.f32 %v2964_v18, %v2963_v3 }
 0x1c4   :  { %v3052_v1 = vpop.f32.mrf.mxu1  ;;  %v2966_v55 = vpop.f32.mrf.mxu0 }
 0x1c5   :  { %v3053_v58 = vadd.f32 %v3052_v1, %v3051_v11 }
 0x1c6   :  { %v3054_v30 = vpop.f32.mrf.mxu1  ;;  %v2967_v41 = vpop.f32.mrf.mxu0 }
 0x1c7   :  { %v4998_v6 = vadd.f32 %v3053_v58, %v2965_v26  ;;  %v2968_v45 = vadd.f32 %v2967_v41, %v2966_v55 }
 0x1c8   :  { %v3055_v42 = vpop.f32.mrf.mxu1  ;;  %v2969_v51 = vpop.f32.mrf.mxu0 }
 0x1c9   :  { %v3056_v17 = vadd.f32 %v3055_v42, %v3054_v30 }
 0x1ca   :  { %v3057_v20 = vpop.f32.mrf.mxu1  ;;  %v2970_v7 = vpop.f32.mrf.mxu0 }
 0x1cb   :  { %v5000_v34 = vadd.f32 %v3056_v17, %v2968_v45  ;;  %v2971_v39 = vadd.f32 %v2970_v7, %v2969_v51 }
 0x1cc   :  { %v3058_v46 = vpop.f32.mrf.mxu1  ;;  %v2972_v4 = vpop.f32.mrf.mxu0 }
 0x1cd   :  { %v3059_v44 = vadd.f32 %v3058_v46, %v3057_v20 }
 0x1ce   :  { %v3060_v27 = vpop.f32.mrf.mxu1  ;;  %v2973_v48 = vpop.f32.mrf.mxu0 }
 0x1cf   :  { %v5002_v12 = vadd.f32 %v3059_v44, %v2971_v39  ;;  %v2974_v0 = vadd.f32 %v2973_v48, %v2972_v4 }
 0x1d0   :  { %v3061_v49 = vpop.f32.mrf.mxu1  ;;  %v2975_v53 = vpop.f32.mrf.mxu0 }
 0x1d1   :  { %v3062_v56 = vadd.f32 %v3061_v49, %v3060_v27 }
 0x1d2   :  { %v3063_v15 = vpop.f32.mrf.mxu1  ;;  %v2976_v54 = vpop.f32.mrf.mxu0 }
 0x1d3   :  { %v5004_v8 = vadd.f32 %v3062_v56, %v2974_v0  ;;  %v2977_v35 = vadd.f32 %v2976_v54, %v2975_v53 }
 0x1d4   :  { %v3064_v37 = vpop.f32.mrf.mxu1  ;;  %v2978_v40 = vpop.f32.mrf.mxu0 }
 0x1d5   :  { %v3065_v62 = vadd.f32 %v3064_v37, %v3063_v15 }
 0x1d6   :  { %v3066_v14 = vpop.f32.mrf.mxu1  ;;  %v2979_v25 = vpop.f32.mrf.mxu0 }
 0x1d7   :  { %v5006_v9 = vadd.f32 %v3065_v62, %v2977_v35  ;;  %v2980_v23 = vadd.f32 %v2979_v25, %v2978_v40 }
 0x1d8   :  { %v3067_v31 = vpop.f32.mrf.mxu1  ;;  %v2981_v32 = vpop.f32.mrf.mxu0 }
 0x1d9   :  { %v3068_v52 = vadd.f32 %v3067_v31, %v3066_v14 }
 0x1da   :  { %v3069_v33 = vpop.f32.mrf.mxu1  ;;  %v2982_v28 = vpop.f32.mrf.mxu0 }
 0x1db   :  { %v5008_v10 = vadd.f32 %v3068_v52, %v2980_v23  ;;  %v2983_v21 = vadd.f32 %v2982_v28, %v2981_v32 }
 0x1dc   :  { %v3070_v63 = vpop.f32.mrf.mxu1  ;;  %v2984_v60 = vpop.f32.mrf.mxu0 }
 0x1dd   :  { %v3071_v29 = vadd.f32 %v3070_v63, %v3069_v33 }
 0x1de   :  { %v3072_v2 = vpop.f32.mrf.mxu1  ;;  %v2985_v3 = vpop.f32.mrf.mxu0 }
 0x1df   :  { %v5010_v5 = vadd.f32 %v3071_v29, %v2983_v21  ;;  %v2986_v11 = vadd.f32 %v2985_v3, %v2984_v60 }
 0x1e0   :  { %v3073_v18 = vpop.f32.mrf.mxu1  ;;  %v2987_v26 = vpop.f32.mrf.mxu0 }
 0x1e1   :  { %v3074_v1 = vadd.f32 %v3073_v18, %v3072_v2 }
 0x1e2   :  { %v3075_v55 = vpop.f32.mrf.mxu1  ;;  %v2988_v58 = vpop.f32.mrf.mxu0 }
 0x1e3   :  { %v5012_v30 = vadd.f32 %v3074_v1, %v2986_v11  ;;  %v2989_v41 = vadd.f32 %v2988_v58, %v2987_v26 }
 0x1e4   :  { %v3076_v45 = vpop.f32.mrf.mxu1  ;;  %v2990_v42 = vpop.f32.mrf.mxu0 }
 0x1e5   :  { %6084 = vst [vmem:[#allocation2_spill] sm:$0xff] %v5012_v30  ;;  %v3077_v51 = vadd.f32 %v3076_v45, %v3075_v55 }
 0x1e6   :  { %v3078_v17 = vpop.f32.mrf.mxu1  ;;  %v2991_v20 = vpop.f32.mrf.mxu0 }
 0x1e7   :  { %v5014_v7 = vadd.f32 %v3077_v51, %v2989_v41  ;;  %v2992_v39 = vadd.f32 %v2991_v20, %v2990_v42 }
 0x1e8   :  { %v3079_v46 = vpop.f32.mrf.mxu1  ;;  %v2993_v4 = vpop.f32.mrf.mxu0 }
 0x1e9   :  { %6085 = vst [vmem:[#allocation3_spill] sm:$0xff] %v5014_v7  ;;  %v3080_v44 = vadd.f32 %v3079_v46, %v3078_v17 }
 0x1ea   :  { %v3081_v27 = vpop.f32.mrf.mxu1  ;;  %v2994_v48 = vpop.f32.mrf.mxu0 }
 0x1eb   :  { %v5016_v0 = vadd.f32 %v3080_v44, %v2992_v39  ;;  %v2995_v49 = vadd.f32 %v2994_v48, %v2993_v4 }
 0x1ec   :  { %v3082_v53 = vpop.f32.mrf.mxu1  ;;  %v3100_v56 = vpop.f32.mrf.mxu0 }
 0x1ed   :  { %v3083_v15 = vadd.f32 %v3082_v53, %v3081_v27 }
 0x1ee   :  { %v3188_v54 = vpop.f32.mrf.mxu1  ;;  %v3101_v35 = vpop.f32.mrf.mxu0 }
 0x1ef   :  { %v5018_v37 = vadd.f32 %v3083_v15, %v2995_v49  ;;  %v3102_v40 = vadd.f32 %v3101_v35, %v3100_v56 }
 0x1f0   :  { %v3189_v62 = vpop.f32.mrf.mxu1  ;;  %v3103_v14 = vpop.f32.mrf.mxu0 }
 0x1f1   :  { %6086 = vst [vmem:[#allocation4_spill] sm:$0xff] %v5018_v37  ;;  %v1596_v25 = vadd.f32 %v3102_v40, %v4968_v57  ;;  %v3190_v23 = vadd.f32 %v3189_v62, %v3188_v54 }
 0x1f2   :  { %v3191_v31 = vpop.f32.mrf.mxu1  ;;  %v3104_v32 = vpop.f32.mrf.mxu0 }
 0x1f3   :  { %v3105_v52 = vadd.f32 %v3104_v32, %v3103_v14  ;;  %v5021_v33 = vadd.f32 %v3190_v23, %v1596_v25 }
 0x1f4   :  { %v3192_v28 = vpop.f32.mrf.mxu1  ;;  %v3106_v21 = vpop.f32.mrf.mxu0 }
 0x1f5   :  { %v1599_v63 = vadd.f32 %v3105_v52, %v4972_v22  ;;  %v3193_v60 = vadd.f32 %v3192_v28, %v3191_v31 }
 0x1f6   :  { %v3194_v29 = vpop.f32.mrf.mxu1  ;;  %v3107_v2 = vpop.f32.mrf.mxu0 }
 0x1f7   :  { %v3108_v3 = vadd.f32 %v3107_v2, %v3106_v21  ;;  %v5024_v11 = vadd.f32 %v3193_v60, %v1599_v63 }
 0x1f8   :  { %v3195_v18 = vpop.f32.mrf.mxu1  ;;  %v3109_v26 = vpop.f32.mrf.mxu0 }
 0x1f9   :  { %v1604_v57 = vadd.f32 %v3108_v3, %v4976_v50  ;;  %v3196_v1 = vadd.f32 %v3195_v18, %v3194_v29 }
 0x1fa   :  { %v3197_v55 = vpop.f32.mrf.mxu1  ;;  %v3110_v58 = vpop.f32.mrf.mxu0 }
 0x1fb   :  { %v3111_v41 = vadd.f32 %v3110_v58, %v3109_v26  ;;  %v5027_v45 = vadd.f32 %v3196_v1, %v1604_v57 }
 0x1fc   :  { %v3198_v42 = vpop.f32.mrf.mxu1  ;;  %v3112_v51 = vpop.f32.mrf.mxu0 }
 0x1fd   :  { %v1607_v22 = vadd.f32 %v3111_v41, %v4978_v16  ;;  %v3199_v17 = vadd.f32 %v3198_v42, %v3197_v55 }
 0x1fe   :  { %v3200_v20 = vpop.f32.mrf.mxu1  ;;  %v3113_v39 = vpop.f32.mrf.mxu0 }
 0x1ff   :  { %v3114_v46 = vadd.f32 %v3113_v39, %v3112_v51  ;;  %v5030_v4 = vadd.f32 %v3199_v17, %v1607_v22 }
 0x200   :  { %v3201_v44 = vpop.f32.mrf.mxu1  ;;  %v3115_v27 = vpop.f32.mrf.mxu0 }
 0x201   :  { %v1612_v50 = vadd.f32 %v3114_v46, %v4980_v47  ;;  %v3202_v48 = vadd.f32 %v3201_v44, %v3200_v20 }
 0x202   :  { %v3203_v49 = vpop.f32.mrf.mxu1  ;;  %v3116_v53 = vpop.f32.mrf.mxu0 }
 0x203   :  { %v3117_v56 = vadd.f32 %v3116_v53, %v3115_v27  ;;  %v5033_v15 = vadd.f32 %v3202_v48, %v1612_v50 }
 0x204   :  { %v3204_v54 = vpop.f32.mrf.mxu1  ;;  %v3118_v35 = vpop.f32.mrf.mxu0 }
 0x205   :  { %v1615_v16 = vadd.f32 %v3117_v56, %v4982_v13  ;;  %v3205_v40 = vadd.f32 %v3204_v54, %v3203_v49 }
 0x206   :  { %v3206_v62 = vpop.f32.mrf.mxu1  ;;  %v3119_v14 = vpop.f32.mrf.mxu0 }
 0x207   :  { %v3120_v25 = vadd.f32 %v3119_v14, %v3118_v35  ;;  %v5036_v23 = vadd.f32 %v3205_v40, %v1615_v16 }
 0x208   :  { %v3207_v31 = vpop.f32.mrf.mxu1  ;;  %v3121_v32 = vpop.f32.mrf.mxu0 }
 0x209   :  { %v1620_v47 = vadd.f32 %v3120_v25, %v4984_v19  ;;  %v3208_v52 = vadd.f32 %v3207_v31, %v3206_v62 }
 0x20a   :  { %v3209_v28 = vpop.f32.mrf.mxu1  ;;  %v3122_v21 = vpop.f32.mrf.mxu0 }
 0x20b   :  { %v3123_v63 = vadd.f32 %v3122_v21, %v3121_v32  ;;  %v5039_v60 = vadd.f32 %v3208_v52, %v1620_v47 }
 0x20c   :  { %v3210_v29 = vpop.f32.mrf.mxu1  ;;  %v3124_v2 = vpop.f32.mrf.mxu0 }
 0x20d   :  { %v1623_v13 = vadd.f32 %v3123_v63, %v4986_v24  ;;  %v3211_v3 = vadd.f32 %v3210_v29, %v3209_v28 }
 0x20e   :  { %v3212_v18 = vpop.f32.mrf.mxu1  ;;  %v3125_v26 = vpop.f32.mrf.mxu0 }
 0x20f   :  { %v3126_v57 = vadd.f32 %v3125_v26, %v3124_v2  ;;  %v5042_v1 = vadd.f32 %v3211_v3, %v1623_v13 }
 0x210   :  { %v3213_v55 = vpop.f32.mrf.mxu1  ;;  %v3127_v58 = vpop.f32.mrf.mxu0 }
 0x211   :  { %v1628_v19 = vadd.f32 %v3126_v57, %v4988_v59  ;;  %v3214_v41 = vadd.f32 %v3213_v55, %v3212_v18 }
 0x212   :  { %v3215_v42 = vpop.f32.mrf.mxu1  ;;  %v3128_v51 = vpop.f32.mrf.mxu0 }
 0x213   :  { %v3129_v22 = vadd.f32 %v3128_v51, %v3127_v58  ;;  %v5045_v17 = vadd.f32 %v3214_v41, %v1628_v19 }
 0x214   :  { %v3216_v20 = vpop.f32.mrf.mxu1  ;;  %v3130_v39 = vpop.f32.mrf.mxu0 }
 0x215   :  { %6087 = vst [vmem:[#allocation5_spill] sm:$0xff] %v5045_v17  ;;  %v1631_v24 = vadd.f32 %v3129_v22, %v4990_v36  ;;  %v3217_v46 = vadd.f32 %v3216_v20, %v3215_v42 }
 0x216   :  { %v3218_v44 = vpop.f32.mrf.mxu1  ;;  %v3131_v27 = vpop.f32.mrf.mxu0 }
 0x217   :  { %v3132_v50 = vadd.f32 %v3131_v27, %v3130_v39  ;;  %v5048_v48 = vadd.f32 %v3217_v46, %v1631_v24 }
 0x218   :  { %v3219_v49 = vpop.f32.mrf.mxu1  ;;  %v3133_v53 = vpop.f32.mrf.mxu0 }
 0x219   :  { %6088 = vst [vmem:[#allocation6_spill] sm:$0xff] %v5048_v48  ;;  %v1636_v59 = vadd.f32 %v3132_v50, %v4992_v43  ;;  %v3220_v56 = vadd.f32 %v3219_v49, %v3218_v44 }
 0x21a   :  { %v3221_v54 = vpop.f32.mrf.mxu1  ;;  %v3134_v35 = vpop.f32.mrf.mxu0 }
 0x21b   :  { %v3135_v16 = vadd.f32 %v3134_v35, %v3133_v53  ;;  %v5051_v40 = vadd.f32 %v3220_v56, %v1636_v59 }
 0x21c   :  { %v3222_v62 = vpop.f32.mrf.mxu1  ;;  %v3136_v14 = vpop.f32.mrf.mxu0 }
 0x21d   :  { %6089 = vst [vmem:[#allocation7_spill] sm:$0xff] %v5051_v40  ;;  %v1639_v36 = vadd.f32 %v3135_v16, %v4994_v61  ;;  %v3223_v25 = vadd.f32 %v3222_v62, %v3221_v54 }
 0x21e   :  { %v3224_v31 = vpop.f32.mrf.mxu1  ;;  %v3137_v32 = vpop.f32.mrf.mxu0 }
 0x21f   :  { %v5054_v47 = vadd.f32 %v3223_v25, %v1639_v36 }
 0x220   :  { %v3225_v52 = vpop.f32.mrf.mxu1  ;;  %v3139_v28 = vpop.f32.mrf.mxu0 }
 0x221   :  { %6090 = vst [vmem:[#allocation8_spill] sm:$0xff] %v5054_v47 }
 0x222   :  { %v5056_v21 = vpop.f32.mrf.mxu1  ;;  %v3140_v43 = vpop.f32.mrf.mxu0 }
 0x224   :  { %v5058_v63 = vpop.f32.mrf.mxu1  ;;  %v3142_v29 = vpop.f32.mrf.mxu0 }
 0x226   :  { %v3230_v2 = vpop.f32.mrf.mxu1  ;;  %v3143_v13 = vpop.f32.mrf.mxu0 }
 0x227   :  { %v3144_v7 = vadd.f32 %v3143_v13, %v3142_v29  ;;  %v3226_v13 = vadd.f32 %v3225_v52, %v3224_v31 }
 0x228   :  { %v3231_v3 = vpop.f32.mrf.mxu1  ;;  %v3145_v18 = vpop.f32.mrf.mxu0 }
 0x22a   :  { %v3233_v26 = vpop.f32.mrf.mxu1  ;;  %v3146_v57 = vpop.f32.mrf.mxu0 }
 0x22c   :  { %v3234_v61 = vpop.f32.mrf.mxu1  ;;  %v5060_v55 = vpop.f32.mrf.mxu0 }
 0x22e   :  { %v5062_v58 = vpop.f32.mrf.mxu1  ;;  %v5064_v19 = vpop.f32.mrf.mxu0 }
 0x230   :  { %v5066_v41 = vpop.f32.mrf.mxu1  ;;  %v5068_v42 = vpop.f32.mrf.mxu0 }
 0x232   :  { %v5070_v51 = vpop.f32.mrf.mxu1  ;;  %v5072_v22 = vpop.f32.mrf.mxu0 }
 0x234   :  { %v5074_v20 = vpop.f32.mrf.mxu1  ;;  %v3154_v39 = vpop.f32.mrf.mxu0 }
 0x236   :  { %v5076_v24 = vpop.f32.mrf.mxu1  ;;  %v3155_v46 = vpop.f32.mrf.mxu0 }
 0x238   :  { %v5078_v44 = vpop.f32.mrf.mxu1  ;;  %v5080_v27 = vpop.f32.mrf.mxu0 }
 0x23a   :  { %v5082_v50 = vpop.f32.mrf.mxu1  ;;  %v5084_v49 = vpop.f32.mrf.mxu0 }
 0x23c   :  { %v5086_v53 = vpop.f32.mrf.mxu1  ;;  %v5088_v59 = vpop.f32.mrf.mxu0 }
 0x23d   :  { %6091 = vst [vmem:[#allocation9_spill] sm:$0xff] %v5088_v59  ;;  %v3147_v59 = vadd.f32 %v3146_v57, %v3145_v18 }
 0x23e   :  { %v5090_v56 = vpop.f32.mrf.mxu1  ;;  %v5092_v54 = vpop.f32.mrf.mxu0 }
 0x23f   :  { %6092 = vst [vmem:[#allocation10_spill] sm:$0xff] %v5090_v56  ;;  %6093 = vst [vmem:[#allocation11_spill] sm:$0xff] %v5092_v54  ;;  %v3138_v56 = vadd.f32 %v3137_v32, %v3136_v14  ;;  %v1655_v31 = vadd.f32 %v3147_v59, %v5002_v12 }
 0x240   :  { %v5094_v35 = vpop.f32.mrf.mxu1  ;;  %v5096_v16 = vpop.f32.mrf.mxu0 }
 0x241   :  { %6094 = vst [vmem:[#allocation12_spill] sm:$0xff] %v5094_v35  ;;  %6095 = vst [vmem:[#allocation13_spill] sm:$0xff] %v5096_v16  ;;  %v1652_v16 = vadd.f32 %v3144_v7, %v5000_v34 }
 0x242   :  { %v5098_v62 = vpop.f32.mrf.mxu1  ;;  %v5100_v36 = vpop.f32.mrf.mxu0 }
 0x243   :  { %6096 = vst [vmem:[#allocation14_spill] sm:$0xff] %v5098_v62  ;;  %6097 = vst [vmem:[#allocation15_spill] sm:$0xff] %v5100_v36  ;;  %v3232_v36 = vadd.f32 %v3231_v3, %v3230_v2  ;;  %v3141_v2 = vadd.f32 %v3140_v43, %v3139_v28 }
 0x244   :  { %v5102_v25 = vpop.f32.mrf.mxu1  ;;  %v5104_v48 = vpop.f32.mrf.mxu0 }
 0x245   :  { %6098 = vst [vmem:[#allocation16_spill] sm:$0xff] %v5102_v25  ;;  %v1644_v25 = vadd.f32 %v3138_v56, %v4996_v38  ;;  %v1781_v32 = vadd.f32 %v3232_v36, %v1652_v16  ;;  %v1647_v43 = vadd.f32 %v3141_v2, %v4998_v6 }
 0x246   :  { %v5106_v17 = vpop.f32.mrf.mxu1  ;;  %v5108_v47 = vpop.f32.mrf.mxu0 }
 0x248   :  { %v5110_v30 = vpop.f32.mrf.mxu1  ;;  %v5112_v37 = vpop.f32.mrf.mxu0 }
 0x249   :  { %6099 = vst [vmem:[#allocation17_spill] sm:$0xff] %v5112_v37 }
 0x24a   :  { %v5115_v35 = vpop.f32.mrf.mxu1  ;;  %v5117_v62 = vpop.f32.mrf.mxu0 }
 0x24b   :  { %6100 = vst [vmem:[#allocation18_spill] sm:$0xff] %v5115_v35  ;;  %v1773_v35 = vadd.f32 %v3226_v13, %v1644_v25 }
 0x24c   :  { %v5120_v54 = vpop.f32.mrf.mxu1  ;;  %v3298_v29 = vpop.f32.mrf.mxu0 }
 0x24d   :  { %v5123_v14 = vadd.f32 %v3298_v29, %v5027_v45  ;;  %v3159_v29 = vadd.f32 %v5084_v49, %v5080_v27 }
 0x24e   :  { %v3310_v40 = vpop.f32.mrf.mxu1  ;;  %v1853_v37 = vpop.f32.mrf.mxu0 }
 0x24f   :  { %v5125_v34 = vadd.f32 %v3310_v40, %v1781_v32  ;;  %v5128_v7 = vadd.f32 %v1853_v37, %v5021_v33  ;;  %v1955_v38 = vsel %vm1948_vm0, %v5123_v14, 0.0  ;;  %v3235_v37 = vadd.f32 %v3234_v61, %v3233_v26 }
 0x250   :  { %v1901_v3 = vpop.f32.mrf.mxu1  ;;  %v3299_v56 = vpop.f32.mrf.mxu0  ;;  %1956 = vadd.xlane.f32.xlu0 %v1955_v38  ;;  %v3156_v33 = vadd.f32 %v3155_v46, %v3154_v39  ;;  %v3229_v26 = vadd.f32 %v5058_v63, %v5056_v21  ;;  %v3150_v63 = vadd.f32 %v5064_v19, %v5060_v55  ;;  %v1671_v27 = vadd.f32 %v3159_v29, %v5010_v5 }
 0x251   :  { %v5133_v45 = vadd.f32 %v1901_v3, %v1773_v35  ;;  %v1991_v52 = vsel %vm1948_vm0, %v5125_v34, 0.0  ;;  %v5138_v57 = vadd.f32 %v3299_v56, %v5030_v4  ;;  %v1949_v28 = vsel %vm1948_vm0, %v5128_v7, 0.0 }
 0x252   :  { %v3311_v40 = vpop.f32.mrf.mxu1  ;;  %1992 = vadd.xlane.f32.xlu1 %v1991_v52  ;;  %v1856_v18 = vpop.f32.mrf.mxu0  ;;  %v1784_v59 = vadd.f32 %v3235_v37, %v1655_v31  ;;  %v1668_v4 = vadd.f32 %v3156_v33, %v5008_v10  ;;  %v1776_v39 = vadd.f32 %v3229_v26, %v1647_v43  ;;  %v1660_v2 = vadd.f32 %v3150_v63, %v5004_v8  ;;  %v6104_v26 = vld [vmem:[#allocation11_spill] sm:$0xff] }
 0x253   :  { %v5144_v35 = vadd.f32 %v1856_v18, %v5024_v11  ;;  %v1985_v36 = vsel %vm1948_vm0, %v5133_v45, 0.0  ;;  %v1958_v6 = vsel %vm1948_vm0, %v5138_v57, 0.0  ;;  %v3244_v11 = vadd.f32 %v5078_v44, %v5076_v24 }
 0x254   :  { %v1904_v16 = vpop.f32.mrf.mxu1  ;;  %v3302_v12 = vpop.f32.mrf.mxu0  ;;  %1950 = vadd.xlane.f32.xlu0 %v1949_v28  ;;  %v5151_v61 = vadd.f32 %v3311_v40, %v1784_v59  ;;  %v3247_v55 = vadd.f32 %v5086_v53, %v5082_v50  ;;  %v3153_v5 = vadd.f32 %v5072_v22, %v5068_v42  ;;  %v3238_v52 = vadd.f32 %v5066_v41, %v5062_v58  ;;  %v6101_v59 = vld [vmem:[#allocation17_spill] sm:$0xff] }
 0x255   :  { %v5160_v21 = vadd.f32 %v3302_v12, %v5039_v60  ;;  %v1952_v10 = vsel %vm1948_vm0, %v5144_v35, 0.0  ;;  %v5166_v13 = vadd.f32 %v1904_v16, %v1776_v39  ;;  %v1797_v32 = vadd.f32 %v3244_v11, %v1668_v4 }
 0x256   :  { %1986 = vadd.xlane.f32.xlu1 %v1985_v36  ;;  %v3314_v46 = vpop.f32.mrf.mxu1  ;;  %v1869_v25 = vpop.f32.mrf.mxu0  ;;  %v1994_v38 = vsel %vm1948_vm0, %v5151_v61, 0.0  ;;  %v1800_v40 = vadd.f32 %v3247_v55, %v1671_v27  ;;  %v3168_v50 = vadd.f32 %v5108_v47, %v5104_v48  ;;  %v1789_v53 = vadd.f32 %v3238_v52, %v1660_v2  ;;  %v6110_v2 = vld [vmem:[#allocation12_spill] sm:$0xff]  ;;  %v6113_v52 = vld [vmem:[#allocation5_spill] sm:$0xff] }
 0x257   :  { %v5171_v60 = vadd.f32 %v3314_v46, %v1797_v32  ;;  %v1967_v49 = vsel %vm1948_vm0, %v5160_v21, 0.0  ;;  %v1988_v3 = vsel %vm1948_vm0, %v5166_v13, 0.0  ;;  %v5188_v8 = vadd.f32 %v1869_v25, %v5033_v15  ;;  %v6107_v32 = vld [vmem:[#allocation18_spill] sm:$0xff] }
 0x258   :  { %1959 = vadd.xlane.f32.xlu0 %v1958_v6  ;;  %v1917_v24 = vpop.f32.mrf.mxu1  ;;  %v3303_v44 = vpop.f32.mrf.mxu0  ;;  %v1663_v22 = vadd.f32 %v3153_v5, %v5006_v9  ;;  %v3241_v33 = vadd.f32 %v5074_v20, %v5070_v51  ;;  %v1684_v48 = vadd.f32 %v3168_v50, %v5016_v0  ;;  %v3256_v12 = vadd.f32 %v5110_v30, %v5106_v17  ;;  %v6102_v51 = vld [vmem:[#allocation7_spill] sm:$0xff]  ;;  %v6111_v5 = vld [vmem:[#allocation13_spill] sm:$0xff] }
 0x259   :  { %v5179_v19 = vadd.f32 %v3303_v44, %v5042_v1  ;;  %v2003_v1 = vsel %vm1948_vm0, %v5171_v60, 0.0  ;;  %v5199_v15 = vadd.f32 %v1917_v24, %v1789_v53  ;;  %v1961_v37 = vsel %vm1948_vm0, %v5188_v8, 0.0  ;;  %v6108_v24 = vld [vmem:[#allocation8_spill] sm:$0xff] }
 0x25a   :  { %1953 = vadd.xlane.f32.xlu1 %v1952_v10  ;;  %v3315_v56 = vpop.f32.mrf.mxu1  ;;  %v1872_v31 = vpop.f32.mrf.mxu0  ;;  %v1792_v28 = vadd.f32 %v3241_v33, %v1663_v22  ;;  %v3171_v36 = vadd.f32 %v5117_v62, %v6101_v59  ;;  %v1813_v39 = vadd.f32 %v3256_v12, %v1684_v48  ;;  %v6105_v62 = vld [vmem:[#allocation4_spill] sm:$0xff]  ;;  %v6106_v10 = vld [vmem:[#allocation2_spill] sm:$0xff] }
 0x25b   :  { %v5194_v18 = vadd.f32 %v3315_v56, %v1800_v40  ;;  %v1970_v42 = vsel %vm1948_vm0, %v5179_v19, 0.0  ;;  %v5207_v47 = vadd.f32 %v1872_v31, %v5036_v23  ;;  %v1997_v0 = vsel %vm1948_vm0, %v5199_v15, 0.0  ;;  %v6103_v23 = vld [vmem:[#allocation9_spill] sm:$0xff]  ;;  %v6112_v56 = vld [vmem:[#allocation15_spill] sm:$0xff]  ;;  %v6115_v48 = vld [vmem:[#allocation14_spill] sm:$0xff] }
 0x25c   :  { %1995 = vadd.xlane.f32.xlu0 %v1994_v38  ;;  %v1920_v58 = vpop.f32.mrf.mxu1  ;;  %v3306_v41 = vpop.f32.mrf.mxu0  ;;  %v3162_v4 = vadd.f32 %v6104_v26, %v6103_v23  ;;  %v1687_v25 = vadd.f32 %v3171_v36, %v6105_v62  ;;  %v3259_v38 = vadd.f32 %v5120_v54, %v6107_v32  ;;  %v3165_v31 = vadd.f32 %v6112_v56, %v6111_v5 }
 0x25d   :  { %v2006_v9 = vsel %vm1948_vm0, %v5194_v18, 0.0  ;;  %v5216_v20 = vadd.f32 %v3306_v41, %v6102_v51  ;;  %v5222_v6 = vadd.f32 %v1920_v58, %v1792_v28  ;;  %v1964_v46 = vsel %vm1948_vm0, %v5207_v47, 0.0  ;;  %v6114_v58 = vld [vmem:[#allocation3_spill] sm:$0xff] }
 0x25e   :  { %1968 = vadd.xlane.f32.xlu1 %v1967_v49  ;;  %v3318_v43 = vpop.f32.mrf.mxu1  ;;  %v1885_v16 = vpop.f32.mrf.mxu0  ;;  %v1676_v63 = vadd.f32 %v3162_v4, %v6106_v10  ;;  %v6109_v49 = vld [vmem:[#allocation10_spill] sm:$0xff]  ;;  %v1679_v41 = vadd.f32 %v3165_v31, %v6114_v58  ;;  %v2440_v4 = vld [vmem:[%s6071_s6 + $0x58] sm:$0xff] }
 0x25f   :  { %v5227_v11 = vadd.f32 %v3318_v43, %v1813_v39  ;;  %v1979_v29 = vsel %vm1948_vm0, %v5216_v20, 0.0  ;;  %v2000_v27 = vsel %vm1948_vm0, %v5222_v6, 0.0  ;;  %v3250_v55 = vadd.f32 %v6110_v2, %v6109_v49  ;;  %v6117_v43 = vld [vmem:[#allocation6_spill] sm:$0xff]  ;;  %v2439_v39 = vld [vmem:[%s6071_s6 + $0x50] sm:$0xff] }
 0x260   :  { %1989 = vadd.xlane.f32.xlu0 %v1988_v3  ;;  %v1933_v30 = vpop.f32.mrf.mxu1  ;;  %v3307_v17 = vpop.f32.mrf.mxu0  ;;  %v5244_v40 = vadd.f32 %v1885_v16, %v6113_v52 }
 0x261   :  { %v5235_v44 = vadd.f32 %v3307_v17, %v6108_v24  ;;  %v2015_v54 = vsel %vm1948_vm0, %v5227_v11, 0.0  ;;  %v1805_v50 = vadd.f32 %v3250_v55, %v1676_v63  ;;  %v2647_v24 = vld [vmem:[%s6076_s7 + $0x10] sm:$0xff] }
 0x262   :  { %2004 = vadd.xlane.f32.xlu1 %v2003_v1  ;;  %v3319_v3 = vpop.f32.mrf.mxu1  ;;  %v1816_v1 = vadd.f32 %v3259_v38, %v1687_v25  ;;  %v1888_v22 = vpop.f32.mrf.mxu0  ;;  %v1973_v33 = vsel %vm1948_vm0, %v5244_v40, 0.0  ;;  %v2671_v2 = vmul.f32 0.9, %v2647_v24 }
 0x263   :  { %v5260_v16 = vadd.f32 %v1888_v22, %v6117_v43 }
 0x264   :  { %1971 = vadd.xlane.f32.xlu0 %v1970_v42  ;;  %v5248_v53 = vadd.f32 %v3319_v3, %v1816_v1  ;;  %v1982_v42 = vsel %vm1948_vm0, %v5235_v44, 0.0  ;;  %v1936_v59 = vpop.f32.mrf.mxu1  ;;  %v2645_v3 = vld [vmem:[%s6076_s7] sm:$0xff] }
 0x265   :  { %v1976_v23 = vsel %vm1948_vm0, %v5260_v16, 0.0 }
 0x266   :  { %1962 = vadd.xlane.f32.xlu1 %v1961_v37  ;;  %v5253_v37 = vadd.f32 %v1933_v30, %v1805_v50  ;;  %v2018_v12 = vsel %vm1948_vm0, %v5248_v53, 0.0  ;;  %v5280_v30 = vpop.permute.xlu1 %2460  ;;  %v2669_v50 = vmul.f32 0.9, %v2645_v3 }
 0x268   :  { %2007 = vadd.xlane.f32.xlu0 %v2006_v9  ;;  %v6116_v9 = vld [vmem:[#allocation16_spill] sm:$0xff]  ;;  %v2009_v51 = vsel %vm1948_vm0, %v5253_v37, 0.0 }
 0x269   :  { %v3253_v28 = vadd.f32 %v6116_v9, %v6115_v48  ;;  %v2648_v48 = vld [vmem:[%s6076_s7 + $0x18] sm:$0xff] }
 0x26a   :  { %1998 = vadd.xlane.f32.xlu1 %v1997_v0  ;;  %v5284_v62 = vpop.permute.xlu1 %2470 }
 0x26b   :  { %v1808_v36 = vadd.f32 %v3253_v28, %v1679_v41 }
 0x26c   :  { %1965 = vadd.xlane.f32.xlu0 %v1964_v46  ;;  %v5278_v46 = vpop.permute.xlu0 %2455 }
 0x26d   :  { %v5266_v0 = vadd.f32 %v1936_v59, %v1808_v36  ;;  %v2646_v59 = vld [vmem:[%s6076_s7 + $0x8] sm:$0xff] }
 0x26e   :  { %1980 = vadd.xlane.f32.xlu1 %v1979_v29  ;;  %v5288_v29 = vpop.permute.xlu1 %2480 }
 0x26f   :  { %v2012_v26 = vsel %vm1948_vm0, %v5266_v0, 0.0 }
 0x270   :  { %2001 = vadd.xlane.f32.xlu0 %v2000_v27  ;;  %v5282_v17 = vpop.permute.xlu0 %2465  ;;  %v2659_v27 = vld [vmem:[%s6076_s7 + $0x70] sm:$0xff] }
 0x271   :  { %v2683_v5 = vmul.f32 0.9, %v2659_v27 }
 0x272   :  { %2016 = vadd.xlane.f32.xlu1 %v2015_v54  ;;  %v5292_v63 = vpop.permute.xlu1 %2490  ;;  %v2657_v54 = vld [vmem:[%s6076_s7 + $0x60] sm:$0xff] }
 0x274   :  { %1983 = vadd.xlane.f32.xlu0 %v1982_v42  ;;  %v5286_v25 = vpop.permute.xlu0 %2475 }
 0x276   :  { %1974 = vadd.xlane.f32.xlu1 %v1973_v33  ;;  %v5296_v38 = vpop.permute.xlu1 %2500 }
 0x278   :  { %2019 = vadd.xlane.f32.xlu0 %v2018_v12  ;;  %v5290_v10 = vpop.permute.xlu0 %2485 }
 0x27a   :  { %2010 = vadd.xlane.f32.xlu1 %v2009_v51 }
 0x27c   :  { %1977 = vadd.xlane.f32.xlu0 %v1976_v23  ;;  %v5294_v32 = vpop.permute.xlu0 %2495  ;;  %v2672_v23 = vmul.f32 0.9, %v2648_v48 }
 0x280   :  { %2013 = vadd.xlane.f32.xlu0 %v2012_v26 }
 0x28b   :  { %2510 = vperm.xlu1 %3338, %v2440_v4  }
 0x296   :  { %2505 = vperm.xlu0 %3337, %v2439_v39  }
 0x2d9   :  { %v1957_v49 = vpop.xlane.xlu0 %1956 }
 0x2da   :  { %v2023_v55 = vmul.f32 0.020408163, %v1957_v49  ;;  %v2670_v49 = vmul.f32 0.9, %v2646_v59 }
 0x2db   :  { %v1993_v56 = vpop.xlane.xlu1 %1992 }
 0x2dc   :  { %v2035_v31 = vmul.f32 0.020408163, %v1993_v56  ;;  %v5308_v52 = vsub.f32 %v5123_v14, %v2023_v55  ;;  %v2695_v1 = vmul.f32 0.1, %v2023_v55  ;;  %v2681_v14 = vmul.f32 0.9, %v2657_v54 }
 0x2dd   :  { %v1951_v42 = vpop.xlane.xlu0 %1950 }
 0x2de   :  { %v5314_v22 = vsub.f32 %v5125_v34, %v2035_v31  ;;  %v2707_v58 = vmul.f32 0.1, %v2035_v31  ;;  %v2719_v41 = vadd.f32 %v2695_v1, %v2671_v2  ;;  %v2021_v33 = vmul.f32 0.020408163, %v1951_v42  ;;  %v2651_v31 = vld [vmem:[%s6076_s7 + $0x30] sm:$0xff] }
 0x2df   :  { %v1987_v9 = vpop.xlane.xlu1 %1986  ;;  %v2071_v28 = vmul.f32 %v5308_v52, %v5308_v52 }
 0x2e0   :  { %v2731_v43 = vadd.f32 %v2707_v58, %v2683_v5  ;;  %2744 = vst.msk [vmem:[%s6077_s10 + $0x10] sm:$0xff] %vm2741_vm1, %v2719_v41  ;;  %v2033_v34 = vmul.f32 0.020408163, %v1987_v9  ;;  %v2693_v12 = vmul.f32 0.1, %v2021_v33  ;;  %v5329_v36 = vsub.f32 %v5128_v7, %v2021_v33  ;;  %v2660_v7 = vld [vmem:[%s6076_s7 + $0x78] sm:$0xff] }
 0x2e1   :  { %v2099_v51 = vsel %vm1948_vm0, %v2071_v28, 0.0  ;;  %v1960_v26 = vpop.xlane.xlu0 %1959  ;;  %v2083_v4 = vmul.f32 %v5314_v22, %v5314_v22 }
 0x2e2   :  { %2756 = vst.msk [vmem:[%s6077_s10 + $0x70] sm:$0xff] %vm2741_vm1, %v2731_v43  ;;  %v2705_v39 = vmul.f32 0.1, %v2033_v34  ;;  %v2717_v24 = vadd.f32 %v2693_v12, %v2669_v50  ;;  %2100 = vadd.xlane.f32.xlu1 %v2099_v51  ;;  %v2024_v27 = vmul.f32 0.020408163, %v1960_v26  ;;  %v5352_v1 = vsub.f32 %v5133_v45, %v2033_v34  ;;  %v2658_v45 = vld [vmem:[%s6076_s7 + $0x68] sm:$0xff] }
 0x2e3   :  { %v1954_v2 = vpop.xlane.xlu1 %1953  ;;  %v2135_v54 = vsel %vm1948_vm0, %v2083_v4, 0.0  ;;  %v2684_v50 = vmul.f32 0.9, %v2660_v7  ;;  %v2069_v58 = vmul.f32 %v5329_v36, %v5329_v36  ;;  %v2652_v51 = vld [vmem:[%s6076_s7 + $0x38] sm:$0xff]  ;;  %v2682_v4 = vmul.f32 0.9, %v2658_v45 }
 0x2e4   :  { %v2729_v55 = vadd.f32 %v2705_v39, %v2681_v14  ;;  %2742 = vst.msk [vmem:[%s6077_s10] sm:$0xff] %vm2741_vm1, %v2717_v24  ;;  %v2022_v3 = vmul.f32 0.020408163, %v1954_v2  ;;  %v5346_v5 = vsub.f32 %v5138_v57, %v2024_v27  ;;  %v2696_v56 = vmul.f32 0.1, %v2024_v27 }
 0x2e5   :  { %v1996_v42 = vpop.xlane.xlu0 %1995  ;;  %v2675_v14 = vmul.f32 0.9, %v2651_v31  ;;  %v2081_v24 = vmul.f32 %v5352_v1, %v5352_v1 }
 0x2e6   :  { %2754 = vst.msk [vmem:[%s6077_s10 + $0x60] sm:$0xff] %vm2741_vm1, %v2729_v55  ;;  %v2694_v57 = vmul.f32 0.1, %v2022_v3  ;;  %v2720_v41 = vadd.f32 %v2696_v56, %v2672_v23  ;;  %2136 = vadd.xlane.f32.xlu1 %v2135_v54  ;;  %v2036_v33 = vmul.f32 0.020408163, %v1996_v42  ;;  %v5365_v48 = vsub.f32 %v5144_v35, %v2022_v3  ;;  %v2663_v35 = vld [vmem:[%s6076_s7 + $0x90] sm:$0xff] }
 0x2e7   :  { %v1969_v9 = vpop.xlane.xlu1 %1968  ;;  %v2072_v28 = vmul.f32 %v5346_v5, %v5346_v5  ;;  %v2093_v23 = vsel %vm1948_vm0, %v2069_v58, 0.0  ;;  %v2687_v2 = vmul.f32 0.9, %v2663_v35  ;;  %v2676_v56 = vmul.f32 0.9, %v2652_v51  ;;  %v2664_v58 = vld [vmem:[%s6076_s7 + $0x98] sm:$0xff] }
 0x2e8   :  { %v2718_v43 = vadd.f32 %v2694_v57, %v2670_v49  ;;  %2745 = vst.msk [vmem:[%s6077_s10 + $0x18] sm:$0xff] %vm2741_vm1, %v2720_v41  ;;  %v2027_v34 = vmul.f32 0.020408163, %v1969_v9  ;;  %v5374_v12 = vsub.f32 %v5151_v61, %v2036_v33  ;;  %v2708_v59 = vmul.f32 0.1, %v2036_v33  ;;  %v2661_v35 = vld [vmem:[%s6076_s7 + $0x80] sm:$0xff] }
 0x2e9   :  { %v2102_v26 = vsel %vm1948_vm0, %v2072_v28, 0.0  ;;  %v1990_v39 = vpop.xlane.xlu0 %1989  ;;  %v2070_v42 = vmul.f32 %v5365_v48, %v5365_v48  ;;  %v2129_v41 = vsel %vm1948_vm0, %v2081_v24, 0.0  ;;  %v2688_v51 = vmul.f32 0.9, %v2664_v58 }
 0x2ea   :  { %2743 = vst.msk [vmem:[%s6077_s10 + $0x8] sm:$0xff] %vm2741_vm1, %v2718_v43  ;;  %v5391_v61 = vsub.f32 %v5160_v21, %v2027_v34  ;;  %v2699_v27 = vmul.f32 0.1, %v2027_v34  ;;  %v2732_v7 = vadd.f32 %v2708_v59, %v2684_v50  ;;  %2094 = vadd.xlane.f32.xlu1 %v2093_v23  ;;  %2103 = vadd.xlane.f32.xlu0 %v2102_v26  ;;  %v2034_v49 = vmul.f32 0.020408163, %v1990_v39  ;;  %v2649_v50 = vld [vmem:[%s6076_s7 + $0x20] sm:$0xff] }
 0x2eb   :  { %v2005_v55 = vpop.xlane.xlu1 %2004  ;;  %v2084_v3 = vmul.f32 %v5374_v12, %v5374_v12  ;;  %v2673_v34 = vmul.f32 0.9, %v2649_v50  ;;  %v2650_v39 = vld [vmem:[%s6076_s7 + $0x28] sm:$0xff] }
 0x2ec   :  { %v2723_v31 = vadd.f32 %v2699_v27, %v2675_v14  ;;  %2757 = vst.msk [vmem:[%s6077_s10 + $0x78] sm:$0xff] %vm2741_vm1, %v2732_v7  ;;  %v2039_v54 = vmul.f32 0.020408163, %v2005_v55  ;;  %v2706_v21 = vmul.f32 0.1, %v2034_v49  ;;  %v5408_v57 = vsub.f32 %v5166_v13, %v2034_v49 }
 0x2ed   :  { %v2138_v33 = vsel %vm1948_vm0, %v2084_v3, 0.0  ;;  %v1972_v45 = vpop.xlane.xlu0 %1971  ;;  %v2075_v14 = vmul.f32 %v5391_v61, %v5391_v61  ;;  %v2674_v50 = vmul.f32 0.9, %v2650_v39 }
 0x2ee   :  { %2748 = vst.msk [vmem:[%s6077_s10 + $0x30] sm:$0xff] %vm2741_vm1, %v2723_v31  ;;  %v5419_v9 = vsub.f32 %v5171_v60, %v2039_v54  ;;  %v2711_v28 = vmul.f32 0.1, %v2039_v54  ;;  %v2730_v43 = vadd.f32 %v2706_v21, %v2682_v4  ;;  %2130 = vadd.xlane.f32.xlu1 %v2129_v41  ;;  %2139 = vadd.xlane.f32.xlu0 %v2138_v33  ;;  %v2028_v13 = vmul.f32 0.020408163, %v1972_v45  ;;  %v2662_v33 = vld [vmem:[%s6076_s7 + $0x88] sm:$0xff] }
 0x2ef   :  { %v1963_v59 = vpop.xlane.xlu1 %1962  ;;  %v2096_v4 = vsel %vm1948_vm0, %v2070_v42, 0.0  ;;  %v2111_v27 = vsel %vm1948_vm0, %v2075_v14, 0.0  ;;  %v2685_v54 = vmul.f32 0.9, %v2661_v35 }
 0x2f0   :  { %v2735_v23 = vadd.f32 %v2711_v28, %v2687_v2  ;;  %2755 = vst.msk [vmem:[%s6077_s10 + $0x68] sm:$0xff] %vm2741_vm1, %v2730_v43  ;;  %v2025_v60 = vmul.f32 0.020408163, %v1963_v59  ;;  %v2700_v26 = vmul.f32 0.1, %v2028_v13  ;;  %v5433_v24 = vsub.f32 %v5179_v19, %v2028_v13 }
 0x2f1   :  { %v2008_v7 = vpop.xlane.xlu0 %2007  ;;  %v2087_v49 = vmul.f32 %v5419_v9, %v5419_v9  ;;  %v2082_v2 = vmul.f32 %v5408_v57, %v5408_v57 }
 0x2f2   :  { %2760 = vst.msk [vmem:[%s6077_s10 + $0x90] sm:$0xff] %vm2741_vm1, %v2735_v23  ;;  %v5445_v55 = vsub.f32 %v5188_v8, %v2025_v60  ;;  %v2697_v3 = vmul.f32 0.1, %v2025_v60  ;;  %v2724_v19 = vadd.f32 %v2700_v26, %v2676_v56  ;;  %2112 = vadd.xlane.f32.xlu1 %v2111_v27  ;;  %2097 = vadd.xlane.f32.xlu0 %v2096_v4  ;;  %v2040_v31 = vmul.f32 0.020408163, %v2008_v7  ;;  %v2655_v56 = vld [vmem:[%s6076_s7 + $0x50] sm:$0xff] }
 0x2f3   :  { %v1999_v21 = vpop.xlane.xlu1 %1998  ;;  %v2147_v45 = vsel %vm1948_vm0, %v2087_v49, 0.0  ;;  %v2132_v14 = vsel %vm1948_vm0, %v2082_v2, 0.0  ;;  %v2679_v23 = vmul.f32 0.9, %v2655_v56  ;;  %v2686_v26 = vmul.f32 0.9, %v2662_v33 }
 0x2f4   :  { %v2721_v42 = vadd.f32 %v2697_v3, %v2673_v34  ;;  %2749 = vst.msk [vmem:[%s6077_s10 + $0x38] sm:$0xff] %vm2741_vm1, %v2724_v19  ;;  %v2037_v58 = vmul.f32 0.020408163, %v1999_v21  ;;  %v5452_v41 = vsub.f32 %v5194_v18, %v2040_v31  ;;  %v2712_v8 = vmul.f32 0.1, %v2040_v31  ;;  %v2656_v7 = vld [vmem:[%s6076_s7 + $0x58] sm:$0xff] }
 0x2f5   :  { %v1966_v28 = vpop.xlane.xlu0 %1965  ;;  %v2073_v43 = vmul.f32 %v5445_v55, %v5445_v55  ;;  %v2076_v18 = vmul.f32 %v5433_v24, %v5433_v24  ;;  %v2653_v56 = vld [vmem:[%s6076_s7 + $0x40] sm:$0xff]  ;;  %v2680_v33 = vmul.f32 0.9, %v2656_v7 }
 0x2f6   :  { %2746 = vst.msk [vmem:[%s6077_s10 + $0x20] sm:$0xff] %vm2741_vm1, %v2721_v42  ;;  %v5471_v13 = vsub.f32 %v5199_v15, %v2037_v58  ;;  %v2709_v34 = vmul.f32 0.1, %v2037_v58  ;;  %v2736_v59 = vadd.f32 %v2712_v8, %v2688_v51  ;;  %2148 = vadd.xlane.f32.xlu1 %v2147_v45  ;;  %2133 = vadd.xlane.f32.xlu0 %v2132_v14  ;;  %v2026_v35 = vmul.f32 0.020408163, %v1966_v28  ;;  %v2667_v15 = vld [vmem:[%s6076_s7 + $0xb0] sm:$0xff] }
 0x2f7   :  { %v1981_v60 = vpop.xlane.xlu1 %1980  ;;  %v2088_v51 = vmul.f32 %v5452_v41, %v5452_v41  ;;  %v2105_v2 = vsel %vm1948_vm0, %v2073_v43, 0.0  ;;  %v2114_v3 = vsel %vm1948_vm0, %v2076_v18, 0.0  ;;  %v2691_v58 = vmul.f32 0.9, %v2667_v15  ;;  %v2668_v28 = vld [vmem:[%s6076_s7 + $0xb8] sm:$0xff] }
 0x2f8   :  { %v2733_v4 = vadd.f32 %v2709_v34, %v2685_v54  ;;  %2761 = vst.msk [vmem:[%s6077_s10 + $0x98] sm:$0xff] %vm2741_vm1, %v2736_v59  ;;  %v2031_v39 = vmul.f32 0.020408163, %v1981_v60  ;;  %v2698_v27 = vmul.f32 0.1, %v2026_v35  ;;  %v5486_v49 = vsub.f32 %v5207_v47, %v2026_v35 }
 0x2f9   :  { %v2002_v19 = vpop.xlane.xlu0 %2001  ;;  %v2085_v31 = vmul.f32 %v5471_v13, %v5471_v13  ;;  %v2692_v15 = vmul.f32 0.9, %v2668_v28 }
 0x2fa   :  { %2758 = vst.msk [vmem:[%s6077_s10 + $0x80] sm:$0xff] %vm2741_vm1, %v2733_v4  ;;  %v5497_v54 = vsub.f32 %v5216_v20, %v2031_v39  ;;  %v2703_v21 = vmul.f32 0.1, %v2031_v39  ;;  %v2722_v42 = vadd.f32 %v2698_v27, %v2674_v50  ;;  %2106 = vadd.xlane.f32.xlu1 %v2105_v2  ;;  %2115 = vadd.xlane.f32.xlu0 %v2114_v3  ;;  %v2038_v47 = vmul.f32 0.020408163, %v2002_v19  ;;  %v2654_v3 = vld [vmem:[%s6076_s7 + $0x48] sm:$0xff] }
 0x2fb   :  { %v2017_v8 = vpop.xlane.xlu1 %2016  ;;  %v2150_v50 = vsel %vm1948_vm0, %v2088_v51, 0.0  ;;  %v2141_v18 = vsel %vm1948_vm0, %v2085_v31, 0.0  ;;  %v2074_v35 = vmul.f32 %v5486_v49, %v5486_v49  ;;  %v2677_v39 = vmul.f32 0.9, %v2653_v56 }
 0x2fc   :  { %v2727_v45 = vadd.f32 %v2703_v21, %v2679_v23  ;;  %2747 = vst.msk [vmem:[%s6077_s10 + $0x28] sm:$0xff] %vm2741_vm1, %v2722_v42  ;;  %v2043_v20 = vmul.f32 0.020408163, %v2017_v8  ;;  %v2710_v14 = vmul.f32 0.1, %v2038_v47  ;;  %v5511_v43 = vsub.f32 %v5222_v6, %v2038_v47 }
 0x2fd   :  { %v1984_v34 = vpop.xlane.xlu0 %1983  ;;  %v2079_v59 = vmul.f32 %v5497_v54, %v5497_v54  ;;  %v2108_v31 = vsel %vm1948_vm0, %v2074_v35, 0.0 }
 0x2fe   :  { %2752 = vst.msk [vmem:[%s6077_s10 + $0x50] sm:$0xff] %vm2741_vm1, %v2727_v45  ;;  %v5523_v23 = vsub.f32 %v5227_v11, %v2043_v20  ;;  %v2715_v60 = vmul.f32 0.1, %v2043_v20  ;;  %v2734_v6 = vadd.f32 %v2710_v14, %v2686_v26  ;;  %2142 = vadd.xlane.f32.xlu1 %v2141_v18  ;;  %2151 = vadd.xlane.f32.xlu0 %v2150_v50  ;;  %v2032_v4 = vmul.f32 0.020408163, %v1984_v34  ;;  %v2665_v26 = vld [vmem:[%s6076_s7 + $0xa0] sm:$0xff] }
 0x2ff   :  { %v1975_v27 = vpop.xlane.xlu1 %1974  ;;  %v2123_v19 = vsel %vm1948_vm0, %v2079_v59, 0.0  ;;  %v2689_v45 = vmul.f32 0.9, %v2665_v26  ;;  %v2678_v14 = vmul.f32 0.9, %v2654_v3 }
 0x300   :  { %v2739_v51 = vadd.f32 %v2715_v60, %v2691_v58  ;;  %2759 = vst.msk [vmem:[%s6077_s10 + $0x88] sm:$0xff] %vm2741_vm1, %v2734_v6  ;;  %v2029_v7 = vmul.f32 0.020408163, %v1975_v27  ;;  %v5530_v2 = vsub.f32 %v5235_v44, %v2032_v4  ;;  %v2704_v11 = vmul.f32 0.1, %v2032_v4  ;;  %v2666_v27 = vld [vmem:[%s6076_s7 + $0xa8] sm:$0xff] }
 0x301   :  { %v2020_v21 = vpop.xlane.xlu0 %2019  ;;  %v2091_v42 = vmul.f32 %v5523_v23, %v5523_v23  ;;  %v2086_v44 = vmul.f32 %v5511_v43, %v5511_v43 }
 0x302   :  { %2764 = vst.msk [vmem:[%s6077_s10 + $0xb0] sm:$0xff] %vm2741_vm1, %v2739_v51  ;;  %v5549_v47 = vsub.f32 %v5244_v40, %v2029_v7  ;;  %v2701_v58 = vmul.f32 0.1, %v2029_v7  ;;  %v2728_v8 = vadd.f32 %v2704_v11, %v2680_v33  ;;  %2124 = vadd.xlane.f32.xlu1 %v2123_v19  ;;  %2109 = vadd.xlane.f32.xlu0 %v2108_v31  ;;  %v2044_v56 = vmul.f32 0.020408163, %v2020_v21 }
 0x303   :  { %v2011_v20 = vpop.xlane.xlu1 %2010  ;;  %v2080_v40 = vmul.f32 %v5530_v2, %v5530_v2  ;;  %v2159_v33 = vsel %vm1948_vm0, %v2091_v42, 0.0  ;;  %v2144_v59 = vsel %vm1948_vm0, %v2086_v44, 0.0  ;;  %v2690_v21 = vmul.f32 0.9, %v2666_v27  ;;  %v2768_v27 = vld [vmem:[%s6078_s8 + $0x10] sm:$0xff] }
 0x304   :  { %v2725_v50 = vadd.f32 %v2701_v58, %v2677_v39  ;;  %2753 = vst.msk [vmem:[%s6077_s10 + $0x58] sm:$0xff] %vm2741_vm1, %v2728_v8  ;;  %v2041_v28 = vmul.f32 0.020408163, %v2011_v20  ;;  %v2716_v18 = vmul.f32 0.1, %v2044_v56  ;;  %v5558_v34 = vsub.f32 %v5248_v53, %v2044_v56 }
 0x305   :  { %v1978_v35 = vpop.xlane.xlu0 %1977  ;;  %v2077_v60 = vmul.f32 %v5549_v47, %v5549_v47  ;;  %v2126_v11 = vsel %vm1948_vm0, %v2080_v40, 0.0  ;;  %v2448_v40 = vld [vmem:[%s6071_s6 + $0x98] sm:$0xff] }
 0x306   :  { %6118 = vst [vmem:[#allocation17_spill] sm:$0xff] %v5558_v34  ;;  %2750 = vst.msk [vmem:[%s6077_s10 + $0x40] sm:$0xff] %vm2741_vm1, %v2725_v50  ;;  %v5569_v6 = vsub.f32 %v5253_v37, %v2041_v28  ;;  %v2713_v4 = vmul.f32 0.1, %v2041_v28  ;;  %v2740_v39 = vadd.f32 %v2716_v18, %v2692_v15  ;;  %2160 = vadd.xlane.f32.xlu1 %v2159_v33  ;;  %2145 = vadd.xlane.f32.xlu0 %v2144_v59  ;;  %v2442_v50 = vld [vmem:[%s6071_s6 + $0x68] sm:$0xff]  ;;  %v2444_v28 = vld [vmem:[%s6071_s6 + $0x78] sm:$0xff] }
 0x307   :  { %v2030_v53 = vmul.f32 0.020408163, %v1978_v35  ;;  %v2117_v15 = vsel %vm1948_vm0, %v2077_v60, 0.0  ;;  %v2092_v19 = vmul.f32 %v5558_v34, %v5558_v34  ;;  %v2446_v18 = vld [vmem:[%s6071_s6 + $0x88] sm:$0xff]  ;;  %v2441_v33 = vld [vmem:[%s6071_s6 + $0x60] sm:$0xff]  ;;  %v2443_v35 = vld [vmem:[%s6071_s6 + $0x70] sm:$0xff] }
 0x308   :  { %v2737_v51 = vadd.f32 %v2713_v4, %v2689_v45  ;;  %2765 = vst.msk [vmem:[%s6077_s10 + $0xb8] sm:$0xff] %vm2741_vm1, %v2740_v39  ;;  %v2089_v3 = vmul.f32 %v5569_v6, %v5569_v6  ;;  %v2450_v59 = vld [vmem:[%s6071_s6 + $0xa8] sm:$0xff]  ;;  %v2445_v60 = vld [vmem:[%s6071_s6 + $0x80] sm:$0xff]  ;;  %v2447_v4 = vld [vmem:[%s6071_s6 + $0x90] sm:$0xff] }
 0x309   :  { %v2702_v7 = vmul.f32 0.1, %v2030_v53  ;;  %v5580_v37 = vsub.f32 %v5260_v16, %v2030_v53  ;;  %v2014_v26 = vpop.xlane.xlu0 %2013  ;;  %v2162_v8 = vsel %vm1948_vm0, %v2092_v19, 0.0  ;;  %v2449_v39 = vld [vmem:[%s6071_s6 + $0xa0] sm:$0xff]  ;;  %v5640_v53 = vpop.permute.xlu1 %2510 }
 0x30a   :  { %2762 = vst.msk [vmem:[%s6077_s10 + $0xa0] sm:$0xff] %vm2741_vm1, %v2737_v51  ;;  %2118 = vadd.xlane.f32.xlu1 %v2117_v15  ;;  %2127 = vadd.xlane.f32.xlu0 %v2126_v11  ;;  %v2042_v16 = vmul.f32 0.020408163, %v2014_v26  ;;  %v2153_v58 = vsel %vm1948_vm0, %v2089_v3, 0.0  ;;  %v2792_v11 = vmul.f32 0.9, %v2768_v27 }
 0x30b   :  { %v2726_v31 = vadd.f32 %v2702_v7, %v2678_v14  ;;  %v2078_v56 = vmul.f32 %v5580_v37, %v5580_v37  ;;  %v2780_v3 = vld [vmem:[%s6078_s8 + $0x70] sm:$0xff]  ;;  %v2766_v19 = vld [vmem:[%s6078_s8] sm:$0xff] }
 0x30c   :  { %v2714_v42 = vmul.f32 0.1, %v2042_v16  ;;  %v5596_v44 = vsub.f32 %v5266_v0, %v2042_v16 }
 0x30d   :  { %2751 = vst.msk [vmem:[%s6077_s10 + $0x48] sm:$0xff] %vm2741_vm1, %v2726_v31  ;;  %v2120_v20 = vsel %vm1948_vm0, %v2078_v56, 0.0  ;;  %v2804_v56 = vmul.f32 0.9, %v2780_v3 }
 0x30e   :  { %6119 = vst [vmem:[#allocation7_spill] sm:$0xff] %v5596_v44  ;;  %v2738_v45 = vadd.f32 %v2714_v42, %v2690_v21  ;;  %2154 = vadd.xlane.f32.xlu1 %v2153_v58  ;;  %2163 = vadd.xlane.f32.xlu0 %v2162_v8  ;;  %v2090_v0 = vmul.f32 %v5596_v44, %v5596_v44  ;;  %v2769_v58 = vld [vmem:[%s6078_s8 + $0x18] sm:$0xff]  ;;  %v2778_v8 = vld [vmem:[%s6078_s8 + $0x60] sm:$0xff] }
 0x310   :  { %2763 = vst.msk [vmem:[%s6077_s10 + $0xa8] sm:$0xff] %vm2741_vm1, %v2738_v45  ;;  %v2156_v14 = vsel %vm1948_vm0, %v2090_v0, 0.0  ;;  %v2790_v45 = vmul.f32 0.9, %v2766_v19 }
 0x311   :  { %v5651_v31 = vpop.permute.xlu0 %2505 }
 0x312   :  { %2121 = vadd.xlane.f32.xlu0 %v2120_v20 }
 0x316   :  { %2157 = vadd.xlane.f32.xlu0 %v2156_v14 }
 0x31f   :  { %2520 = vperm.xlu1 %3338, %v2442_v50   ;;  %v2781_v50 = vld [vmem:[%s6078_s8 + $0x78] sm:$0xff] }
 0x320   :  { %v2805_v27 = vmul.f32 0.9, %v2781_v50  ;;  %v2770_v50 = vld [vmem:[%s6078_s8 + $0x20] sm:$0xff] }
 0x323   :  { %2530 = vperm.xlu1 %3338, %v2444_v28   ;;  %v2772_v28 = vld [vmem:[%s6078_s8 + $0x30] sm:$0xff] }
 0x327   :  { %2540 = vperm.xlu1 %3338, %v2446_v18  }
 0x32b   :  { %2550 = vperm.xlu1 %3338, %v2448_v40   ;;  %v2793_v40 = vmul.f32 0.9, %v2769_v58  ;;  %v2779_v58 = vld [vmem:[%s6078_s8 + $0x68] sm:$0xff] }
 0x32c   :  { %2515 = vperm.xlu0 %3337, %v2441_v33  }
 0x32f   :  { %2560 = vperm.xlu1 %3338, %v2450_v59   ;;  %v2802_v59 = vmul.f32 0.9, %v2778_v8 }
 0x330   :  { %2525 = vperm.xlu0 %3337, %v2443_v35   ;;  %v2767_v35 = vld [vmem:[%s6078_s8 + $0x8] sm:$0xff] }
 0x334   :  { %2535 = vperm.xlu0 %3337, %v2445_v60  }
 0x338   :  { %2545 = vperm.xlu0 %3337, %v2447_v4  }
 0x33c   :  { %2555 = vperm.xlu0 %3337, %v2449_v39  }
 0x36b   :  { %v2101_v51 = vpop.xlane.xlu1 %2100 }
 0x36c   :  { %v2167_v7 = vmul.f32 0.020408163, %v2101_v51  ;;  %v5672_v51 = vmul.f32 0.9, %v2772_v28 }
 0x36e   :  { %v2215_v15 = vadd.f32 1e-05, %v2167_v7  ;;  %v2623_v26 = vmul.f32 1.0208334, %v2167_v7  ;;  %v2784_v7 = vld [vmem:[%s6078_s8 + $0x90] sm:$0xff] }
 0x36f   :  { %v2137_v21 = vpop.xlane.xlu1 %2136 }
 0x370   :  { %3375 = vrsqrt.f32 %v2215_v15  ;;  %v2816_v16 = vmul.f32 0.1, %v2623_v26  ;;  %v2179_v42 = vmul.f32 0.020408163, %v2137_v21 }
 0x372   :  { %v2840_v20 = vadd.f32 %v2816_v16, %v2792_v11  ;;  %v2227_v0 = vadd.f32 1e-05, %v2179_v42  ;;  %v2635_v14 = vmul.f32 1.0208334, %v2179_v42  ;;  %v2791_v42 = vmul.f32 0.9, %v2767_v35 }
 0x373   :  { %v2095_v18 = vpop.xlane.xlu1 %2094  ;;  %v2104_v33 = vpop.xlane.xlu0 %2103 }
 0x374   :  { %2864 = vst.msk [vmem:[%s6079_s11 + $0x10] sm:$0xff] %vm2741_vm1, %v2840_v20  ;;  %3377 = vrsqrt.f32 %v2227_v0  ;;  %v2828_v60 = vmul.f32 0.1, %v2635_v14  ;;  %v2165_v4 = vmul.f32 0.020408163, %v2095_v18 }
 0x375   :  { %v2168_v39 = vmul.f32 0.020408163, %v2104_v33  ;;  %v5684_v14 = vmul.f32 0.9, %v2784_v7  ;;  %v2773_v7 = vld [vmem:[%s6078_s8 + $0x38] sm:$0xff] }
 0x376   :  { %v2852_v11 = vadd.f32 %v2828_v60, %v2804_v56  ;;  %v2213_v15 = vadd.f32 1e-05, %v2165_v4  ;;  %v2621_v26 = vmul.f32 1.0208334, %v2165_v4  ;;  %v5710_v34 = vmul.f32 0.9, %v2773_v7 }
 0x377   :  { %v2216_v3 = vadd.f32 1e-05, %v2168_v39  ;;  %v2624_v19 = vmul.f32 1.0208334, %v2168_v39  ;;  %v2131_v21 = vpop.xlane.xlu1 %2130  ;;  %v2140_v16 = vpop.xlane.xlu0 %2139 }
 0x378   :  { %2876 = vst.msk [vmem:[%s6079_s11 + $0x70] sm:$0xff] %vm2741_vm1, %v2852_v11  ;;  %3379 = vrsqrt.f32 %v2213_v15  ;;  %v2814_v8 = vmul.f32 0.1, %v2621_v26  ;;  %v2177_v20 = vmul.f32 0.020408163, %v2131_v21  ;;  %v2191_v26 = vld [vmem:[%s6080_s5 + $0x10] sm:$0xff] }
 0x379   :  { %v2180_v56 = vmul.f32 0.020408163, %v2140_v16  ;;  %3381 = vrsqrt.f32 %v2216_v3  ;;  %v2817_v0 = vmul.f32 0.1, %v2624_v19  ;;  %v5689_v15 = vmul.f32 0.9, %v2779_v58 }
 0x37a   :  { %v2838_v28 = vadd.f32 %v2814_v8, %v2790_v45  ;;  %v2225_v18 = vadd.f32 1e-05, %v2177_v20  ;;  %v2633_v33 = vmul.f32 1.0208334, %v2177_v20  ;;  %v5705_v16 = vmul.f32 0.9, %v2770_v50 }
 0x37b   :  { %v2228_v35 = vadd.f32 1e-05, %v2180_v56  ;;  %v2841_v60 = vadd.f32 %v2817_v0, %v2793_v40  ;;  %v2636_v4 = vmul.f32 1.0208334, %v2180_v56  ;;  %v2113_v39 = vpop.xlane.xlu1 %2112  ;;  %v2098_v11 = vpop.xlane.xlu0 %2097  ;;  %v2782_v58 = vld [vmem:[%s6078_s8 + $0x80] sm:$0xff]  ;;  %v2203_v50 = vld [vmem:[%s6080_s5 + $0x70] sm:$0xff] }
 0x37c   :  { %2862 = vst.msk [vmem:[%s6079_s11] sm:$0xff] %vm2741_vm1, %v2838_v28  ;;  %3383 = vrsqrt.f32 %v2225_v18  ;;  %v2826_v45 = vmul.f32 0.1, %v2633_v33  ;;  %v2171_v40 = vmul.f32 0.020408163, %v2113_v39 }
 0x37d   :  { %v2166_v3 = vmul.f32 0.020408163, %v2098_v11  ;;  %v3376_v19 = vpop.eup %3375  ;;  %2865 = vst.msk [vmem:[%s6079_s11 + $0x18] sm:$0xff] %vm2741_vm1, %v2841_v60  ;;  %3385 = vrsqrt.f32 %v2228_v35  ;;  %v2829_v21 = vmul.f32 0.1, %v2636_v4  ;;  %v2785_v35 = vld [vmem:[%s6078_s8 + $0x98] sm:$0xff] }
 0x37e   :  { %v2850_v8 = vadd.f32 %v2826_v45, %v2802_v59  ;;  %v2219_v20 = vadd.f32 1e-05, %v2171_v40  ;;  %v2627_v56 = vmul.f32 1.0208334, %v2171_v40  ;;  %v2263_v11 = vmul.f32 %v3376_v19, %v2191_v26  ;;  %v2776_v45 = vld [vmem:[%s6078_s8 + $0x50] sm:$0xff] }
 0x37f   :  { %v2214_v0 = vadd.f32 1e-05, %v2166_v3  ;;  %v2853_v28 = vadd.f32 %v2829_v21, %v2805_v27  ;;  %v2622_v18 = vmul.f32 1.0208334, %v2166_v3  ;;  %v2149_v33 = vpop.xlane.xlu1 %2148  ;;  %v2134_v39 = vpop.xlane.xlu0 %2133  ;;  %v5726_v7 = vmul.f32 0.9, %v2782_v58 }
 0x380   :  { %2874 = vst.msk [vmem:[%s6079_s11 + $0x60] sm:$0xff] %vm2741_vm1, %v2850_v8  ;;  %3387 = vrsqrt.f32 %v2219_v20  ;;  %v2820_v59 = vmul.f32 0.1, %v2627_v56  ;;  %v2183_v27 = vmul.f32 0.020408163, %v2149_v33  ;;  %2297 = vperm.xlu1 %3338, %v2263_v11   ;;  %v2189_v58 = vld [vmem:[%s6080_s5] sm:$0xff] }
 0x381   :  { %v2178_v60 = vmul.f32 0.020408163, %v2134_v39  ;;  %v3378_v4 = vpop.eup %3377  ;;  %2877 = vst.msk [vmem:[%s6079_s11 + $0x78] sm:$0xff] %vm2741_vm1, %v2853_v28  ;;  %3389 = vrsqrt.f32 %v2214_v0  ;;  %v2815_v26 = vmul.f32 0.1, %v2622_v18  ;;  %v2771_v0 = vld [vmem:[%s6078_s8 + $0x28] sm:$0xff] }
 0x382   :  { %v2844_v40 = vadd.f32 %v2820_v59, %v5672_v51  ;;  %v2231_v3 = vadd.f32 1e-05, %v2183_v27  ;;  %v2639_v19 = vmul.f32 1.0208334, %v2183_v27  ;;  %v2275_v39 = vmul.f32 %v3378_v4, %v2203_v50  ;;  %v2788_v59 = vld [vmem:[%s6078_s8 + $0xb0] sm:$0xff]  ;;  %v2783_v27 = vld [vmem:[%s6078_s8 + $0x88] sm:$0xff] }
 0x383   :  { %v2226_v21 = vadd.f32 1e-05, %v2178_v60  ;;  %v2839_v8 = vadd.f32 %v2815_v26, %v2791_v42  ;;  %v2634_v20 = vmul.f32 1.0208334, %v2178_v60  ;;  %v2107_v56 = vpop.xlane.xlu1 %2106  ;;  %v2116_v33 = vpop.xlane.xlu0 %2115  ;;  %v5732_v28 = vmul.f32 0.9, %v2785_v35 }
 0x384   :  { %2868 = vst.msk [vmem:[%s6079_s11 + $0x30] sm:$0xff] %vm2741_vm1, %v2844_v40  ;;  %3391 = vrsqrt.f32 %v2231_v3  ;;  %v2832_v51 = vmul.f32 0.1, %v2639_v19  ;;  %v2169_v42 = vmul.f32 0.020408163, %v2107_v56  ;;  %2357 = vperm.xlu0 %3337, %v2275_v39   ;;  %v2192_v39 = vld [vmem:[%s6080_s5 + $0x18] sm:$0xff] }
 0x385   :  { %v2172_v18 = vmul.f32 0.020408163, %v2116_v33  ;;  %v3380_v11 = vpop.eup %3379  ;;  %2863 = vst.msk [vmem:[%s6079_s11 + $0x8] sm:$0xff] %vm2741_vm1, %v2839_v8  ;;  %3393 = vrsqrt.f32 %v2226_v21  ;;  %v2827_v50 = vmul.f32 0.1, %v2634_v20  ;;  %v2201_v33 = vld [vmem:[%s6080_s5 + $0x60] sm:$0xff] }
 0x386   :  { %v5748_v35 = vmul.f32 0.9, %v2776_v45  ;;  %v3382_v60 = vpop.eup %3381  ;;  %v2856_v4 = vadd.f32 %v2832_v51, %v5684_v14  ;;  %v2217_v26 = vadd.f32 1e-05, %v2169_v42  ;;  %v2625_v40 = vmul.f32 1.0208334, %v2169_v42 }
 0x387   :  { %v2220_v3 = vadd.f32 1e-05, %v2172_v18  ;;  %v2851_v19 = vadd.f32 %v2827_v50, %v5689_v15  ;;  %v2628_v21 = vmul.f32 1.0208334, %v2172_v18  ;;  %v2143_v8 = vpop.xlane.xlu1 %2142  ;;  %v2152_v45 = vpop.xlane.xlu0 %2151  ;;  %v2261_v20 = vmul.f32 %v3380_v11, %v2189_v58 }
 0x388   :  { %v5758_v56 = vmul.f32 0.9, %v2771_v0  ;;  %2880 = vst.msk [vmem:[%s6079_s11 + $0x90] sm:$0xff] %vm2741_vm1, %v2856_v4  ;;  %3395 = vrsqrt.f32 %v2217_v26  ;;  %v2818_v14 = vmul.f32 0.1, %v2625_v40  ;;  %v2264_v40 = vmul.f32 %v3382_v60, %v2192_v39 }
 0x389   :  { %v2181_v15 = vmul.f32 0.020408163, %v2143_v8  ;;  %v2184_v51 = vmul.f32 0.020408163, %v2152_v45  ;;  %v3384_v58 = vpop.eup %3383  ;;  %2875 = vst.msk [vmem:[%s6079_s11 + $0x68] sm:$0xff] %vm2741_vm1, %v2851_v19  ;;  %3397 = vrsqrt.f32 %v2220_v3  ;;  %2287 = vperm.xlu1 %3338, %v2261_v20   ;;  %v2204_v8 = vld [vmem:[%s6080_s5 + $0x78] sm:$0xff] }
 0x38a   :  { %v2821_v0 = vmul.f32 0.1, %v2628_v21  ;;  %v5774_v42 = vmul.f32 0.9, %v2788_v59  ;;  %v5776_v18 = vmul.f32 0.9, %v2783_v27  ;;  %v3386_v11 = vpop.eup %3385  ;;  %v2842_v50 = vadd.f32 %v2818_v14, %v5705_v16 }
 0x38b   :  { %v2637_v4 = vmul.f32 1.0208334, %v2181_v15  ;;  %v2232_v26 = vadd.f32 1e-05, %v2184_v51  ;;  %v2774_v3 = vld [vmem:[%s6078_s8 + $0x40] sm:$0xff]  ;;  %v2125_v27 = vpop.xlane.xlu1 %2124  ;;  %v2110_v45 = vpop.xlane.xlu0 %2109  ;;  %v2273_v20 = vmul.f32 %v3384_v58, %v2201_v33  ;;  %v2190_v16 = vld [vmem:[%s6080_s5 + $0x8] sm:$0xff]  ;;  %v2276_v33 = vmul.f32 %v3386_v11, %v2204_v8 }
 0x38c   :  { %v2845_v19 = vadd.f32 %v2821_v0, %v5710_v34  ;;  %v2229_v59 = vadd.f32 1e-05, %v2181_v15  ;;  %v2640_v21 = vmul.f32 1.0208334, %v2184_v51  ;;  %2866 = vst.msk [vmem:[%s6079_s11 + $0x20] sm:$0xff] %vm2741_vm1, %v2842_v50  ;;  %v2777_v51 = vld [vmem:[%s6078_s8 + $0x58] sm:$0xff] }
 0x38d   :  { %v2830_v60 = vmul.f32 0.1, %v2637_v4  ;;  %v2175_v39 = vmul.f32 0.020408163, %v2125_v27  ;;  %v2170_v14 = vmul.f32 0.020408163, %v2110_v45  ;;  %v3388_v44 = vpop.eup %3387  ;;  %3399 = vrsqrt.f32 %v2232_v26  ;;  %2347 = vperm.xlu0 %3337, %v2273_v20   ;;  %2302 = vperm.xlu1 %3338, %v2264_v40  }
 0x38e   :  { %2869 = vst.msk [vmem:[%s6079_s11 + $0x38] sm:$0xff] %vm2741_vm1, %v2845_v19  ;;  %v2833_v34 = vmul.f32 0.1, %v2640_v21  ;;  %v5797_v15 = vmul.f32 0.9, %v2774_v3  ;;  %v2195_v58 = vld [vmem:[%s6080_s5 + $0x30] sm:$0xff]  ;;  %v3390_v0 = vpop.eup %3389  ;;  %3401 = vrsqrt.f32 %v2229_v59 }
 0x38f   :  { %v2854_v50 = vadd.f32 %v2830_v60, %v5726_v7  ;;  %v2223_v4 = vadd.f32 1e-05, %v2175_v39  ;;  %v2631_v19 = vmul.f32 1.0208334, %v2175_v39  ;;  %v2218_v26 = vadd.f32 1e-05, %v2170_v14  ;;  %v2161_v8 = vpop.xlane.xlu1 %2160  ;;  %v2146_v3 = vpop.xlane.xlu0 %2145 }
 0x390   :  { %v2857_v40 = vadd.f32 %v2833_v34, %v5732_v28  ;;  %v2626_v11 = vmul.f32 1.0208334, %v2170_v14  ;;  %v2262_v21 = vmul.f32 %v3390_v0, %v2190_v16  ;;  %v2202_v27 = vld [vmem:[%s6080_s5 + $0x68] sm:$0xff]  ;;  %v2187_v45 = vmul.f32 0.020408163, %v2161_v8 }
 0x391   :  { %2878 = vst.msk [vmem:[%s6079_s11 + $0x80] sm:$0xff] %vm2741_vm1, %v2854_v50  ;;  %v2824_v7 = vmul.f32 0.1, %v2631_v19  ;;  %v2182_v20 = vmul.f32 0.020408163, %v2146_v3  ;;  %v3392_v60 = vpop.eup %3391  ;;  %3403 = vrsqrt.f32 %v2218_v26  ;;  %2362 = vperm.xlu1 %3338, %v2276_v33   ;;  %v2267_v16 = vmul.f32 %v3388_v44, %v2195_v58  ;;  %v2786_v50 = vld [vmem:[%s6078_s8 + $0xa0] sm:$0xff] }
 0x392   :  { %2881 = vst.msk [vmem:[%s6079_s11 + $0x98] sm:$0xff] %vm2741_vm1, %v2857_v40  ;;  %v2819_v28 = vmul.f32 0.1, %v2626_v11  ;;  %2292 = vperm.xlu0 %3337, %v2262_v21   ;;  %v2801_v59 = vmul.f32 0.9, %v2777_v51  ;;  %v3394_v39 = vpop.eup %3393  ;;  %3405 = vrsqrt.f32 %v2223_v4  ;;  %v2207_v19 = vld [vmem:[%s6080_s5 + $0x90] sm:$0xff] }
 0x393   :  { %v2848_v14 = vadd.f32 %v2824_v7, %v5748_v35  ;;  %v2643_v34 = vmul.f32 1.0208334, %v2187_v45  ;;  %v2230_v0 = vadd.f32 1e-05, %v2182_v20  ;;  %v2235_v33 = vadd.f32 1e-05, %v2187_v45  ;;  %v2119_v51 = vpop.xlane.xlu1 %2118  ;;  %v2128_v44 = vpop.xlane.xlu0 %2127 }
 0x394   :  { %v2843_v26 = vadd.f32 %v2819_v28, %v5758_v56  ;;  %v2638_v40 = vmul.f32 1.0208334, %v2182_v20  ;;  %v2274_v58 = vmul.f32 %v3394_v39, %v2202_v27  ;;  %v2196_v35 = vld [vmem:[%s6080_s5 + $0x38] sm:$0xff]  ;;  %v2173_v11 = vmul.f32 0.020408163, %v2119_v51  ;;  %v2193_v45 = vld [vmem:[%s6080_s5 + $0x20] sm:$0xff] }
 0x395   :  { %2872 = vst.msk [vmem:[%s6079_s11 + $0x50] sm:$0xff] %vm2741_vm1, %v2848_v14  ;;  %v2836_v4 = vmul.f32 0.1, %v2643_v34  ;;  %v2176_v8 = vmul.f32 0.020408163, %v2128_v44  ;;  %v3396_v3 = vpop.eup %3395  ;;  %3407 = vrsqrt.f32 %v2230_v0  ;;  %v2789_v27 = vld [vmem:[%s6078_s8 + $0xb8] sm:$0xff]  ;;  %v2279_v7 = vmul.f32 %v3392_v60, %v2207_v19 }
 0x396   :  { %2867 = vst.msk [vmem:[%s6079_s11 + $0x28] sm:$0xff] %vm2741_vm1, %v2843_v26  ;;  %v2831_v56 = vmul.f32 0.1, %v2638_v40  ;;  %2317 = vperm.xlu0 %3337, %v2267_v16   ;;  %2352 = vperm.xlu1 %3338, %v2274_v58   ;;  %v2810_v21 = vmul.f32 0.9, %v2786_v50  ;;  %v3398_v20 = vpop.eup %3397  ;;  %3409 = vrsqrt.f32 %v2235_v33  ;;  %v2208_v60 = vld [vmem:[%s6080_s5 + $0x98] sm:$0xff]  ;;  %v2265_v44 = vmul.f32 %v3396_v3, %v2193_v45 }
 0x397   :  { %v2860_v28 = vadd.f32 %v2836_v4, %v5774_v42  ;;  %v2221_v39 = vadd.f32 1e-05, %v2173_v11  ;;  %v2629_v14 = vmul.f32 1.0208334, %v2173_v11  ;;  %v2224_v34 = vadd.f32 1e-05, %v2176_v8  ;;  %v2155_v50 = vpop.xlane.xlu1 %2154  ;;  %v2164_v26 = vpop.xlane.xlu0 %2163 }
 0x398   :  { %v2855_v16 = vadd.f32 %v2831_v56, %v5776_v18  ;;  %v2632_v0 = vmul.f32 1.0208334, %v2176_v8  ;;  %v2268_v40 = vmul.f32 %v3398_v20, %v2196_v35  ;;  %v2185_v19 = vmul.f32 0.020408163, %v2155_v50 }
 0x399   :  { %2884 = vst.msk [vmem:[%s6079_s11 + $0xb0] sm:$0xff] %vm2741_vm1, %v2860_v28  ;;  %v2822_v42 = vmul.f32 0.1, %v2629_v14  ;;  %v2188_v51 = vmul.f32 0.020408163, %v2164_v26  ;;  %3411 = vrsqrt.f32 %v2224_v34  ;;  %v2775_v28 = vld [vmem:[%s6078_s8 + $0x48] sm:$0xff] }
 0x39a   :  { %2879 = vst.msk [vmem:[%s6079_s11 + $0x88] sm:$0xff] %vm2741_vm1, %v2855_v16  ;;  %v2825_v18 = vmul.f32 0.1, %v2632_v0  ;;  %v2813_v33 = vmul.f32 0.9, %v2789_v27  ;;  %2377 = vperm.xlu0 %3337, %v2279_v7   ;;  %2322 = vperm.xlu1 %3338, %v2268_v40   ;;  %v3400_v58 = vpop.eup %3399  ;;  %3413 = vrsqrt.f32 %v2221_v39 }
 0x39b   :  { %v2846_v35 = vadd.f32 %v2822_v42, %v5797_v15  ;;  %v2641_v4 = vmul.f32 1.0208334, %v2185_v19  ;;  %v2236_v11 = vadd.f32 1e-05, %v2188_v51  ;;  %v2233_v56 = vadd.f32 1e-05, %v2185_v19  ;;  %v2122_v14 = vpop.xlane.xlu0 %2121  ;;  %v3402_v16 = vpop.eup %3401 }
 0x39c   :  { %v2849_v8 = vadd.f32 %v2825_v18, %v2801_v59  ;;  %v2644_v20 = vmul.f32 1.0208334, %v2188_v51  ;;  %v2280_v34 = vmul.f32 %v3400_v58, %v2208_v60  ;;  %v2174_v27 = vmul.f32 0.020408163, %v2122_v14  ;;  %v2205_v15 = vld [vmem:[%s6080_s5 + $0x80] sm:$0xff]  ;;  %v2194_v59 = vld [vmem:[%s6080_s5 + $0x28] sm:$0xff] }
 0x39d   :  { %2870 = vst.msk [vmem:[%s6079_s11 + $0x40] sm:$0xff] %vm2741_vm1, %v2846_v35  ;;  %v2834_v3 = vmul.f32 0.1, %v2641_v4  ;;  %3415 = vrsqrt.f32 %v2236_v11  ;;  %v2799_v0 = vmul.f32 0.9, %v2775_v28  ;;  %v2787_v42 = vld [vmem:[%s6078_s8 + $0xa8] sm:$0xff]  ;;  %v2277_v51 = vmul.f32 %v3402_v16, %v2205_v15 }
 0x39e   :  { %2873 = vst.msk [vmem:[%s6079_s11 + $0x58] sm:$0xff] %vm2741_vm1, %v2849_v8  ;;  %v2837_v7 = vmul.f32 0.1, %v2644_v20  ;;  %2307 = vperm.xlu0 %3337, %v2265_v44   ;;  %2382 = vperm.xlu1 %3338, %v2280_v34   ;;  %v3404_v45 = vpop.eup %3403  ;;  %v2222_v50 = vadd.f32 1e-05, %v2174_v27  ;;  %3417 = vrsqrt.f32 %v2233_v56  ;;  %v2199_v58 = vld [vmem:[%s6080_s5 + $0x50] sm:$0xff] }
 0x39f   :  { %v2858_v39 = vadd.f32 %v2834_v3, %v2810_v21  ;;  %v2630_v26 = vmul.f32 1.0208334, %v2174_v27  ;;  %v3406_v40 = vpop.eup %3405  ;;  %v2158_v19 = vpop.xlane.xlu0 %2157  ;;  %v2266_v18 = vmul.f32 %v3404_v45, %v2194_v59  ;;  %v2811_v11 = vmul.f32 0.9, %v2787_v42  ;;  %v2211_v16 = vld [vmem:[%s6080_s5 + $0xb0] sm:$0xff]  ;;  %v2200_v3 = vld [vmem:[%s6080_s5 + $0x58] sm:$0xff] }
 0x3a0   :  { %v2861_v60 = vadd.f32 %v2837_v7, %v2813_v33  ;;  %3419 = vrsqrt.f32 %v2222_v50  ;;  %v2186_v44 = vmul.f32 0.020408163, %v2158_v19  ;;  %v2206_v33 = vld [vmem:[%s6080_s5 + $0x88] sm:$0xff]  ;;  %v2271_v20 = vmul.f32 %v3406_v40, %v2199_v58  ;;  %v2209_v19 = vld [vmem:[%s6080_s5 + $0xa0] sm:$0xff] }
 0x3a1   :  { %2882 = vst.msk [vmem:[%s6079_s11 + $0xa0] sm:$0xff] %vm2741_vm1, %v2858_v39  ;;  %v2823_v21 = vmul.f32 0.1, %v2630_v26  ;;  %v2197_v39 = vld [vmem:[%s6080_s5 + $0x40] sm:$0xff] }
 0x3a2   :  { %2885 = vst.msk [vmem:[%s6079_s11 + $0xb8] sm:$0xff] %vm2741_vm1, %v2861_v60  ;;  %2367 = vperm.xlu0 %3337, %v2277_v51   ;;  %2312 = vperm.xlu1 %3338, %v2266_v18   ;;  %v3408_v35 = vpop.eup %3407  ;;  %v2234_v8 = vadd.f32 1e-05, %v2186_v44  ;;  %v2642_v56 = vmul.f32 1.0208334, %v2186_v44  ;;  %v2198_v60 = vld [vmem:[%s6080_s5 + $0x48] sm:$0xff] }
 0x3a3   :  { %v2847_v4 = vadd.f32 %v2823_v21, %v2799_v0  ;;  %v2278_v28 = vmul.f32 %v3408_v35, %v2206_v33  ;;  %v3410_v14 = vpop.eup %3409  ;;  %v2212_v0 = vld [vmem:[%s6080_s5 + $0xb8] sm:$0xff]  ;;  %v2210_v44 = vld [vmem:[%s6080_s5 + $0xa8] sm:$0xff]  ;;  %v2451_v33 = vld [vmem:[%s6071_s6 + $0xb0] sm:$0xff] }
 0x3a4   :  { %3421 = vrsqrt.f32 %v2234_v8  ;;  %v2835_v34 = vmul.f32 0.1, %v2642_v56  ;;  %v2283_v7 = vmul.f32 %v3410_v14, %v2211_v16 }
 0x3a5   :  { %2871 = vst.msk [vmem:[%s6079_s11 + $0x48] sm:$0xff] %vm2741_vm1, %v2847_v4  ;;  %v2452_v4 = vld [vmem:[%s6071_s6 + $0xb8] sm:$0xff] }
 0x3a6   :  { %2337 = vperm.xlu0 %3337, %v2271_v20   ;;  %2372 = vperm.xlu1 %3338, %v2278_v28   ;;  %v3412_v27 = vpop.eup %3411  ;;  %v2859_v15 = vadd.f32 %v2835_v34, %v2811_v11  ;;  %v2521_v11 = vpop.permute.xlu1 %2520 }
 0x3a7   :  { %v3414_v59 = vpop.eup %3413  ;;  %v2272_v45 = vmul.f32 %v3412_v27, %v2200_v3  ;;  %v2516_v8 = vpop.permute.xlu0 %2515 }
 0x3a8   :  { %2883 = vst.msk [vmem:[%s6079_s11 + $0xa8] sm:$0xff] %vm2741_vm1, %v2859_v15  ;;  %v2269_v26 = vmul.f32 %v3414_v59, %v2197_v39 }
 0x3aa   :  { %2397 = vperm.xlu0 %3337, %v2283_v7   ;;  %2342 = vperm.xlu1 %3338, %v2272_v45   ;;  %v3416_v50 = vpop.eup %3415  ;;  %v2531_v56 = vpop.permute.xlu1 %2530 }
 0x3ab   :  { %v2284_v40 = vmul.f32 %v3416_v50, %v2212_v0  ;;  %v3418_v42 = vpop.eup %3417  ;;  %v2526_v20 = vpop.permute.xlu0 %2525 }
 0x3ac   :  { %v2281_v21 = vmul.f32 %v3418_v42, %v2209_v19 }
 0x3ad   :  { %v3420_v51 = vpop.eup %3419 }
 0x3ae   :  { %2327 = vperm.xlu0 %3337, %v2269_v26   ;;  %2402 = vperm.xlu1 %3338, %v2284_v40   ;;  %v2270_v18 = vmul.f32 %v3420_v51, %v2198_v60  ;;  %v5926_v28 = vpop.permute.xlu1 %2540 }
 0x3af   :  { %v5928_v14 = vpop.permute.xlu0 %2535 }
 0x3b1   :  { %v3422_v58 = vpop.eup %3421 }
 0x3b2   :  { %2387 = vperm.xlu0 %3337, %v2281_v21   ;;  %2332 = vperm.xlu1 %3338, %v2270_v18   ;;  %v2282_v35 = vmul.f32 %v3422_v58, %v2210_v44  ;;  %v2551_v34 = vpop.permute.xlu1 %2550 }
 0x3b3   :  { %v2546_v16 = vpop.permute.xlu0 %2545 }
 0x3b6   :  { %2565 = vperm.xlu0 %3337, %v2451_v33   ;;  %2392 = vperm.xlu1 %3338, %v2282_v35   ;;  %v5930_v3 = vpop.permute.xlu1 %2560 }
 0x3b7   :  { %v5932_v27 = vpop.permute.xlu0 %2555 }
 0x3ba   :  { %2570 = vperm.xlu1 %3338, %v2452_v4  }
 0x3fb   :  { %v2298_v15 = vpop.permute.xlu1 %2297 }
 0x3fc   :  { %v2407_v59 = vmul.f32 %v2298_v15, %v5308_v52 }
 0x3fe   :  { %v2575_v7 = vadd.f32 %v5282_v17, %v2407_v59 }
 0x3ff   :  { %v2358_v45 = vpop.permute.xlu0 %2357 }
 0x400   :  { %2599 = vst.msk [vmem:[%s6081_s9 + $0x10] sm:$0xff] %vm1948_vm0, %v2575_v7  ;;  %v2419_v39 = vmul.f32 %v2358_v45, %v5314_v22 }
 0x402   :  { %v2587_v0 = vadd.f32 %v2526_v20, %v2419_v39 }
 0x404   :  { %v2288_v50 = vpop.permute.xlu1 %2287  ;;  %2611 = vst.msk [vmem:[%s6081_s9 + $0x70] sm:$0xff] %vm1948_vm0, %v2587_v0 }
 0x405   :  { %v2405_v26 = vmul.f32 %v2288_v50, %v5329_v36 }
 0x407   :  { %v2573_v52 = vadd.f32 %v5278_v46, %v2405_v26 }
 0x408   :  { %v2303_v17 = vpop.permute.xlu1 %2302  ;;  %v2348_v40 = vpop.permute.xlu0 %2347 }
 0x409   :  { %2597 = vst.msk [vmem:[%s6081_s9] sm:$0xff] %vm1948_vm0, %v2573_v52  ;;  %v2408_v22 = vmul.f32 %v2303_v17, %v5346_v5  ;;  %v2417_v60 = vmul.f32 %v2348_v40, %v5352_v1 }
 0x40b   :  { %v2576_v42 = vadd.f32 %v5284_v62, %v2408_v22  ;;  %v2585_v19 = vadd.f32 %v2516_v8, %v2417_v60 }
 0x40c   :  { %v2363_v51 = vpop.permute.xlu1 %2362 }
 0x40d   :  { %v2293_v18 = vpop.permute.xlu0 %2292  ;;  %2600 = vst.msk [vmem:[%s6081_s9 + $0x18] sm:$0xff] %vm1948_vm0, %v2576_v42  ;;  %2609 = vst.msk [vmem:[%s6081_s9 + $0x60] sm:$0xff] %vm1948_vm0, %v2585_v19  ;;  %v2420_v46 = vmul.f32 %v2363_v51, %v5374_v12 }
 0x40e   :  { %v2406_v36 = vmul.f32 %v2293_v18, %v5365_v48 }
 0x40f   :  { %v2588_v5 = vadd.f32 %v2531_v56, %v2420_v46 }
 0x410   :  { %v2574_v62 = vadd.f32 %v5280_v30, %v2406_v36 }
 0x411   :  { %v2353_v1 = vpop.permute.xlu1 %2352  ;;  %v2318_v21 = vpop.permute.xlu0 %2317  ;;  %2612 = vst.msk [vmem:[%s6081_s9 + $0x78] sm:$0xff] %vm1948_vm0, %v2588_v5 }
 0x412   :  { %2598 = vst.msk [vmem:[%s6081_s9 + $0x8] sm:$0xff] %vm1948_vm0, %v2574_v62  ;;  %v2418_v44 = vmul.f32 %v2353_v1, %v5408_v57  ;;  %v2411_v12 = vmul.f32 %v2318_v21, %v5391_v61 }
 0x414   :  { %v2586_v48 = vadd.f32 %v2521_v11, %v2418_v44  ;;  %v2579_v58 = vadd.f32 %v5290_v10, %v2411_v12 }
 0x415   :  { %v2323_v30 = vpop.permute.xlu1 %2322  ;;  %v2378_v33 = vpop.permute.xlu0 %2377 }
 0x416   :  { %2610 = vst.msk [vmem:[%s6081_s9 + $0x68] sm:$0xff] %vm1948_vm0, %v2586_v48  ;;  %2603 = vst.msk [vmem:[%s6081_s9 + $0x30] sm:$0xff] %vm1948_vm0, %v2579_v58  ;;  %v2412_v35 = vmul.f32 %v2323_v30, %v5433_v24  ;;  %v2423_v57 = vmul.f32 %v2378_v33, %v5419_v9 }
 0x418   :  { %v2580_v61 = vadd.f32 %v5292_v63, %v2412_v35  ;;  %v2591_v4 = vadd.f32 %v2546_v16, %v2423_v57 }
 0x419   :  { %v2383_v10 = vpop.permute.xlu1 %2382  ;;  %v2308_v11 = vpop.permute.xlu0 %2307 }
 0x41a   :  { %2604 = vst.msk [vmem:[%s6081_s9 + $0x38] sm:$0xff] %vm1948_vm0, %v2580_v61  ;;  %2615 = vst.msk [vmem:[%s6081_s9 + $0x90] sm:$0xff] %vm1948_vm0, %v2591_v4  ;;  %v2424_v8 = vmul.f32 %v2383_v10, %v5452_v41  ;;  %v2409_v24 = vmul.f32 %v2308_v11, %v5445_v55 }
 0x41c   :  { %v2592_v9 = vadd.f32 %v2551_v34, %v2424_v8  ;;  %v2577_v63 = vadd.f32 %v5286_v25, %v2409_v24 }
 0x41d   :  { %v2313_v56 = vpop.permute.xlu1 %2312  ;;  %v2368_v20 = vpop.permute.xlu0 %2367 }
 0x41e   :  { %2616 = vst.msk [vmem:[%s6081_s9 + $0x98] sm:$0xff] %vm1948_vm0, %v2592_v9  ;;  %2601 = vst.msk [vmem:[%s6081_s9 + $0x20] sm:$0xff] %vm1948_vm0, %v2577_v63  ;;  %v2410_v16 = vmul.f32 %v2313_v56, %v5486_v49  ;;  %v2421_v41 = vmul.f32 %v2368_v20, %v5471_v13 }
 0x420   :  { %v2578_v55 = vadd.f32 %v5288_v29, %v2410_v16  ;;  %v2589_v25 = vadd.f32 %v5928_v14, %v2421_v41 }
 0x421   :  { %v2373_v34 = vpop.permute.xlu1 %2372  ;;  %v2338_v15 = vpop.permute.xlu0 %2337 }
 0x422   :  { %2602 = vst.msk [vmem:[%s6081_s9 + $0x28] sm:$0xff] %vm1948_vm0, %v2578_v55  ;;  %2613 = vst.msk [vmem:[%s6081_s9 + $0x80] sm:$0xff] %vm1948_vm0, %v2589_v25  ;;  %v2422_v49 = vmul.f32 %v2373_v34, %v5511_v43  ;;  %v2415_v13 = vmul.f32 %v2338_v15, %v5497_v54 }
 0x424   :  { %v2590_v29 = vadd.f32 %v5926_v28, %v2422_v49  ;;  %v2583_v14 = vadd.f32 %v5651_v31, %v2415_v13 }
 0x425   :  { %v2343_v59 = vpop.permute.xlu1 %2342  ;;  %v2398_v7 = vpop.permute.xlu0 %2397 }
 0x426   :  { %2614 = vst.msk [vmem:[%s6081_s9 + $0x88] sm:$0xff] %vm1948_vm0, %v2590_v29  ;;  %2607 = vst.msk [vmem:[%s6081_s9 + $0x50] sm:$0xff] %vm1948_vm0, %v2583_v14  ;;  %v2416_v43 = vmul.f32 %v2343_v59, %v5530_v2  ;;  %v2427_v26 = vmul.f32 %v2398_v7, %v5523_v23  ;;  %v6121_v23 = vld [vmem:[#allocation17_spill] sm:$0xff] }
 0x428   :  { %v2584_v54 = vadd.f32 %v5640_v53, %v2416_v43 }
 0x429   :  { %v2403_v45 = vpop.permute.xlu1 %2402  ;;  %v2328_v28 = vpop.permute.xlu0 %2327 }
 0x42a   :  { %2608 = vst.msk [vmem:[%s6081_s9 + $0x58] sm:$0xff] %vm1948_vm0, %v2584_v54  ;;  %v2413_v31 = vmul.f32 %v2328_v28, %v5549_v47  ;;  %v2428_v22 = vmul.f32 %v2403_v45, %v6121_v23 }
 0x42c   :  { %v2581_v39 = vadd.f32 %v5294_v32, %v2413_v31  ;;  %v6120_v32 = vld [vmem:[#allocation7_spill] sm:$0xff] }
 0x42d   :  { %v2333_v0 = vpop.permute.xlu1 %2332  ;;  %v2388_v50 = vpop.permute.xlu0 %2387 }
 0x42e   :  { %2605 = vst.msk [vmem:[%s6081_s9 + $0x40] sm:$0xff] %vm1948_vm0, %v2581_v39  ;;  %v2414_v2 = vmul.f32 %v2333_v0, %v5580_v37  ;;  %v2425_v53 = vmul.f32 %v2388_v50, %v5569_v6 }
 0x430   :  { %v2582_v52 = vadd.f32 %v5296_v38, %v2414_v2  ;;  %v2593_v17 = vadd.f32 %v5932_v27, %v2425_v53 }
 0x431   :  { %v2393_v47 = vpop.permute.xlu1 %2392  ;;  %v2566_v40 = vpop.permute.xlu0 %2565 }
 0x432   :  { %2606 = vst.msk [vmem:[%s6081_s9 + $0x48] sm:$0xff] %vm1948_vm0, %v2582_v52  ;;  %2617 = vst.msk [vmem:[%s6081_s9 + $0xa0] sm:$0xff] %vm1948_vm0, %v2593_v17  ;;  %v2426_v6 = vmul.f32 %v2393_v47, %v6120_v32  ;;  %v2595_v37 = vadd.f32 %v2566_v40, %v2427_v26 }
 0x434   :  { %v2594_v38 = vadd.f32 %v5930_v3, %v2426_v6  ;;  %2619 = vst.msk [vmem:[%s6081_s9 + $0xb0] sm:$0xff] %vm1948_vm0, %v2595_v37 }
 0x435   :  { %v2571_v27 = vpop.permute.xlu1 %2570 }
 0x436   :  { %2618 = vst.msk [vmem:[%s6081_s9 + $0xa8] sm:$0xff] %vm1948_vm0, %v2594_v38  ;;  %v2596_v60 = vadd.f32 %v2571_v27, %v2428_v22 }
 0x438   :  { %2620 = vst.msk [vmem:[%s6081_s9 + $0xb8] sm:$0xff] %vm1948_vm0, %v2596_v60 }

</bundles_post_ra>
